<compile_context>
chip_gen: v5e
topology: v5e:2x2
jax: 0.10.0
libtpu: 0.0.40
codegen_flags: <defaults>
</compile_context>

<pallas_src>
import functools

import jax
import jax.numpy as jnp
from jax.experimental import pallas as pl
from jax.experimental.pallas import tpu as pltpu


# --------------------------------------------------------------------------
# Tiling helper
# --------------------------------------------------------------------------

def _pick_tile(dim, candidates, prefer_multi=False):
    """Largest candidate dividing dim. With prefer_multi, prefer the largest
    candidate that still yields >= 2 grid steps (v7x dual-TC sharding)."""
    divisors = [c for c in candidates if dim % c == 0]
    if not divisors:
        return dim                      # block == full dim (always legal)
    if prefer_multi:
        for c in divisors:
            if dim // c >= 2:
                return c
    return divisors[0]


# --------------------------------------------------------------------------
# Single-K-step matmul kernels (bf16 MXU, f32 accumulation)
# --------------------------------------------------------------------------

def _mm_kernel(a_ref, b_ref, o_ref, *, activation):
    out = jnp.dot(a_ref[...], b_ref[...], preferred_element_type=jnp.float32)
    if activation == "tanh":
        out = jnp.tanh(out)                       # EUP slot, ~free beside MXU
    o_ref[...] = out.astype(o_ref.dtype)


def _mm_bn_relu_kernel(a_ref, scale_ref, shift_ref, b_ref, o_ref, *, activation):
    # Fused BatchNorm(batch stats) + ReLU on the A tile (per-K-channel affine),
    # then cast to bf16 and feed the MXU.  Eliminates the separate BN-apply
    # kernel and one HBM round trip of the activation per layer.
    a = a_ref[...].astype(jnp.float32)
    a = jnp.maximum(a * scale_ref[...] + shift_ref[...], 0.0)
    out = jnp.dot(a.astype(jnp.bfloat16), b_ref[...],
                  preferred_element_type=jnp.float32)
    if activation == "tanh":
        out = jnp.tanh(out)
    o_ref[...] = out.astype(o_ref.dtype)


def pallas_matmul(a, b, *, bn_scale=None, bn_shift=None, activation=None,
                  out_dtype=jnp.float32):
    """(M, K) x (K, N) -> (M, N).  K is small (<= 64 here) so it is never tiled:
    2-D grid, direct store, no accumulator scratch."""
    b = b.astype(jnp.bfloat16)
    M, K = a.shape
    K2, Nm = b.shape
    assert K == K2
    fuse_bn = bn_scale is not None

    tm_cands = (1024, 512, 256, 128, 64, 32, 16, 8)
    tn_cands = (512, 256, 128)
    tm = _pick_tile(M, tm_cands)
    tn = _pick_tile(Nm, tn_cands, prefer_multi=(M // tm < 2))
    if M // tm == 1 and Nm // tn == 1:            # give v7x's 2nd core some work
        tm = _pick_tile(M, tm_cands, prefer_multi=True)
    grid = (M // tm, Nm // tn)

    a_spec = pl.BlockSpec((tm, K), lambda i, j: (i, 0))
    b_spec = pl.BlockSpec((K, tn), lambda i, j: (0, j))
    o_spec = pl.BlockSpec((tm, tn), lambda i, j: (i, j))

    if fuse_bn:
        kern = functools.partial(_mm_bn_relu_kernel, activation=activation)
        in_specs = [a_spec,
                    pl.BlockSpec((1, K), lambda i, j: (0, 0)),
                    pl.BlockSpec((1, K), lambda i, j: (0, 0)),
                    b_spec]
        args = (a, bn_scale, bn_shift, b)
    else:
        kern = functools.partial(_mm_kernel, activation=activation)
        in_specs = [a_spec, b_spec]
        args = (a.astype(jnp.bfloat16), b)

    # No vmem_limit_bytes: tile footprint is < 2 MiB, well inside the default
    # scoped VMEM limit on v5e/v6e/v7x (the old 64 MiB request over-subscribed
    # a v7x TensorCore's entire 64 MiB physical VMEM).
    return pl.pallas_call(
        kern,
        out_shape=jax.ShapeDtypeStruct((M, Nm), out_dtype),
        grid=grid,
        in_specs=in_specs,
        out_specs=o_spec,
        compiler_params=pltpu.CompilerParams(
            dimension_semantics=("parallel", "parallel")),
    )(*args)


# --------------------------------------------------------------------------
# BatchNorm batch statistics (training-mode forward); apply is fused downstream
# --------------------------------------------------------------------------

def _bn_stats_kernel(x_ref, sum_ref, sq_ref):
    x = x_ref[...]
    sum_ref[...] = jnp.sum(x, axis=0, keepdims=True)[None]       # (1, 1, W*C)
    sq_ref[...] = jnp.sum(x * x, axis=0, keepdims=True)[None]    # (1, 1, W*C)


def pallas_bn_stats(x_nhwc):
    """Per-channel mean / biased variance over (N, H, W) on a lane-dense
    (N*H, W*C) view.  One (or two, for v7x sharding) grid steps."""
    N, H, W, C = x_nhwc.shape
    rows, wc = N * H, W * C
    x2 = x_nhwc.reshape(rows, wc)
    nb = 2 if rows >= 32 else 1            # 2 steps only when blocks stay >=16 rows
    tm = rows // nb

    ssum, ssq = pl.pallas_call(
        _bn_stats_kernel,
        out_shape=(jax.ShapeDtypeStruct((nb, 1, wc), jnp.float32),
                   jax.ShapeDtypeStruct((nb, 1, wc), jnp.float32)),
        grid=(nb,),
        in_specs=[pl.BlockSpec((tm, wc), lambda i: (i, 0))],
        out_specs=(pl.BlockSpec((1, 1, wc), lambda i: (i, 0, 0)),
                   pl.BlockSpec((1, 1, wc), lambda i: (i, 0, 0))),
        compiler_params=pltpu.CompilerParams(dimension_semantics=("parallel",)),
    )(x2)

    # Tiny (W, C) fold stays in XLA glue.
    s1 = jnp.sum(ssum, axis=(0, 1)).reshape(W, C).sum(axis=0)
    s2 = jnp.sum(ssq, axis=(0, 1)).reshape(W, C).sum(axis=0)
    cnt = float(N * H * W)
    mean = s1 / cnt
    var = jnp.maximum(s2 / cnt - mean * mean, 0.0)   # biased var (BN training fwd)
    return mean, var


def bn_scale_shift(mean, var, gamma, beta, eps=1e-5):
    # TODO(synk): eval-mode BatchNorm (running stats) is not implemented; this is
    # the training-mode forward, matching the PyTorch module's default state.
    scale = gamma * jax.lax.rsqrt(var + eps)
    shift = beta - mean * scale
    return (scale.reshape(1, -1).astype(jnp.float32),
            shift.reshape(1, -1).astype(jnp.float32))


# --------------------------------------------------------------------------
# ConvTranspose2d(k=4, s=2, p=1): BN+ReLU-fused tap matmul + 4-phase overlap-add
# --------------------------------------------------------------------------

def conv_transpose_s2(x_nhwc, b_mat, bn_scale, bn_shift):
    """x: (N, H, W, Cin) pre-BN activation (f32); b_mat: (Cin, 16*Cout) bf16,
    tap-major (ky, kx, co).  BN+ReLU of the *previous* layer is applied to the
    A tiles inside the matmul.  Output: (N, 2H, 2W, Cout) f32."""
    N, H, W, Cin = x_nhwc.shape
    Cout = b_mat.shape[1] // 16

    # All conv FLOPs on the MXU; tap products stored bf16 (accumulated f32).
    P = pallas_matmul(x_nhwc.reshape(N * H * W, Cin), b_mat,
                      bn_scale=bn_scale, bn_shift=bn_shift,
                      out_dtype=jnp.bfloat16)                 # (N*H*W, 16*Cout)
    P = P.reshape(N, H, W, 4, 4, Cout)
    Pp = jnp.pad(P, ((0, 0), (1, 1), (1, 1), (0, 0), (0, 0), (0, 0)))

    # Sub-pixel (4-phase) overlap-add: output(2m+py, 2l+px) sums 4 neighbouring
    # taps.  Output-sized, fusible XLA glue; upcast to f32 at the add.
    def phase(py, px):
        acc = None
        for dy in (0, 1):
            for dx in (0, 1):
                ky, kx = 3 - py - 2 * dy, 3 - px - 2 * dx
                t = Pp[:, py + dy:py + dy + H, px + dx:px + dx + W,
                       ky, kx, :].astype(jnp.float32)
                acc = t if acc is None else acc + t
        return acc                                            # (N, H, W, Cout)

    # Assemble phases directly as (N, H, 2, W, 2, C); final reshape is layout-free.
    top = jnp.stack([phase(0, 0), phase(0, 1)], axis=3)       # (N, H, W, 2, C)
    bot = jnp.stack([phase(1, 0), phase(1, 1)], axis=3)
    y = jnp.stack([top, bot], axis=2)                         # (N, H, 2, W, 2, C)
    return y.reshape(N, 2 * H, 2 * W, Cout)


# --------------------------------------------------------------------------
# Parameters: synthetic init (PyTorch layouts) + one-time matmul-ready prep
# --------------------------------------------------------------------------

def init_generator_params(key, nz, ngf, nc):
    """Conv weights ~ N(0, 0.02) in PyTorch ConvTranspose2d layout; BN gamma=1, beta=0."""
    ks = jax.random.split(key, 5)
    std = 0.02
    return {
        "w1": jax.random.normal(ks[0], (nz,      ngf * 8, 4, 4), jnp.float32) * std,
        "w2": jax.random.normal(ks[1], (ngf * 8, ngf * 4, 4, 4), jnp.float32) * std,
        "w3": jax.random.normal(ks[2], (ngf * 4, ngf * 2, 4, 4), jnp.float32) * std,
        "w4": jax.random.normal(ks[3], (ngf * 2, ngf,     4, 4), jnp.float32) * std,
        "w5": jax.random.normal(ks[4], (ngf,     nc,      1, 1), jnp.float32) * std,
        "g1": jnp.ones((ngf * 8,), jnp.float32), "b1": jnp.zeros((ngf * 8,), jnp.float32),
        "g2": jnp.ones((ngf * 4,), jnp.float32), "b2": jnp.zeros((ngf * 4,), jnp.float32),
        "g3": jnp.ones((ngf * 2,), jnp.float32), "b3": jnp.zeros((ngf * 2,), jnp.float32),
        "g4": jnp.ones((ngf,),     jnp.float32), "b4": jnp.zeros((ngf,),     jnp.float32),
    }


def prepare_params(params, nc):
    """Pre-fold ConvT weights to (Cin, kh*kw*Cout) tap-major bf16 matrices and pad
    the final 1x1 layer's output channels to 128 (lane-dense tanh-epilogue store)."""
    def deconv_mat(w):                      # (Cin, Cout, kh, kw) -> (Cin, kh*kw*Cout)
        cin, cout, kh, kw = w.shape
        return jnp.transpose(w, (0, 2, 3, 1)).reshape(cin, kh * kw * cout).astype(jnp.bfloat16)

    w5 = params["w5"][:, :, 0, 0]           # (C4, nc) 1x1 kernel
    b5 = jnp.pad(w5, ((0, 0), (0, (-nc) % 128))).astype(jnp.bfloat16)
    prep = {
        "B1": deconv_mat(params["w1"]),
        "B2": deconv_mat(params["w2"]),
        "B3": deconv_mat(params["w3"]),
        "B4": deconv_mat(params["w4"]),
        "B5": b5,
    }
    for k in ("g1", "b1", "g2", "b2", "g3", "b3", "g4", "b4"):
        prep[k] = params[k]
    return prep


# --------------------------------------------------------------------------
# Generator forward (semantics of the PyTorch nn.Sequential, training-mode BN)
# --------------------------------------------------------------------------

@functools.partial(jax.jit, static_argnums=(2,))
def generator_forward(x_nchw, prep, nc):
    N = x_nchw.shape[0]
    z = x_nchw.reshape(N, -1)                                  # (N, nz)

    # ConvT(nz, C1, 4, 1, 0) on 1x1 input == pure matmul -> (N, 4, 4, C1)
    C1 = prep["g1"].shape[0]
    h = pallas_matmul(z, prep["B1"]).reshape(N, 4, 4, C1)
    mean, var = pallas_bn_stats(h)
    scale, shift = bn_scale_shift(mean, var, prep["g1"], prep["b1"])

    # Three ConvT(k=4, s=2, p=1) stages (4->8->16->32); BN+ReLU of the previous
    # layer is fused into each stage's tap matmul; stats computed on the output.
    for wk, gk, bk in (("B2", "g2", "b2"), ("B3", "g3", "b3"), ("B4", "g4", "b4")):
        h = conv_transpose_s2(h, prep[wk], scale, shift)
        mean, var = pallas_bn_stats(h)
        scale, shift = bn_scale_shift(mean, var, prep[gk], prep[bk])

    # ConvT(C4, nc, 1, 1, 0) + Tanh: BN4+ReLU fused on A, tanh epilogue,
    # output channels padded to 128 lanes, sliced once at the end.
    Nb, H, W, C4 = h.shape
    y = pallas_matmul(h.reshape(Nb * H * W, C4), prep["B5"],
                      bn_scale=scale, bn_shift=shift, activation="tanh")
    y = y[:, :nc].reshape(Nb, H, W, nc)

    # NHWC -> NCHW (PyTorch output layout)
    return jnp.transpose(y, (0, 3, 1, 2)).astype(jnp.float32)


if __name__ == "__main__":
    # Small, shape-consistent config: latent nz=32, base width ngf=8, nc=3, batch=2.
    batch, nz, ngf, nc = 2, 32, 8, 3

    key = jax.random.PRNGKey(0)
    k_params, k_input = jax.random.split(key)
    params = init_generator_params(k_params, nz, ngf, nc)
    prep = prepare_params(params, nc)

    x = jax.random.normal(k_input, (batch, nz, 1, 1), jnp.float32)  # NCHW, like PyTorch

    out = generator_forward(x, prep, nc)
    out = jax.block_until_ready(out)

    assert out.shape == (batch, nc, 32, 32), out.shape
    assert out.dtype == jnp.float32
    assert bool(jnp.all(jnp.isfinite(out)))
    assert bool(jnp.all(jnp.abs(out) <= 1.0))  # tanh output range

    print("KERNEL_OK")
</pallas_src>

<mosaic_0001>
module attributes {stable_mosaic.version = 11 : i64} {
  func.func @_mm_kernel(%arg0: i32, %arg1: i32, %arg2: memref<2x32xbf16, #tpu.memory_space<vmem>>, %arg3: memref<32x512xbf16, #tpu.memory_space<vmem>>, %arg4: memref<2x512xf32, #tpu.memory_space<vmem>>) attributes {dimension_semantics = [#tpu.dimension_semantics<parallel>, #tpu.dimension_semantics<parallel>], iteration_bounds = array<i64: 1, 2>, scalar_prefetch = 0 : i64, scratch_operands = 0 : i64, tpu.core_type = #tpu.core_type<tc>, window_params = [{transform_indices = @transform_0, window_bounds = array<i64: 2, 32>}, {transform_indices = @transform_1, window_bounds = array<i64: 32, 512>}, {transform_indices = @transform_2, window_bounds = array<i64: 2, 512>}]} {
    %c0 = arith.constant 0 : index
    %c0_0 = arith.constant 0 : index
    %0 = vector.load %arg2[%c0, %c0_0] : memref<2x32xbf16, #tpu.memory_space<vmem>>, vector<2x32xbf16>
    %c0_1 = arith.constant 0 : index
    %c0_2 = arith.constant 0 : index
    %1 = vector.load %arg3[%c0_1, %c0_2] : memref<32x512xbf16, #tpu.memory_space<vmem>>, vector<32x512xbf16>
    %cst = arith.constant dense<0.000000e+00> : vector<2x512xf32>
    %2 = tpu.matmul %0, %1, %cst {dimension_numbers = #tpu.dot_dimension_numbers<[1], [0], [0], [1], [0, 0, 1, 1], [], []>} : vector<2x32xbf16>, vector<32x512xbf16>, vector<2x512xf32> -> vector<2x512xf32>
    %c0_3 = arith.constant 0 : index
    %c0_4 = arith.constant 0 : index
    %3 = vector.load %arg4[%c0_3, %c0_4] : memref<2x512xf32, #tpu.memory_space<vmem>>, vector<2x512xf32>
    tpu.vector_store %arg4[%c0_3, %c0_4], %2 {strides = array<i32>} : memref<2x512xf32, #tpu.memory_space<vmem>>, vector<2x512xf32>,
    return
  }
  func.func @transform_0(%arg0: i32, %arg1: i32) -> (i32, i32) {
    %c0_i32 = arith.constant 0 : i32
    %c0_i32_0 = arith.constant 0 : i32
    return %arg0, %c0_i32 : i32, i32
  }
  func.func @transform_1(%arg0: i32, %arg1: i32) -> (i32, i32) {
    %c0_i32 = arith.constant 0 : i32
    %c0_i32_0 = arith.constant 0 : i32
    return %c0_i32, %arg1 : i32, i32
  }
  func.func @transform_2(%arg0: i32, %arg1: i32) -> (i32, i32) {
    %c0_i32 = arith.constant 0 : i32
    return %arg0, %arg1 : i32, i32
  }
}

module attributes {stable_mosaic.version = 11 : i64} {
  func.func @_bn_stats_kernel(%arg0: i32, %arg1: memref<8x256xf32, #tpu.memory_space<vmem>>, %arg2: memref<1x1x256xf32, #tpu.memory_space<vmem>>, %arg3: memref<1x1x256xf32, #tpu.memory_space<vmem>>) attributes {dimension_semantics = [#tpu.dimension_semantics<parallel>], iteration_bounds = array<i64: 1>, scalar_prefetch = 0 : i64, scratch_operands = 0 : i64, tpu.core_type = #tpu.core_type<tc>, window_params = [{transform_indices = @transform_0, window_bounds = array<i64: 8, 256>}, {transform_indices = @transform_1, window_bounds = array<i64: 1, 1, 256>}, {transform_indices = @transform_2, window_bounds = array<i64: 1, 1, 256>}]} {
    %c0 = arith.constant 0 : index
    %c0_0 = arith.constant 0 : index
    %0 = vector.load %arg1[%c0, %c0_0] : memref<8x256xf32, #tpu.memory_space<vmem>>, vector<8x256xf32>
    %cst = arith.constant dense<0.000000e+00> : vector<256xf32>
    %1 = vector.multi_reduction <add>, %0, %cst [0] : vector<8x256xf32> to vector<256xf32>
    %2 = vector.shape_cast %1 : vector<256xf32> to vector<1x256xf32>
    %3 = vector.shape_cast %2 : vector<1x256xf32> to vector<1x1x256xf32>
    %c0_1 = arith.constant 0 : index
    %c0_2 = arith.constant 0 : index
    %c0_3 = arith.constant 0 : index
    %4 = vector.load %arg2[%c0_1, %c0_2, %c0_3] : memref<1x1x256xf32, #tpu.memory_space<vmem>>, vector<1x1x256xf32>
    tpu.vector_store %arg2[%c0_1, %c0_2, %c0_3], %3 {strides = array<i32>} : memref<1x1x256xf32, #tpu.memory_space<vmem>>, vector<1x1x256xf32>,
    %5 = arith.mulf %0, %0 : vector<8x256xf32>
    %cst_4 = arith.constant dense<0.000000e+00> : vector<256xf32>
    %6 = vector.multi_reduction <add>, %5, %cst_4 [0] : vector<8x256xf32> to vector<256xf32>
    %7 = vector.shape_cast %6 : vector<256xf32> to vector<1x256xf32>
    %8 = vector.shape_cast %7 : vector<1x256xf32> to vector<1x1x256xf32>
    %c0_5 = arith.constant 0 : index
    %c0_6 = arith.constant 0 : index
    %c0_7 = arith.constant 0 : index
    %9 = vector.load %arg3[%c0_5, %c0_6, %c0_7] : memref<1x1x256xf32, #tpu.memory_space<vmem>>, vector<1x1x256xf32>
    tpu.vector_store %arg3[%c0_5, %c0_6, %c0_7], %8 {strides = array<i32>} : memref<1x1x256xf32, #tpu.memory_space<vmem>>, vector<1x1x256xf32>,
    return
  }
  func.func @transform_0(%arg0: i32) -> (i32, i32) {
    %c0_i32 = arith.constant 0 : i32
    %c0_i32_0 = arith.constant 0 : i32
    return %arg0, %c0_i32 : i32, i32
  }
  func.func @transform_1(%arg0: i32) -> (i32, i32, i32) {
    %c0_i32 = arith.constant 0 : i32
    %c0_i32_0 = arith.constant 0 : i32
    %c0_i32_1 = arith.constant 0 : i32
    return %arg0, %c0_i32, %c0_i32_0 : i32, i32, i32
  }
  func.func @transform_2(%arg0: i32) -> (i32, i32, i32) {
    %c0_i32 = arith.constant 0 : i32
    %c0_i32_0 = arith.constant 0 : i32
    %c0_i32_1 = arith.constant 0 : i32
    return %arg0, %c0_i32, %c0_i32_0 : i32, i32, i32
  }
}

module attributes {stable_mosaic.version = 11 : i64} {
  func.func @_mm_bn_relu_kernel(%arg0: i32, %arg1: i32, %arg2: memref<32x64xf32, #tpu.memory_space<vmem>>, %arg3: memref<1x64xf32, #tpu.memory_space<vmem>>, %arg4: memref<1x64xf32, #tpu.memory_space<vmem>>, %arg5: memref<64x256xbf16, #tpu.memory_space<vmem>>, %arg6: memref<32x256xbf16, #tpu.memory_space<vmem>>) attributes {dimension_semantics = [#tpu.dimension_semantics<parallel>, #tpu.dimension_semantics<parallel>], iteration_bounds = array<i64: 1, 2>, scalar_prefetch = 0 : i64, scratch_operands = 0 : i64, tpu.core_type = #tpu.core_type<tc>, window_params = [{transform_indices = @transform_0, window_bounds = array<i64: 32, 64>}, {pipeline_mode = #tpu.pipeline_mode<synchronous>, transform_indices = @transform_1, window_bounds = array<i64: 1, 64>}, {pipeline_mode = #tpu.pipeline_mode<synchronous>, transform_indices = @transform_2, window_bounds = array<i64: 1, 64>}, {transform_indices = @transform_3, window_bounds = array<i64: 64, 256>}, {transform_indices = @transform_4, window_bounds = array<i64: 32, 256>}]} {
    %c0 = arith.constant 0 : index
    %c0_0 = arith.constant 0 : index
    %0 = vector.load %arg2[%c0, %c0_0] : memref<32x64xf32, #tpu.memory_space<vmem>>, vector<32x64xf32>
    %c0_1 = arith.constant 0 : index
    %c0_2 = arith.constant 0 : index
    %1 = vector.load %arg3[%c0_1, %c0_2] : memref<1x64xf32, #tpu.memory_space<vmem>>, vector<1x64xf32>
    %2 = vector.broadcast %1 : vector<1x64xf32> to vector<32x64xf32>
    %3 = arith.mulf %0, %2 : vector<32x64xf32>
    %c0_3 = arith.constant 0 : index
    %c0_4 = arith.constant 0 : index
    %4 = vector.load %arg4[%c0_3, %c0_4] : memref<1x64xf32, #tpu.memory_space<vmem>>, vector<1x64xf32>
    %5 = vector.broadcast %4 : vector<1x64xf32> to vector<32x64xf32>
    %6 = arith.addf %3, %5 : vector<32x64xf32>
    %cst = arith.constant 0.000000e+00 : f32
    %7 = vector.broadcast %cst : f32 to vector<32x64xf32>
    %8 = arith.maximumf %6, %7 : vector<32x64xf32>
    %9 = arith.truncf %8 : vector<32x64xf32> to vector<32x64xbf16>
    %c0_5 = arith.constant 0 : index
    %c0_6 = arith.constant 0 : index
    %10 = vector.load %arg5[%c0_5, %c0_6] : memref<64x256xbf16, #tpu.memory_space<vmem>>, vector<64x256xbf16>
    %cst_7 = arith.constant dense<0.000000e+00> : vector<32x256xf32>
    %11 = tpu.matmul %9, %10, %cst_7 {dimension_numbers = #tpu.dot_dimension_numbers<[1], [0], [0], [1], [0, 0, 1, 1], [], []>} : vector<32x64xbf16>, vector<64x256xbf16>, vector<32x256xf32> -> vector<32x256xf32>
    %12 = arith.truncf %11 : vector<32x256xf32> to vector<32x256xbf16>
    %c0_8 = arith.constant 0 : index
    %c0_9 = arith.constant 0 : index
    %13 = vector.load %arg6[%c0_8, %c0_9] : memref<32x256xbf16, #tpu.memory_space<vmem>>, vector<32x256xbf16>
    tpu.vector_store %arg6[%c0_8, %c0_9], %12 {strides = array<i32>} : memref<32x256xbf16, #tpu.memory_space<vmem>>, vector<32x256xbf16>,
    return
  }
  func.func @transform_0(%arg0: i32, %arg1: i32) -> (i32, i32) {
    %c0_i32 = arith.constant 0 : i32
    %c0_i32_0 = arith.constant 0 : i32
    return %arg0, %c0_i32 : i32, i32
  }
  func.func @transform_1(%arg0: i32, %arg1: i32) -> (i32, i32) {
    %c0_i32 = arith.constant 0 : i32
    %c0_i32_0 = arith.constant 0 : i32
    %c0_i32_1 = arith.constant 0 : i32
    return %c0_i32, %c0_i32_0 : i32, i32
  }
  func.func @transform_2(%arg0: i32, %arg1: i32) -> (i32, i32) {
    %c0_i32 = arith.constant 0 : i32
    %c0_i32_0 = arith.constant 0 : i32
    %c0_i32_1 = arith.constant 0 : i32
    return %c0_i32, %c0_i32_0 : i32, i32
  }
  func.func @transform_3(%arg0: i32, %arg1: i32) -> (i32, i32) {
    %c0_i32 = arith.constant 0 : i32
    %c0_i32_0 = arith.constant 0 : i32
    return %c0_i32, %arg1 : i32, i32
  }
  func.func @transform_4(%arg0: i32, %arg1: i32) -> (i32, i32) {
    %c0_i32 = arith.constant 0 : i32
    return %arg0, %arg1 : i32, i32
  }
}

module attributes {stable_mosaic.version = 11 : i64} {
  func.func @_bn_stats_kernel(%arg0: i32, %arg1: memref<16x256xf32, #tpu.memory_space<vmem>>, %arg2: memref<1x1x256xf32, #tpu.memory_space<vmem>>, %arg3: memref<1x1x256xf32, #tpu.memory_space<vmem>>) attributes {dimension_semantics = [#tpu.dimension_semantics<parallel>], iteration_bounds = array<i64: 1>, scalar_prefetch = 0 : i64, scratch_operands = 0 : i64, tpu.core_type = #tpu.core_type<tc>, window_params = [{transform_indices = @transform_0, window_bounds = array<i64: 16, 256>}, {transform_indices = @transform_1, window_bounds = array<i64: 1, 1, 256>}, {transform_indices = @transform_2, window_bounds = array<i64: 1, 1, 256>}]} {
    %c0 = arith.constant 0 : index
    %c0_0 = arith.constant 0 : index
    %0 = vector.load %arg1[%c0, %c0_0] : memref<16x256xf32, #tpu.memory_space<vmem>>, vector<16x256xf32>
    %cst = arith.constant dense<0.000000e+00> : vector<256xf32>
    %1 = vector.multi_reduction <add>, %0, %cst [0] : vector<16x256xf32> to vector<256xf32>
    %2 = vector.shape_cast %1 : vector<256xf32> to vector<1x256xf32>
    %3 = vector.shape_cast %2 : vector<1x256xf32> to vector<1x1x256xf32>
    %c0_1 = arith.constant 0 : index
    %c0_2 = arith.constant 0 : index
    %c0_3 = arith.constant 0 : index
    %4 = vector.load %arg2[%c0_1, %c0_2, %c0_3] : memref<1x1x256xf32, #tpu.memory_space<vmem>>, vector<1x1x256xf32>
    tpu.vector_store %arg2[%c0_1, %c0_2, %c0_3], %3 {strides = array<i32>} : memref<1x1x256xf32, #tpu.memory_space<vmem>>, vector<1x1x256xf32>,
    %5 = arith.mulf %0, %0 : vector<16x256xf32>
    %cst_4 = arith.constant dense<0.000000e+00> : vector<256xf32>
    %6 = vector.multi_reduction <add>, %5, %cst_4 [0] : vector<16x256xf32> to vector<256xf32>
    %7 = vector.shape_cast %6 : vector<256xf32> to vector<1x256xf32>
    %8 = vector.shape_cast %7 : vector<1x256xf32> to vector<1x1x256xf32>
    %c0_5 = arith.constant 0 : index
    %c0_6 = arith.constant 0 : index
    %c0_7 = arith.constant 0 : index
    %9 = vector.load %arg3[%c0_5, %c0_6, %c0_7] : memref<1x1x256xf32, #tpu.memory_space<vmem>>, vector<1x1x256xf32>
    tpu.vector_store %arg3[%c0_5, %c0_6, %c0_7], %8 {strides = array<i32>} : memref<1x1x256xf32, #tpu.memory_space<vmem>>, vector<1x1x256xf32>,
    return
  }
  func.func @transform_0(%arg0: i32) -> (i32, i32) {
    %c0_i32 = arith.constant 0 : i32
    %c0_i32_0 = arith.constant 0 : i32
    return %arg0, %c0_i32 : i32, i32
  }
  func.func @transform_1(%arg0: i32) -> (i32, i32, i32) {
    %c0_i32 = arith.constant 0 : i32
    %c0_i32_0 = arith.constant 0 : i32
    %c0_i32_1 = arith.constant 0 : i32
    return %arg0, %c0_i32, %c0_i32_0 : i32, i32, i32
  }
  func.func @transform_2(%arg0: i32) -> (i32, i32, i32) {
    %c0_i32 = arith.constant 0 : i32
    %c0_i32_0 = arith.constant 0 : i32
    %c0_i32_1 = arith.constant 0 : i32
    return %arg0, %c0_i32, %c0_i32_0 : i32, i32, i32
  }
}

module attributes {stable_mosaic.version = 11 : i64} {
  func.func @_mm_bn_relu_kernel(%arg0: i32, %arg1: i32, %arg2: memref<128x32xf32, #tpu.memory_space<vmem>>, %arg3: memref<1x32xf32, #tpu.memory_space<vmem>>, %arg4: memref<1x32xf32, #tpu.memory_space<vmem>>, %arg5: memref<32x128xbf16, #tpu.memory_space<vmem>>, %arg6: memref<128x128xbf16, #tpu.memory_space<vmem>>) attributes {dimension_semantics = [#tpu.dimension_semantics<parallel>, #tpu.dimension_semantics<parallel>], iteration_bounds = array<i64: 1, 2>, scalar_prefetch = 0 : i64, scratch_operands = 0 : i64, tpu.core_type = #tpu.core_type<tc>, window_params = [{transform_indices = @transform_0, window_bounds = array<i64: 128, 32>}, {pipeline_mode = #tpu.pipeline_mode<synchronous>, transform_indices = @transform_1, window_bounds = array<i64: 1, 32>}, {pipeline_mode = #tpu.pipeline_mode<synchronous>, transform_indices = @transform_2, window_bounds = array<i64: 1, 32>}, {transform_indices = @transform_3, window_bounds = array<i64: 32, 128>}, {transform_indices = @transform_4, window_bounds = array<i64: 128, 128>}]} {
    %c0 = arith.constant 0 : index
    %c0_0 = arith.constant 0 : index
    %0 = vector.load %arg2[%c0, %c0_0] : memref<128x32xf32, #tpu.memory_space<vmem>>, vector<128x32xf32>
    %c0_1 = arith.constant 0 : index
    %c0_2 = arith.constant 0 : index
    %1 = vector.load %arg3[%c0_1, %c0_2] : memref<1x32xf32, #tpu.memory_space<vmem>>, vector<1x32xf32>
    %2 = vector.broadcast %1 : vector<1x32xf32> to vector<128x32xf32>
    %3 = arith.mulf %0, %2 : vector<128x32xf32>
    %c0_3 = arith.constant 0 : index
    %c0_4 = arith.constant 0 : index
    %4 = vector.load %arg4[%c0_3, %c0_4] : memref<1x32xf32, #tpu.memory_space<vmem>>, vector<1x32xf32>
    %5 = vector.broadcast %4 : vector<1x32xf32> to vector<128x32xf32>
    %6 = arith.addf %3, %5 : vector<128x32xf32>
    %cst = arith.constant 0.000000e+00 : f32
    %7 = vector.broadcast %cst : f32 to vector<128x32xf32>
    %8 = arith.maximumf %6, %7 : vector<128x32xf32>
    %9 = arith.truncf %8 : vector<128x32xf32> to vector<128x32xbf16>
    %c0_5 = arith.constant 0 : index
    %c0_6 = arith.constant 0 : index
    %10 = vector.load %arg5[%c0_5, %c0_6] : memref<32x128xbf16, #tpu.memory_space<vmem>>, vector<32x128xbf16>
    %cst_7 = arith.constant dense<0.000000e+00> : vector<128x128xf32>
    %11 = tpu.matmul %9, %10, %cst_7 {dimension_numbers = #tpu.dot_dimension_numbers<[1], [0], [0], [1], [0, 0, 1, 1], [], []>} : vector<128x32xbf16>, vector<32x128xbf16>, vector<128x128xf32> -> vector<128x128xf32>
    %12 = arith.truncf %11 : vector<128x128xf32> to vector<128x128xbf16>
    %c0_8 = arith.constant 0 : index
    %c0_9 = arith.constant 0 : index
    %13 = vector.load %arg6[%c0_8, %c0_9] : memref<128x128xbf16, #tpu.memory_space<vmem>>, vector<128x128xbf16>
    tpu.vector_store %arg6[%c0_8, %c0_9], %12 {strides = array<i32>} : memref<128x128xbf16, #tpu.memory_space<vmem>>, vector<128x128xbf16>,
    return
  }
  func.func @transform_0(%arg0: i32, %arg1: i32) -> (i32, i32) {
    %c0_i32 = arith.constant 0 : i32
    %c0_i32_0 = arith.constant 0 : i32
    return %arg0, %c0_i32 : i32, i32
  }
  func.func @transform_1(%arg0: i32, %arg1: i32) -> (i32, i32) {
    %c0_i32 = arith.constant 0 : i32
    %c0_i32_0 = arith.constant 0 : i32
    %c0_i32_1 = arith.constant 0 : i32
    return %c0_i32, %c0_i32_0 : i32, i32
  }
  func.func @transform_2(%arg0: i32, %arg1: i32) -> (i32, i32) {
    %c0_i32 = arith.constant 0 : i32
    %c0_i32_0 = arith.constant 0 : i32
    %c0_i32_1 = arith.constant 0 : i32
    return %c0_i32, %c0_i32_0 : i32, i32
  }
  func.func @transform_3(%arg0: i32, %arg1: i32) -> (i32, i32) {
    %c0_i32 = arith.constant 0 : i32
    %c0_i32_0 = arith.constant 0 : i32
    return %c0_i32, %arg1 : i32, i32
  }
  func.func @transform_4(%arg0: i32, %arg1: i32) -> (i32, i32) {
    %c0_i32 = arith.constant 0 : i32
    return %arg0, %arg1 : i32, i32
  }
}

module attributes {stable_mosaic.version = 11 : i64} {
  func.func @_bn_stats_kernel(%arg0: i32, %arg1: memref<16x256xf32, #tpu.memory_space<vmem>>, %arg2: memref<1x1x256xf32, #tpu.memory_space<vmem>>, %arg3: memref<1x1x256xf32, #tpu.memory_space<vmem>>) attributes {dimension_semantics = [#tpu.dimension_semantics<parallel>], iteration_bounds = array<i64: 2>, scalar_prefetch = 0 : i64, scratch_operands = 0 : i64, tpu.core_type = #tpu.core_type<tc>, window_params = [{transform_indices = @transform_0, window_bounds = array<i64: 16, 256>}, {transform_indices = @transform_1, window_bounds = array<i64: 1, 1, 256>}, {transform_indices = @transform_2, window_bounds = array<i64: 1, 1, 256>}]} {
    %c0 = arith.constant 0 : index
    %c0_0 = arith.constant 0 : index
    %0 = vector.load %arg1[%c0, %c0_0] : memref<16x256xf32, #tpu.memory_space<vmem>>, vector<16x256xf32>
    %cst = arith.constant dense<0.000000e+00> : vector<256xf32>
    %1 = vector.multi_reduction <add>, %0, %cst [0] : vector<16x256xf32> to vector<256xf32>
    %2 = vector.shape_cast %1 : vector<256xf32> to vector<1x256xf32>
    %3 = vector.shape_cast %2 : vector<1x256xf32> to vector<1x1x256xf32>
    %c0_1 = arith.constant 0 : index
    %c0_2 = arith.constant 0 : index
    %c0_3 = arith.constant 0 : index
    %4 = vector.load %arg2[%c0_1, %c0_2, %c0_3] : memref<1x1x256xf32, #tpu.memory_space<vmem>>, vector<1x1x256xf32>
    tpu.vector_store %arg2[%c0_1, %c0_2, %c0_3], %3 {strides = array<i32>} : memref<1x1x256xf32, #tpu.memory_space<vmem>>, vector<1x1x256xf32>,
    %5 = arith.mulf %0, %0 : vector<16x256xf32>
    %cst_4 = arith.constant dense<0.000000e+00> : vector<256xf32>
    %6 = vector.multi_reduction <add>, %5, %cst_4 [0] : vector<16x256xf32> to vector<256xf32>
    %7 = vector.shape_cast %6 : vector<256xf32> to vector<1x256xf32>
    %8 = vector.shape_cast %7 : vector<1x256xf32> to vector<1x1x256xf32>
    %c0_5 = arith.constant 0 : index
    %c0_6 = arith.constant 0 : index
    %c0_7 = arith.constant 0 : index
    %9 = vector.load %arg3[%c0_5, %c0_6, %c0_7] : memref<1x1x256xf32, #tpu.memory_space<vmem>>, vector<1x1x256xf32>
    tpu.vector_store %arg3[%c0_5, %c0_6, %c0_7], %8 {strides = array<i32>} : memref<1x1x256xf32, #tpu.memory_space<vmem>>, vector<1x1x256xf32>,
    return
  }
  func.func @transform_0(%arg0: i32) -> (i32, i32) {
    %c0_i32 = arith.constant 0 : i32
    %c0_i32_0 = arith.constant 0 : i32
    return %arg0, %c0_i32 : i32, i32
  }
  func.func @transform_1(%arg0: i32) -> (i32, i32, i32) {
    %c0_i32 = arith.constant 0 : i32
    %c0_i32_0 = arith.constant 0 : i32
    %c0_i32_1 = arith.constant 0 : i32
    return %arg0, %c0_i32, %c0_i32_0 : i32, i32, i32
  }
  func.func @transform_2(%arg0: i32) -> (i32, i32, i32) {
    %c0_i32 = arith.constant 0 : i32
    %c0_i32_0 = arith.constant 0 : i32
    %c0_i32_1 = arith.constant 0 : i32
    return %arg0, %c0_i32, %c0_i32_0 : i32, i32, i32
  }
}

module attributes {stable_mosaic.version = 11 : i64} {
  func.func @_mm_bn_relu_kernel(%arg0: i32, %arg1: i32, %arg2: memref<256x16xf32, #tpu.memory_space<vmem>>, %arg3: memref<1x16xf32, #tpu.memory_space<vmem>>, %arg4: memref<1x16xf32, #tpu.memory_space<vmem>>, %arg5: memref<16x128xbf16, #tpu.memory_space<vmem>>, %arg6: memref<256x128xbf16, #tpu.memory_space<vmem>>) attributes {dimension_semantics = [#tpu.dimension_semantics<parallel>, #tpu.dimension_semantics<parallel>], iteration_bounds = array<i64: 2, 1>, scalar_prefetch = 0 : i64, scratch_operands = 0 : i64, tpu.core_type = #tpu.core_type<tc>, window_params = [{transform_indices = @transform_0, window_bounds = array<i64: 256, 16>}, {pipeline_mode = #tpu.pipeline_mode<synchronous>, transform_indices = @transform_1, window_bounds = array<i64: 1, 16>}, {pipeline_mode = #tpu.pipeline_mode<synchronous>, transform_indices = @transform_2, window_bounds = array<i64: 1, 16>}, {transform_indices = @transform_3, window_bounds = array<i64: 16, 128>}, {transform_indices = @transform_4, window_bounds = array<i64: 256, 128>}]} {
    %c0 = arith.constant 0 : index
    %c0_0 = arith.constant 0 : index
    %0 = vector.load %arg2[%c0, %c0_0] : memref<256x16xf32, #tpu.memory_space<vmem>>, vector<256x16xf32>
    %c0_1 = arith.constant 0 : index
    %c0_2 = arith.constant 0 : index
    %1 = vector.load %arg3[%c0_1, %c0_2] : memref<1x16xf32, #tpu.memory_space<vmem>>, vector<1x16xf32>
    %2 = vector.broadcast %1 : vector<1x16xf32> to vector<256x16xf32>
    %3 = arith.mulf %0, %2 : vector<256x16xf32>
    %c0_3 = arith.constant 0 : index
    %c0_4 = arith.constant 0 : index
    %4 = vector.load %arg4[%c0_3, %c0_4] : memref<1x16xf32, #tpu.memory_space<vmem>>, vector<1x16xf32>
    %5 = vector.broadcast %4 : vector<1x16xf32> to vector<256x16xf32>
    %6 = arith.addf %3, %5 : vector<256x16xf32>
    %cst = arith.constant 0.000000e+00 : f32
    %7 = vector.broadcast %cst : f32 to vector<256x16xf32>
    %8 = arith.maximumf %6, %7 : vector<256x16xf32>
    %9 = arith.truncf %8 : vector<256x16xf32> to vector<256x16xbf16>
    %c0_5 = arith.constant 0 : index
    %c0_6 = arith.constant 0 : index
    %10 = vector.load %arg5[%c0_5, %c0_6] : memref<16x128xbf16, #tpu.memory_space<vmem>>, vector<16x128xbf16>
    %cst_7 = arith.constant dense<0.000000e+00> : vector<256x128xf32>
    %11 = tpu.matmul %9, %10, %cst_7 {dimension_numbers = #tpu.dot_dimension_numbers<[1], [0], [0], [1], [0, 0, 1, 1], [], []>} : vector<256x16xbf16>, vector<16x128xbf16>, vector<256x128xf32> -> vector<256x128xf32>
    %12 = arith.truncf %11 : vector<256x128xf32> to vector<256x128xbf16>
    %c0_8 = arith.constant 0 : index
    %c0_9 = arith.constant 0 : index
    %13 = vector.load %arg6[%c0_8, %c0_9] : memref<256x128xbf16, #tpu.memory_space<vmem>>, vector<256x128xbf16>
    tpu.vector_store %arg6[%c0_8, %c0_9], %12 {strides = array<i32>} : memref<256x128xbf16, #tpu.memory_space<vmem>>, vector<256x128xbf16>,
    return
  }
  func.func @transform_0(%arg0: i32, %arg1: i32) -> (i32, i32) {
    %c0_i32 = arith.constant 0 : i32
    %c0_i32_0 = arith.constant 0 : i32
    return %arg0, %c0_i32 : i32, i32
  }
  func.func @transform_1(%arg0: i32, %arg1: i32) -> (i32, i32) {
    %c0_i32 = arith.constant 0 : i32
    %c0_i32_0 = arith.constant 0 : i32
    %c0_i32_1 = arith.constant 0 : i32
    return %c0_i32, %c0_i32_0 : i32, i32
  }
  func.func @transform_2(%arg0: i32, %arg1: i32) -> (i32, i32) {
    %c0_i32 = arith.constant 0 : i32
    %c0_i32_0 = arith.constant 0 : i32
    %c0_i32_1 = arith.constant 0 : i32
    return %c0_i32, %c0_i32_0 : i32, i32
  }
  func.func @transform_3(%arg0: i32, %arg1: i32) -> (i32, i32) {
    %c0_i32 = arith.constant 0 : i32
    %c0_i32_0 = arith.constant 0 : i32
    return %c0_i32, %arg1 : i32, i32
  }
  func.func @transform_4(%arg0: i32, %arg1: i32) -> (i32, i32) {
    %c0_i32 = arith.constant 0 : i32
    return %arg0, %arg1 : i32, i32
  }
}

module attributes {stable_mosaic.version = 11 : i64} {
  func.func @_bn_stats_kernel(%arg0: i32, %arg1: memref<32x256xf32, #tpu.memory_space<vmem>>, %arg2: memref<1x1x256xf32, #tpu.memory_space<vmem>>, %arg3: memref<1x1x256xf32, #tpu.memory_space<vmem>>) attributes {dimension_semantics = [#tpu.dimension_semantics<parallel>], iteration_bounds = array<i64: 2>, scalar_prefetch = 0 : i64, scratch_operands = 0 : i64, tpu.core_type = #tpu.core_type<tc>, window_params = [{transform_indices = @transform_0, window_bounds = array<i64: 32, 256>}, {transform_indices = @transform_1, window_bounds = array<i64: 1, 1, 256>}, {transform_indices = @transform_2, window_bounds = array<i64: 1, 1, 256>}]} {
    %c0 = arith.constant 0 : index
    %c0_0 = arith.constant 0 : index
    %0 = vector.load %arg1[%c0, %c0_0] : memref<32x256xf32, #tpu.memory_space<vmem>>, vector<32x256xf32>
    %cst = arith.constant dense<0.000000e+00> : vector<256xf32>
    %1 = vector.multi_reduction <add>, %0, %cst [0] : vector<32x256xf32> to vector<256xf32>
    %2 = vector.shape_cast %1 : vector<256xf32> to vector<1x256xf32>
    %3 = vector.shape_cast %2 : vector<1x256xf32> to vector<1x1x256xf32>
    %c0_1 = arith.constant 0 : index
    %c0_2 = arith.constant 0 : index
    %c0_3 = arith.constant 0 : index
    %4 = vector.load %arg2[%c0_1, %c0_2, %c0_3] : memref<1x1x256xf32, #tpu.memory_space<vmem>>, vector<1x1x256xf32>
    tpu.vector_store %arg2[%c0_1, %c0_2, %c0_3], %3 {strides = array<i32>} : memref<1x1x256xf32, #tpu.memory_space<vmem>>, vector<1x1x256xf32>,
    %5 = arith.mulf %0, %0 : vector<32x256xf32>
    %cst_4 = arith.constant dense<0.000000e+00> : vector<256xf32>
    %6 = vector.multi_reduction <add>, %5, %cst_4 [0] : vector<32x256xf32> to vector<256xf32>
    %7 = vector.shape_cast %6 : vector<256xf32> to vector<1x256xf32>
    %8 = vector.shape_cast %7 : vector<1x256xf32> to vector<1x1x256xf32>
    %c0_5 = arith.constant 0 : index
    %c0_6 = arith.constant 0 : index
    %c0_7 = arith.constant 0 : index
    %9 = vector.load %arg3[%c0_5, %c0_6, %c0_7] : memref<1x1x256xf32, #tpu.memory_space<vmem>>, vector<1x1x256xf32>
    tpu.vector_store %arg3[%c0_5, %c0_6, %c0_7], %8 {strides = array<i32>} : memref<1x1x256xf32, #tpu.memory_space<vmem>>, vector<1x1x256xf32>,
    return
  }
  func.func @transform_0(%arg0: i32) -> (i32, i32) {
    %c0_i32 = arith.constant 0 : i32
    %c0_i32_0 = arith.constant 0 : i32
    return %arg0, %c0_i32 : i32, i32
  }
  func.func @transform_1(%arg0: i32) -> (i32, i32, i32) {
    %c0_i32 = arith.constant 0 : i32
    %c0_i32_0 = arith.constant 0 : i32
    %c0_i32_1 = arith.constant 0 : i32
    return %arg0, %c0_i32, %c0_i32_0 : i32, i32, i32
  }
  func.func @transform_2(%arg0: i32) -> (i32, i32, i32) {
    %c0_i32 = arith.constant 0 : i32
    %c0_i32_0 = arith.constant 0 : i32
    %c0_i32_1 = arith.constant 0 : i32
    return %arg0, %c0_i32, %c0_i32_0 : i32, i32, i32
  }
}

module attributes {stable_mosaic.version = 11 : i64} {
  func.func @_mm_bn_relu_kernel(%arg0: i32, %arg1: i32, %arg2: memref<1024x8xf32, #tpu.memory_space<vmem>>, %arg3: memref<1x8xf32, #tpu.memory_space<vmem>>, %arg4: memref<1x8xf32, #tpu.memory_space<vmem>>, %arg5: memref<8x128xbf16, #tpu.memory_space<vmem>>, %arg6: memref<1024x128xf32, #tpu.memory_space<vmem>>) attributes {dimension_semantics = [#tpu.dimension_semantics<parallel>, #tpu.dimension_semantics<parallel>], iteration_bounds = array<i64: 2, 1>, scalar_prefetch = 0 : i64, scratch_operands = 0 : i64, tpu.core_type = #tpu.core_type<tc>, window_params = [{transform_indices = @transform_0, window_bounds = array<i64: 1024, 8>}, {pipeline_mode = #tpu.pipeline_mode<synchronous>, transform_indices = @transform_1, window_bounds = array<i64: 1, 8>}, {pipeline_mode = #tpu.pipeline_mode<synchronous>, transform_indices = @transform_2, window_bounds = array<i64: 1, 8>}, {transform_indices = @transform_3, window_bounds = array<i64: 8, 128>}, {transform_indices = @transform_4, window_bounds = array<i64: 1024, 128>}]} {
    %c0 = arith.constant 0 : index
    %c0_0 = arith.constant 0 : index
    %0 = vector.load %arg2[%c0, %c0_0] : memref<1024x8xf32, #tpu.memory_space<vmem>>, vector<1024x8xf32>
    %c0_1 = arith.constant 0 : index
    %c0_2 = arith.constant 0 : index
    %1 = vector.load %arg3[%c0_1, %c0_2] : memref<1x8xf32, #tpu.memory_space<vmem>>, vector<1x8xf32>
    %2 = vector.broadcast %1 : vector<1x8xf32> to vector<1024x8xf32>
    %3 = arith.mulf %0, %2 : vector<1024x8xf32>
    %c0_3 = arith.constant 0 : index
    %c0_4 = arith.constant 0 : index
    %4 = vector.load %arg4[%c0_3, %c0_4] : memref<1x8xf32, #tpu.memory_space<vmem>>, vector<1x8xf32>
    %5 = vector.broadcast %4 : vector<1x8xf32> to vector<1024x8xf32>
    %6 = arith.addf %3, %5 : vector<1024x8xf32>
    %cst = arith.constant 0.000000e+00 : f32
    %7 = vector.broadcast %cst : f32 to vector<1024x8xf32>
    %8 = arith.maximumf %6, %7 : vector<1024x8xf32>
    %9 = arith.truncf %8 : vector<1024x8xf32> to vector<1024x8xbf16>
    %c0_5 = arith.constant 0 : index
    %c0_6 = arith.constant 0 : index
    %10 = vector.load %arg5[%c0_5, %c0_6] : memref<8x128xbf16, #tpu.memory_space<vmem>>, vector<8x128xbf16>
    %cst_7 = arith.constant dense<0.000000e+00> : vector<1024x128xf32>
    %11 = tpu.matmul %9, %10, %cst_7 {dimension_numbers = #tpu.dot_dimension_numbers<[1], [0], [0], [1], [0, 0, 1, 1], [], []>} : vector<1024x8xbf16>, vector<8x128xbf16>, vector<1024x128xf32> -> vector<1024x128xf32>
    %12 = math.tanh %11 : vector<1024x128xf32>
    %c0_8 = arith.constant 0 : index
    %c0_9 = arith.constant 0 : index
    %13 = vector.load %arg6[%c0_8, %c0_9] : memref<1024x128xf32, #tpu.memory_space<vmem>>, vector<1024x128xf32>
    tpu.vector_store %arg6[%c0_8, %c0_9], %12 {strides = array<i32>} : memref<1024x128xf32, #tpu.memory_space<vmem>>, vector<1024x128xf32>,
    return
  }
  func.func @transform_0(%arg0: i32, %arg1: i32) -> (i32, i32) {
    %c0_i32 = arith.constant 0 : i32
    %c0_i32_0 = arith.constant 0 : i32
    return %arg0, %c0_i32 : i32, i32
  }
  func.func @transform_1(%arg0: i32, %arg1: i32) -> (i32, i32) {
    %c0_i32 = arith.constant 0 : i32
    %c0_i32_0 = arith.constant 0 : i32
    %c0_i32_1 = arith.constant 0 : i32
    return %c0_i32, %c0_i32_0 : i32, i32
  }
  func.func @transform_2(%arg0: i32, %arg1: i32) -> (i32, i32) {
    %c0_i32 = arith.constant 0 : i32
    %c0_i32_0 = arith.constant 0 : i32
    %c0_i32_1 = arith.constant 0 : i32
    return %c0_i32, %c0_i32_0 : i32, i32
  }
  func.func @transform_3(%arg0: i32, %arg1: i32) -> (i32, i32) {
    %c0_i32 = arith.constant 0 : i32
    %c0_i32_0 = arith.constant 0 : i32
    return %c0_i32, %arg1 : i32, i32
  }
  func.func @transform_4(%arg0: i32, %arg1: i32) -> (i32, i32) {
    %c0_i32 = arith.constant 0 : i32
    return %arg0, %arg1 : i32, i32
  }
}

</mosaic_0001>

<bundles_post_ra>
// kernel: generator_forward.9
= control target key start
LH: loop header
LB: loop body
LE: loop exit
PB: predicated region body
PF: predicated region fallthrough
CT: control target
= control target key end

     0   :  { %7 = vsyncpa [#allocation3], 0  ;;  %s736_s0 = inlined_call_operand.vmem [shape: bf16[2,32], index: 0, kind: input, shape index: {}]   ;;  %s737_s1 = inlined_call_operand.hbm [shape: bf16[32,1024], index: 1, kind: input, shape index: {}]   ;;  %s738_s2 = inlined_call_operand.vmem [shape: f32[2,1024], index: 2, kind: output, shape index: {}]  }
   0x1   :  { %9 = vsyncpa [#allocation3 + $0x1], 0  ;;  %s646_s9 = smov 0   ;;  %s648_s10 = smov 0  }
   0x2   :  { %s650_s11 = smov 0   ;;  %s652_s12 = smov 0  }
   0x3   :  { %s654_s13 = smov 0   ;;  %s656_s14 = smov 0  }
   0x4 LB: > { %s429_s15 = sadd.s32 4294967295, %s626_s14   ;;  %s24_s16 = sadd.s32 1, %s622_s13  ;;  %s626_s14 = sphi %s656_s14, %s15_s14   ;;  %s622_s13 = sphi %s654_s13, %s745_s13   ;;  %s618_s12 = sphi %s652_s12, %s744_s12   ;;  %s614_s11 = sphi %s650_s11, %s743_s11   ;;  %s610_s10 = sphi %s648_s10, %s742_s10   ;;  %s606_s9 = sphi %s646_s9, %s741_s9  }
   0x5   : > { %p25_p0 = scmp.ge.s32.totalorder %s24_s16, 2  ;;  %s60_s17 = sadd.s32 1, %s614_s11 }
   0x6   : > { %p67_p1 = scmp.ne.s32.totalorder %s614_s11, %s610_s10  ;;  %p68_p2 = scmp.eq.s32.totalorder %s626_s14, 0 }
   0x7   : > { %s747_s16 = smov (%p25_p0, %s24_s16), 0  ;;  %p73_p4 = scmp.ne.s32.totalorder %s610_s10, %s606_s9 }
   0x8   : > { %p682_p3 = por %p68_p2, %p67_p1  ;;  %s57_s19 = ssub.s32 %s622_s13, %s747_s16 }
   0x9   : > { %p74_p5 = scmp.eq.s32.totalorder %s429_s15, 0  ;;  %p58_p6 = scmp.eq.s32.totalorder %s57_s19, 0 }
   0xa   : > { %p494_p8 = scmp.lt.s32.totalorder %s626_s14, 2  ;;  %s131_s22 = sand.u32 1, %s614_s11  }
   0xb   : > { %p689_p7 = por %p74_p5, %p73_p4  ;;  %s479_s23 = sshll.u32 %s622_s13, 4 }
   0xc   : > { %s695_s21 = scalar_select %p58_p6, %s614_s11, %s60_s17  }
   0xd   : > { %s434_s24 = sshll.u32 %s131_s22, 6  ;;  %s140_s27 = scalar_lea.hbm %s737_s1, %s479_s23 }
   0xe   : > { %s141_s28 = sshll.u32 %s140_s27, 4  ;;  %s135_s29 = scalar_lea.vmem [#allocation2], %s434_s24  ;;  %s142_s28 = int_to_ptr.hbm [resolvable:$true] %s141_s28 }
   0xf   : > { %s143_s30 = sshll.u32 %s135_s29, 4  ;;  %p491_p9 = pnand %p494_p8, %p682_p3  ;;  %s144_s30 = int_to_ptr.vmem [resolvable:$true] %s143_s30 }
  0x10   : > { %p437_p10 = scmp.ge.s32.totalorder %s626_s14, 1  ;;  %s132_s3 = scalar_lea.sflag [#allocation3], %s131_s22 }
  0x11   : > { %s628_s4 = smov 512   ;;  %s629_s5 = smov 256  }
  0x12   : > { %s630_s6 = smov 16   ;;  %p151_p11 = scmp.lt.s32.totalorder %s626_s14, 3 }
  0x13   : > { %493 = dma.hbm_to_vmem [thread:$0]  (!%p491_p9), %s142_s28, 1024, %s144_s30, %s132_s3, %s628_s4, %s629_s5, %s630_s6  }
  0x14   : > { %p152_p12 = pnand %p437_p10, %p151_p11 }
  0x15   : > { %s157_s7 = sand.u32 (!%p152_p12), 1, %s610_s10  }
  0x16   : > { %155 = sbr.rel (%p152_p12) target bundleno = 180 (0xb4), region = 28  ;;  %s438_s8 = sshll.u32 (!%p152_p12), %s157_s7, 6 }
  0x17   : > { %s158_s9 = scalar_lea.sflag (!%p152_p12), [#allocation3], %s157_s7  ;;  %s161_s15 = scalar_lea.vmem (!%p152_p12), [#allocation2], %s438_s8 }
  0x1b   : > { %601 = dma.done.wait (%p689_p7), %s158_s9, 1024  }
  0x1c   : > { %603 = vsyncadd (%p689_p7), %s158_s9, 4294966272  ;;  %v459_v0 = vld [vmem:[%s161_s15 + $0x20] sm:$0xf]  ;;  %v486_v1 = vld [vmem:[%s161_s15 + $0x2c] sm:$0xf0]  ;;  %vm254_vm0 = vcmask 261120  }
  0x1d   : > { %v484_v2 = vld [vmem:[%s161_s15 + $0x24] sm:$0xf]  ;;  %v460_v3 = vor.u32 %v486_v1, %v459_v0  ;;  %v461_v4 = vld [vmem:[%s161_s15 + $0x30] sm:$0xf0]  ;;  %v467_v5 = vld [vmem:[%s161_s15 + $0x28] sm:$0xf] }
  0x1e   : > { %v487_v6 = vld [vmem:[%s161_s15 + $0x34] sm:$0xf0]  ;;  %v464_v7 = vor.u32 %v484_v2, %v461_v4  ;;  %v485_v9 = vld [vmem:[%s161_s15 + $0x2c] sm:$0xf]  ;;  %v469_v10 = vld [vmem:[%s161_s15 + $0x38] sm:$0xf0] }
  0x1f   : > { %v468_v8 = vor.u32 %v487_v6, %v467_v5  ;;  %v443_v11 = vld [vmem:[%s161_s15] sm:$0xf]  ;;  %264 = vmatpush.bf16.msra.mxu0 %v460_v3  ;;  %v472_v12 = vor.u32 %v485_v9, %v469_v10  ;;  %v482_v13 = vld [vmem:[%s161_s15 + $0xc] sm:$0xf0]  ;;  %v480_v14 = vld [vmem:[%s161_s15 + $0x4] sm:$0xf] }
  0x20   : > { %v445_v15 = vld [vmem:[%s161_s15 + $0x10] sm:$0xf0]  ;;  %277 = vmatpush.bf16.msra.mxu1 %v464_v7  ;;  %v444_v16 = vor.u32 %v482_v13, %v443_v11  ;;  %v451_v18 = vld [vmem:[%s161_s15 + $0x8] sm:$0xf]  ;;  %v483_v19 = vld [vmem:[%s161_s15 + $0x14] sm:$0xf0] }
  0x21   : > { %290 = vmatpush.bf16.msra.mxu2 %v468_v8  ;;  %v448_v17 = vor.u32 %v480_v14, %v445_v15  ;;  %v481_v20 = vld [vmem:[%s161_s15 + $0xc] sm:$0xf]  ;;  %303 = vmatpush.bf16.msra.mxu3 %v472_v12  ;;  %v452_v21 = vor.u32 %v483_v19, %v451_v18  ;;  %v453_v22 = vld [vmem:[%s161_s15 + $0x18] sm:$0xf0]  ;;  %v205_v24 = vld [vmem:[%s736_s0] sm:$0x1] }
  0x22   : > { %v456_v23 = vor.u32 %v481_v20, %v453_v22  ;;  %s439_s19 = sshll.u32 %s618_s12, 2  ;;  %vm317_vm1 = vcmask 1041408   ;;  %vm319_vm2 = vcmask 1045508   ;;  %vm321_vm3 = vcmask 1043456  }
  0x23   : > { %265 = vmatpush.bf16.msra.mxu0 %v444_v16  ;;  %p197_p13 = scmp.lt.s32.totalorder %s439_s19, 7 }
  0x24   : > { %278 = vmatpush.bf16.msra.mxu1 %v448_v17 }
  0x25   : > { %291 = vmatpush.bf16.msra.mxu2 %v452_v21  ;;  %304 = vmatpush.bf16.msra.mxu3 %v456_v23  ;;  %s749_s19 = smov (!%p197_p13, %s439_s19), 7 }
  0x26   : > { %473 = vmatmul.msk.bf16.vlgmr.msra.gmra.mxu0 %vm254_vm0, %v205_v24  ;;  %s440_s20 = sshll.u32 %s749_s19, 1 }
  0x27   : > { %474 = vmatmul.msk.bf16.vlgmr.msra.gmra.mxu1 %vm254_vm0, %v205_v24  ;;  %s202_s24 = scalar_lea.vmem %s738_s2, %s440_s20 }
  0x28   : > { %475 = vmatmul.msk.bf16.vlgmr.msra.gmra.mxu2 %vm254_vm0, %v205_v24  ;;  %476 = vmatmul.msk.bf16.vlgmr.msra.gmra.mxu3 %vm254_vm0, %v205_v24 }
  0xa3   : > { %v267_v25 = vpop.f32.mrf.mxu0 }
  0xa4   : > { %v280_v26 = vpop.f32.mrf.mxu1 }
  0xa5   : > { %v314_v27 = vrot.slane %v280_v26, 6 }
  0xa7   : > { %v318_v34 = vsel %vm317_vm1, %v267_v25, %v314_v27 }
  0xab   : > { %v293_v28 = vpop.f32.mrf.mxu2  ;;  %v306_v30 = vpop.f32.mrf.mxu3 }
  0xac   : > { %v315_v29 = vrot.slane %v293_v28, 4  ;;  %v269_v31 = vpop.f32.mrf.mxu0  ;;  %v316_v32 = vrot.slane %v306_v30, 2  ;;  %v282_v33 = vpop.f32.mrf.mxu1 }
  0xae   : > { %v320_v35 = vsel %vm319_vm2, %v315_v29, %v316_v32 }
  0xaf   : > { %v322_v36 = vsel %vm321_vm3, %v318_v34, %v320_v35 }
  0xb0   : > { %324 = vst [vmem:[%s202_s24] sm:$0xff] %v322_v36 }
  0xb3   : > { %v295_v37 = vpop.f32.mrf.mxu2  ;;  %v308_v38 = vpop.f32.mrf.mxu3 }
  0xb4 PF: > { %s15_s14 = sadd.s32 1, %s626_s14   ;;  %s741_s9 = smov %s610_s10 }
  0xb5   : > { %p12_p0 = scmp.ge.s32.totalorder %s15_s14, 4   ;;  %s742_s10 = smov %s614_s11 }
  0xb6   : > { %s743_s11 = smov %s695_s21  ;;  %s744_s12 = smov %s622_s13 }
  0xb7   : > { %s745_s13 = smov %s747_s16  ;;  %14 = sbr.rel (!%p12_p0) target bundleno = 4 (0x4), region = 71 }
  0xbc   :  { %355 = vsyncpa [#allocation3], 1 }
  0xbd   :  { %357 = vsyncpa [#allocation3 + $0x1], 1 }

// kernel: generator_forward.10
= control target key start
LH: loop header
LB: loop body
LE: loop exit
PB: predicated region body
PF: predicated region fallthrough
CT: control target
= control target key end

     0   :  { %v30_v20 = vlaneseq  ;;  %vm27_vm0 = vcmask 1040384   ;;  %s90_s0 = inlined_call_operand.vmem [shape: f32[8,256], index: 0, kind: input, shape index: {}]   ;;  %s91_s1 = inlined_call_operand.vmem [shape: f32[1,1,256], index: 1, kind: output, shape index: {0}]   ;;  %s92_s2 = inlined_call_operand.vmem [shape: f32[1,1,256], index: 2, kind: output, shape index: {1}]  }
   0x1   :  { %v10_v0 = vld [vmem:[%s90_s0] sm:$0xff]  ;;  %v11_v1 = vld [vmem:[%s90_s0 + $0x8] sm:$0xff] }
   0x2   :  { %v12_v2 = vrot.slane %v10_v0, 4  ;;  %v18_v3 = vrot.slane %v11_v1, 4  ;;  %v35_v4 = vmul.f32 %v10_v0, %v10_v0  ;;  %v36_v5 = vmul.f32 %v11_v1, %v11_v1 }
   0x3   :  { %vm32_vm1 = vcmp.lt.s32.totalorder %v30_v20, 256 }
   0x4   :  { %v13_v6 = vadd.f32 %v12_v2, %v10_v0  ;;  %v19_v7 = vadd.f32 %v18_v3, %v11_v1  ;;  %v37_v8 = vrot.slane %v35_v4, 4  ;;  %v43_v9 = vrot.slane %v36_v5, 4 }
   0x6   :  { %v14_v10 = vrot.slane %v13_v6, 2  ;;  %v20_v11 = vrot.slane %v19_v7, 2  ;;  %v38_v12 = vadd.f32 %v37_v8, %v35_v4  ;;  %v44_v13 = vadd.f32 %v43_v9, %v36_v5 }
   0x8   :  { %v15_v14 = vadd.f32 %v14_v10, %v13_v6  ;;  %v21_v15 = vadd.f32 %v20_v11, %v19_v7  ;;  %v39_v16 = vrot.slane %v38_v12, 2  ;;  %v45_v17 = vrot.slane %v44_v13, 2 }
   0xa   :  { %v16_v18 = vrot.slane %v15_v14, 1  ;;  %v22_v19 = vrot.slane %v21_v15, 1  ;;  %v40_v21 = vadd.f32 %v39_v16, %v38_v12  ;;  %v46_v22 = vadd.f32 %v45_v17, %v44_v13 }
   0xc   :  { %v17_v23 = vadd.f32 %v16_v18, %v15_v14  ;;  %v23_v24 = vadd.f32 %v22_v19, %v21_v15  ;;  %v41_v25 = vrot.slane %v40_v21, 1  ;;  %v47_v26 = vrot.slane %v46_v22, 1 }
   0xe   :  { %v26_v27 = vrot.slane %v23_v24, 7  ;;  %v42_v28 = vadd.f32 %v41_v25, %v40_v21  ;;  %v48_v29 = vadd.f32 %v47_v26, %v46_v22 }
  0x10   :  { %v28_v30 = vsel %vm27_vm0, %v17_v23, %v26_v27  ;;  %v51_v31 = vrot.slane %v48_v29, 7 }
  0x11   :  { %34 = vst.msk [vmem:[%s91_s1] sm:$0x3] %vm32_vm1, %v28_v30 }
  0x12   :  { %v52_v32 = vsel %vm27_vm0, %v42_v28, %v51_v31 }
  0x13   :  { %54 = vst.msk [vmem:[%s92_s2] sm:$0x3] %vm32_vm1, %v52_v32 }

// kernel: generator_forward.11
= control target key start
LH: loop header
LB: loop body
LE: loop exit
PB: predicated region body
PF: predicated region fallthrough
CT: control target
= control target key end

     0   :  { %9 = vsyncpa [#allocation3], 0  ;;  %s901_s0 = inlined_call_operand.vmem [shape: f32[32,64], index: 0, kind: input, shape index: {}]   ;;  %s902_s1 = inlined_call_operand.vmem [shape: f32[1,64], index: 1, kind: input, shape index: {}]   ;;  %s903_s2 = inlined_call_operand.vmem [shape: f32[1,64], index: 2, kind: input, shape index: {}]   ;;  %s904_s3 = inlined_call_operand.hbm [shape: bf16[64,512], index: 3, kind: input, shape index: {}]   ;;  %s905_s4 = inlined_call_operand.vmem [shape: bf16[32,512], index: 4, kind: output, shape index: {}]  }
   0x1   :  { %11 = vsyncpa [#allocation3 + $0x1], 0  ;;  %s767_s15 = smov 0   ;;  %s769_s16 = smov 0  }
   0x2   :  { %s771_s17 = smov 0   ;;  %s773_s18 = smov 0  }
   0x3   :  { %s775_s19 = smov 0   ;;  %s777_s20 = smov 0  }
   0x4 LB: > { %s527_s21 = sadd.s32 4294967295, %s737_s20   ;;  %s26_s22 = sadd.s32 1, %s733_s19  ;;  %s737_s20 = sphi %s777_s20, %s17_s20   ;;  %s733_s19 = sphi %s775_s19, %s913_s19   ;;  %s729_s18 = sphi %s773_s18, %s912_s18   ;;  %s725_s17 = sphi %s771_s17, %s911_s17   ;;  %s721_s16 = sphi %s769_s16, %s910_s16   ;;  %s717_s15 = sphi %s767_s15, %s909_s15  }
   0x5   : > { %p27_p0 = scmp.ge.s32.totalorder %s26_s22, 2  ;;  %s104_s23 = sadd.s32 1, %s725_s17 }
   0x6   : > { %p111_p1 = scmp.ne.s32.totalorder %s725_s17, %s721_s16  ;;  %p112_p2 = scmp.eq.s32.totalorder %s737_s20, 0 }
   0x7   : > { %s915_s22 = smov (%p27_p0, %s26_s22), 0  ;;  %p117_p4 = scmp.ne.s32.totalorder %s721_s16, %s717_s15 }
   0x8   : > { %p803_p3 = por %p112_p2, %p111_p1  ;;  %s101_s25 = ssub.s32 %s733_s19, %s915_s22 }
   0x9   : > { %p118_p5 = scmp.eq.s32.totalorder %s527_s21, 0  ;;  %p102_p6 = scmp.eq.s32.totalorder %s101_s25, 0 }
   0xa   : > { %p143_p7 = scmp.eq.s32.totalorder %s527_s21, 1  ;;  %p603_p10 = scmp.lt.s32.totalorder %s737_s20, 2 }
   0xb   : > { %p810_p8 = por %p118_p5, %p117_p4  ;;  %s184_s29 = sand.u32 1, %s725_s17  }
   0xc   : > { %s815_s27 = scalar_select %p102_p6, %s725_s17, %s104_s23  }
   0xd   : > { %p817_p9 = por %p143_p7, %p111_p1  ;;  %s579_s30 = sshll.u32 %s733_s19, 3 }
   0xe   : > { %s532_s5 = sshll.u32 %s184_s29, 6  ;;  %s193_s8 = scalar_lea.hbm %s904_s3, %s579_s30 }
   0xf   : > { %s194_s9 = sshll.u32 %s193_s8, 4  ;;  %s188_s10 = scalar_lea.vmem [#allocation2], %s532_s5  ;;  %s195_s9 = int_to_ptr.hbm [resolvable:$true] %s194_s9 }
  0x10   : > { %s196_s11 = sshll.u32 %s188_s10, 4  ;;  %p600_p11 = pnand %p603_p10, %p803_p3  ;;  %s197_s11 = int_to_ptr.vmem [resolvable:$true] %s196_s11 }
  0x11   : > { %p535_p12 = scmp.ge.s32.totalorder %s737_s20, 1  ;;  %s185_s12 = scalar_lea.sflag [#allocation3], %s184_s29 }
  0x12   : > { %s739_s13 = smov 256   ;;  %s740_s14 = smov 128  }
  0x13   : > { %s741_s15 = smov 8   ;;  %p204_p13 = scmp.lt.s32.totalorder %s737_s20, 3 }
  0x14   : > { %602 = dma.hbm_to_vmem [thread:$0]  (!%p600_p11), %s195_s9, 1024, %s197_s11, %s185_s12, %s739_s13, %s740_s14, %s741_s15  }
  0x15   : > { %p205_p0 = pnand %p535_p12, %p204_p13 }
  0x16   : > { %s832_s21 = sand.u32 (!%p205_p0), 1, %s721_s16  }
  0x17   : > { %208 = sbr.rel (%p205_p0) target bundleno = 199 (0xc7), region = 36  ;;  %s536_s23 = sshll.u32 (!%p205_p0), %s832_s21, 6 }
  0x18   : > { %s211_s25 = scalar_lea.sflag (!%p205_p0), [#allocation3], %s832_s21  ;;  %s836_s30 = scalar_lea.vmem (!%p205_p0), [#allocation2], %s536_s23 }
  0x1c   : > { %712 = dma.done.wait (%p810_p8), %s211_s25, 1024  }
  0x1d   : > { %714 = vsyncadd (%p810_p8), %s211_s25, 4294966272  ;;  %v564_v0 = vld [vmem:[%s836_s30 + $0x30] sm:$0xf]  ;;  %v587_v1 = vld [vmem:[%s836_s30 + $0x34] sm:$0xf0]  ;;  %vm328_vm0 = vcmask 523264  }
  0x1e   : > { %v586_v2 = vld [vmem:[%s836_s30 + $0x34] sm:$0xf]  ;;  %v565_v3 = vor.u32 %v587_v1, %v564_v0  ;;  %v566_v4 = vld [vmem:[%s836_s30 + $0x38] sm:$0xf0]  ;;  %v556_v5 = vld [vmem:[%s836_s30 + $0x20] sm:$0xf] }
  0x1f   : > { %v585_v6 = vld [vmem:[%s836_s30 + $0x24] sm:$0xf0]  ;;  %v569_v7 = vor.u32 %v586_v2, %v566_v4  ;;  %v584_v8 = vld [vmem:[%s836_s30 + $0x24] sm:$0xf]  ;;  %v558_v9 = vld [vmem:[%s836_s30 + $0x28] sm:$0xf0] }
  0x20   : > { %339 = vmatpush.bf16.msra.mxu0 %v565_v3  ;;  %589 = vmatpush.bf16.msra.mxu2 %v565_v3  ;;  %v557_v10 = vor.u32 %v585_v6, %v556_v5  ;;  %v548_v11 = vld [vmem:[%s836_s30 + $0x10] sm:$0xf]  ;;  %v561_v12 = vor.u32 %v584_v8, %v558_v9  ;;  %v583_v13 = vld [vmem:[%s836_s30 + $0x14] sm:$0xf0]  ;;  %v582_v14 = vld [vmem:[%s836_s30 + $0x14] sm:$0xf] }
  0x21   : > { %358 = vmatpush.bf16.msra.mxu1 %v569_v7  ;;  %593 = vmatpush.bf16.msra.mxu3 %v569_v7  ;;  %v550_v15 = vld [vmem:[%s836_s30 + $0x18] sm:$0xf0]  ;;  %v254_v16 = vld [vmem:[%s901_s0] sm:$0xff]  ;;  %v255_v17 = vld [vmem:[%s901_s0 + $0x8] sm:$0xff]  ;;  %v549_v19 = vor.u32 %v583_v13, %v548_v11  ;;  %s537_s14 = sshll.u32 %s832_s21, 5  ;;  %s588_s21 = sshll.u32 (%p817_p9), %s729_s18, 3 }
  0x22   : > { %v655_v18 = vld [vmem:[%s902_s1] ss:$0 sm:$0xff]  ;;  %v553_v20 = vor.u32 %v582_v14, %v550_v15  ;;  %v256_v22 = vld [vmem:[%s901_s0 + $0x10] sm:$0xff]  ;;  %v257_v23 = vld [vmem:[%s901_s0 + $0x18] sm:$0xff]  ;;  %s243_s15 = scalar_lea.vmem [#allocation4], %s537_s14 }
  0x23   : > { %v656_v21 = vld [vmem:[%s903_s2] ss:$0 sm:$0xff]  ;;  %v581_v25 = vld [vmem:[%s836_s30 + $0x4] sm:$0xf0]  ;;  %v262_v26 = vmul.f32 %v655_v18, %v254_v16  ;;  %v263_v27 = vmul.f32 %v655_v18, %v255_v17  ;;  %v264_v28 = vmul.f32 %v655_v18, %v256_v22  ;;  %v580_v29 = vld [vmem:[%s836_s30 + $0x4] sm:$0xf]  ;;  %v265_v31 = vmul.f32 %v655_v18, %v257_v23 }
  0x24   : > { %340 = vmatpush.bf16.msra.mxu0 %v557_v10  ;;  %590 = vmatpush.bf16.msra.mxu2 %v557_v10  ;;  %v540_v24 = vld [vmem:[%s836_s30] sm:$0xf]  ;;  %v542_v30 = vld [vmem:[%s836_s30 + $0x8] sm:$0xf0]  ;;  %s393_s30 = scalar_lea.vmem (%p817_p9), %s905_s4, %s588_s21 }
  0x25   : > { %359 = vmatpush.bf16.msra.mxu1 %v561_v12  ;;  %594 = vmatpush.bf16.msra.mxu3 %v561_v12  ;;  %v270_v32 = vadd.f32 %v656_v21, %v262_v26  ;;  %v271_v33 = vadd.f32 %v656_v21, %v263_v27  ;;  %v272_v34 = vadd.f32 %v656_v21, %v264_v28 }
  0x26   : > { %v541_v35 = vor.u32 %v581_v25, %v540_v24  ;;  %v273_v36 = vadd.f32 %v656_v21, %v265_v31  ;;  %v545_v37 = vor.u32 %v580_v29, %v542_v30 }
  0x27   : > { %v274_v38 = vmax.f32 %v270_v32, 0.0  ;;  %v275_v39 = vmax.f32 %v271_v33, 0.0  ;;  %v276_v40 = vmax.f32 %v272_v34, 0.0 }
  0x28   : > { %341 = vmatpush.bf16.msra.mxu0 %v549_v19  ;;  %591 = vmatpush.bf16.msra.mxu2 %v549_v19  ;;  %v277_v41 = vmax.f32 %v273_v36, 0.0 }
  0x29   : > { %360 = vmatpush.bf16.msra.mxu1 %v553_v20  ;;  %595 = vmatpush.bf16.msra.mxu3 %v553_v20  ;;  %v278_v42 = vpack.c.bf16 %v275_v39, %v274_v38 }
  0x2a   : > { %v279_v43 = vpack.c.bf16 %v277_v41, %v276_v40 }
  0x2c   : > { %342 = vmatpush.bf16.msra.mxu0 %v541_v35  ;;  %592 = vmatpush.bf16.msra.mxu2 %v541_v35 }
  0x2d   : > { %361 = vmatpush.bf16.msra.mxu1 %v545_v37  ;;  %596 = vmatpush.bf16.msra.mxu3 %v545_v37 }
  0x2f   : > { %570 = vmatmul.msk.bf16.vlgmr.msra.gmra.mxu0 %vm328_vm0, %v278_v42  ;;  %571 = vmatmul.msk.bf16.vlgmr.msra.gmra.mxu2 %vm328_vm0, %v279_v43 }
  0x30   : > { %572 = vmatmul.msk.bf16.vlgmr.msra.gmra.mxu1 %vm328_vm0, %v278_v42  ;;  %573 = vmatmul.msk.bf16.vlgmr.msra.gmra.mxu3 %vm328_vm0, %v279_v43 }
  0xac   : > { %v344_v44 = vpop.f32.mrf.mxu0 }
  0xad   : > { %v363_v45 = vpop.f32.mrf.mxu1 }
  0xae   : > { %v373_v46 = vpack.c.bf16 %v363_v45, %v344_v44 }
  0xb0   : > { %377 = vst [vmem:[%s243_s15] sm:$0xff] %v373_v46 }
  0xb2   : > { %v349_v47 = vpop.f32.mrf.mxu2 }
  0xb3   : > { %v368_v48 = vpop.f32.mrf.mxu3 }
  0xb4   : > { %v375_v49 = vpack.c.bf16 %v368_v48, %v349_v47  ;;  %v346_v50 = vpop.f32.mrf.mxu0 }
  0xb5   : > { %v365_v51 = vpop.f32.mrf.mxu1 }
  0xb6   : > { %379 = vst [vmem:[%s243_s15 + $0x10] sm:$0xff] %v375_v49  ;;  %v374_v52 = vpack.c.bf16 %v365_v51, %v346_v50 }
  0xb7   : > { %v428_v56 = vld [vmem:[%s243_s15] sm:$0xff] (%p817_p9) }
  0xb8   : > { %378 = vst [vmem:[%s243_s15 + $0x8] sm:$0xff] %v374_v52 }
  0xb9   : > { %429 = vst [vmem:[%s393_s30] sm:$0xff] (%p817_p9), %v428_v56 }
  0xba   : > { %v351_v53 = vpop.f32.mrf.mxu2  ;;  %387 = sbr.rel (!%p817_p9) target bundleno = 199 (0xc7), region = 44 }
  0xbb   : > { %v370_v54 = vpop.f32.mrf.mxu3 }
  0xbc   : > { %v376_v55 = vpack.c.bf16 %v370_v54, %v351_v53 }
  0xbd   : > { %v432_v58 = vld [vmem:[%s243_s15 + $0x10] sm:$0xff] (%p817_p9) }
  0xbe   : > { %380 = vst [vmem:[%s243_s15 + $0x18] sm:$0xff] %v376_v55 }
  0xbf   : > { %v430_v57 = vld [vmem:[%s243_s15 + $0x8] sm:$0xff]  ;;  %433 = vst [vmem:[%s393_s30 + $0x20] sm:$0xff] %v432_v58 }
  0xc0   : > { %431 = vst [vmem:[%s393_s30 + $0x10] sm:$0xff] %v430_v57 }
  0xc5   : > { %v434_v59 = vld [vmem:[%s243_s15 + $0x18] sm:$0xff] }
  0xc6   : > { %435 = vst [vmem:[%s393_s30 + $0x30] sm:$0xff] %v434_v59 }
  0xc7 PF: > { %s17_s20 = sadd.s32 1, %s737_s20   ;;  %s909_s15 = smov %s721_s16 }
  0xc8   : > { %p14_p1 = scmp.ge.s32.totalorder %s17_s20, 4   ;;  %s910_s16 = smov %s725_s17 }
  0xc9   : > { %s911_s17 = smov %s815_s27  ;;  %s912_s18 = smov %s733_s19 }
  0xca   : > { %s913_s19 = smov %s915_s22  ;;  %16 = sbr.rel (!%p14_p1) target bundleno = 4 (0x4), region = 117 }
  0xcf   :  { %451 = vsyncpa [#allocation3], 1 }
  0xd0   :  { %453 = vsyncpa [#allocation3 + $0x1], 1 }

// kernel: generator_forward.12
= control target key start
LH: loop header
LB: loop body
LE: loop exit
PB: predicated region body
PF: predicated region fallthrough
CT: control target
= control target key end

     0   :  { %v34_v28 = vlaneseq  ;;  %vm31_vm0 = vcmask 1040384   ;;  %s104_s0 = inlined_call_operand.vmem [shape: f32[16,256], index: 0, kind: input, shape index: {}]   ;;  %s105_s1 = inlined_call_operand.vmem [shape: f32[1,1,256], index: 1, kind: output, shape index: {0}]   ;;  %s106_s2 = inlined_call_operand.vmem [shape: f32[1,1,256], index: 2, kind: output, shape index: {1}]  }
   0x1   :  { %v10_v0 = vld [vmem:[%s104_s0] sm:$0xff]  ;;  %v11_v1 = vld [vmem:[%s104_s0 + $0x8] sm:$0xff]  ;;  %v12_v2 = vld [vmem:[%s104_s0 + $0x10] sm:$0xff] }
   0x2   :  { %v13_v3 = vld [vmem:[%s104_s0 + $0x18] sm:$0xff]  ;;  %v14_v4 = vadd.f32 %v12_v2, %v10_v0  ;;  %v39_v5 = vmul.f32 %v10_v0, %v10_v0  ;;  %v40_v6 = vmul.f32 %v11_v1, %v11_v1  ;;  %v41_v8 = vmul.f32 %v12_v2, %v12_v2 }
   0x3   :  { %v21_v7 = vadd.f32 %v13_v3, %v11_v1  ;;  %v42_v9 = vmul.f32 %v13_v3, %v13_v3  ;;  %vm36_vm1 = vcmp.lt.s32.totalorder %v34_v28, 256 }
   0x4   :  { %v15_v10 = vrot.slane %v14_v4, 4  ;;  %v43_v12 = vadd.f32 %v41_v8, %v39_v5 }
   0x5   :  { %v22_v11 = vrot.slane %v21_v7, 4  ;;  %v50_v13 = vadd.f32 %v42_v9, %v40_v6 }
   0x6   :  { %v16_v14 = vadd.f32 %v15_v10, %v14_v4  ;;  %v44_v16 = vrot.slane %v43_v12, 4 }
   0x7   :  { %v23_v15 = vadd.f32 %v22_v11, %v21_v7  ;;  %v51_v17 = vrot.slane %v50_v13, 4 }
   0x8   :  { %v17_v18 = vrot.slane %v16_v14, 2  ;;  %v45_v20 = vadd.f32 %v44_v16, %v43_v12 }
   0x9   :  { %v24_v19 = vrot.slane %v23_v15, 2  ;;  %v52_v21 = vadd.f32 %v51_v17, %v50_v13 }
   0xa   :  { %v18_v22 = vadd.f32 %v17_v18, %v16_v14  ;;  %v46_v24 = vrot.slane %v45_v20, 2 }
   0xb   :  { %v25_v23 = vadd.f32 %v24_v19, %v23_v15  ;;  %v53_v25 = vrot.slane %v52_v21, 2 }
   0xc   :  { %v19_v26 = vrot.slane %v18_v22, 1  ;;  %v47_v29 = vadd.f32 %v46_v24, %v45_v20 }
   0xd   :  { %v26_v27 = vrot.slane %v25_v23, 1  ;;  %v54_v30 = vadd.f32 %v53_v25, %v52_v21 }
   0xe   :  { %v20_v31 = vadd.f32 %v19_v26, %v18_v22  ;;  %v48_v33 = vrot.slane %v47_v29, 1 }
   0xf   :  { %v27_v32 = vadd.f32 %v26_v27, %v25_v23  ;;  %v55_v34 = vrot.slane %v54_v30, 1 }
  0x10   :  { %v49_v36 = vadd.f32 %v48_v33, %v47_v29 }
  0x11   :  { %v30_v35 = vrot.slane %v27_v32, 7  ;;  %v56_v37 = vadd.f32 %v55_v34, %v54_v30 }
  0x13   :  { %v32_v38 = vsel %vm31_vm0, %v20_v31, %v30_v35  ;;  %v59_v39 = vrot.slane %v56_v37, 7 }
  0x14   :  { %38 = vst.msk [vmem:[%s105_s1] sm:$0x3] %vm36_vm1, %v32_v38 }
  0x15   :  { %v60_v40 = vsel %vm31_vm0, %v49_v36, %v59_v39 }
  0x16   :  { %62 = vst.msk [vmem:[%s106_s2] sm:$0x3] %vm36_vm1, %v60_v40 }

// kernel: generator_forward.13
= control target key start
LH: loop header
LB: loop body
LE: loop exit
PB: predicated region body
PF: predicated region fallthrough
CT: control target
= control target key end

     0   :  { %s874_s15 = smov 0   ;;  %s876_s16 = smov 0   ;;  %s1074_s0 = inlined_call_operand.vmem [shape: f32[128,32], index: 0, kind: input, shape index: {}]   ;;  %s1075_s1 = inlined_call_operand.vmem [shape: f32[1,32], index: 1, kind: input, shape index: {}]   ;;  %s1076_s2 = inlined_call_operand.vmem [shape: f32[1,32], index: 2, kind: input, shape index: {}]   ;;  %s1077_s3 = inlined_call_operand.vmem [shape: bf16[32,256], index: 3, kind: input, shape index: {}]   ;;  %s1078_s4 = inlined_call_operand.vmem [shape: bf16[128,256], index: 4, kind: output, shape index: {}]  }
   0x1   :  { %s878_s17 = smov 0   ;;  %s880_s18 = smov 0  }
   0x2   :  { %s882_s19 = smov 0  }
   0x3 LB: > { %s23_s20 = sadd.s32 1, %s843_s18  ;;  %s682_s21 = sadd.s32 4294967295, %s847_s19   ;;  %s847_s19 = sphi %s882_s19, %s14_s19   ;;  %s843_s18 = sphi %s880_s18, %s1083_s18   ;;  %s839_s17 = sphi %s878_s17, %s1082_s17   ;;  %s835_s16 = sphi %s876_s16, %s1081_s16   ;;  %s831_s15 = sphi %s874_s15, %s1080_s15  }
   0x4   : > { %p24_p0 = scmp.ge.s32.totalorder %s23_s20, 2  ;;  %p108_p1 = scmp.ne.s32.totalorder %s835_s16, %s831_s15 }
   0x5   : > { %p109_p2 = scmp.eq.s32.totalorder %s847_s19, 0  ;;  %p140_p4 = scmp.eq.s32.totalorder %s682_s21, 1 }
   0x6   : > { %s1085_s20 = smov (%p24_p0, %s23_s20), 0  ;;  %s101_s23 = sadd.s32 1, %s835_s16 }
   0x7   : > { %p110_p3 = por %p109_p2, %p108_p1  ;;  %s98_s22 = ssub.s32 %s843_s18, %s1085_s20 }
   0x8   : > { %p99_p5 = scmp.eq.s32.totalorder %s98_s22, 0  ;;  %p909_p6 = por %p140_p4, %p108_p1 }
   0x9   : > { %p686_p7 = scmp.ge.s32.totalorder %s847_s19, 2 }
   0xa   : > { %s914_s25 = scalar_select %p99_p5, %s835_s16, %s101_s23  }
   0xb   : > { %177 = sbr.rel (%p686_p7) target bundleno = 24 (0x18), region = 28 }
  0x10   : > { %180 = sbr.rel (!%p110_p3) target bundleno = 24 (0x18), region = 32  ;;  %s182_s26 = sand.u32 (%p110_p3), 1, %s835_s16  }
  0x11   : > { %s688_s27 = sshll.u32 (%p110_p3), %s843_s18, 2  ;;  %s687_s28 = sshll.u32 (%p110_p3), %s182_s26, 4 }
  0x12   : > { %s186_s5 = scalar_lea.vmem (%p110_p3), %s1077_s3, %s688_s27  ;;  %s184_s6 = scalar_lea.vmem (%p110_p3), [#allocation2], %s687_s28 }
  0x13   : > { %v203_v0 = vld [vmem:[%s186_s5] sm:$0xf] (%p110_p3)  ;;  %v205_v1 = vld [vmem:[%s186_s5 + $0x8] sm:$0xf] (%p110_p3)  ;;  %v207_v2 = vld [vmem:[%s186_s5 + $0x10] sm:$0xf] (%p110_p3) }
  0x14   : > { %204 = vst [vmem:[%s184_s6] sm:$0xf] (%p110_p3), %v203_v0  ;;  %v209_v3 = vld [vmem:[%s186_s5 + $0x18] sm:$0xf] (%p110_p3) }
  0x15   : > { %206 = vst [vmem:[%s184_s6 + $0x4] sm:$0xf] %v205_v1 }
  0x16   : > { %208 = vst [vmem:[%s184_s6 + $0x8] sm:$0xf] %v207_v2 }
  0x17   : > { %210 = vst [vmem:[%s184_s6 + $0xc] sm:$0xf] %v209_v3 }
  0x18 PF: > { %p689_p8 = scmp.ge.s32.totalorder %s847_s19, 1  ;;  %p241_p9 = scmp.lt.s32.totalorder %s847_s19, 3 }
  0x1a   : > { %p242_p10 = pnand %p689_p8, %p241_p9 }
  0x1b   : > { %s248_s7 = sand.u32 (!%p242_p10), 1, %s831_s15  }
  0x1c   : > { %245 = sbr.rel (%p242_p10) target bundleno = 216 (0xd8), region = 73  ;;  %s690_s12 = sshll.u32 (!%p242_p10), %s248_s7, 4 }
  0x1d   : > { %s250_s29 = scalar_lea.vmem (!%p242_p10), [#allocation2], %s690_s12  ;;  %s691_s12 = sshll.u32 (!%p242_p10), %s248_s7, 6 }
  0x1e   : > { %s1027_s13 = scalar_lea.vmem (!%p242_p10), [#allocation3], %s691_s12 }
  0x21   : > { %v285_v4 = vld [vmem:[%s1074_s0] sm:$0xff]  ;;  %v286_v5 = vld [vmem:[%s1074_s0 + $0x8] sm:$0xff]  ;;  %v287_v35 = vld [vmem:[%s1074_s0 + $0x10] sm:$0xff]  ;;  %vm381_vm0 = vcmask 261120   ;;  %s709_s15 = sshll.u32 (%p909_p6), %s839_s17, 2 }
  0x22   : > { %v936_v6 = vld [vmem:[%s1075_s1] ss:$0 sm:$0xff]  ;;  %v290_v9 = vld [vmem:[%s1074_s0 + $0x28] sm:$0xff]  ;;  %v288_v36 = vld [vmem:[%s1074_s0 + $0x18] sm:$0xff]  ;;  %s498_s21 = scalar_lea.vmem (%p909_p6), %s1078_s4, %s709_s15 }
  0x23   : > { %v941_v7 = vld [vmem:[%s1076_s2] ss:$0 sm:$0xff]  ;;  %v713_v10 = vld [vmem:[%s250_s29 + $0x8] sm:$0xff]  ;;  %v305_v11 = vmul.f32 %v936_v6, %v285_v4  ;;  %v306_v12 = vmul.f32 %v936_v6, %v286_v5  ;;  %v310_v14 = vmul.f32 %v936_v6, %v290_v9  ;;  %v291_v39 = vld [vmem:[%s1074_s0 + $0x30] sm:$0xff]  ;;  %v307_v45 = vmul.f32 %v936_v6, %v287_v35 }
  0x24   : > { %v289_v8 = vld [vmem:[%s1074_s0 + $0x20] sm:$0xff]  ;;  %v294_v16 = vld [vmem:[%s1074_s0 + $0x48] sm:$0xff]  ;;  %412 = vmatpush.bf16.msra.mxu0 %v713_v10  ;;  %761 = vmatpush.bf16.msra.mxu1 %v713_v10  ;;  %v292_v40 = vld [vmem:[%s1074_s0 + $0x38] sm:$0xff]  ;;  %v308_v46 = vmul.f32 %v936_v6, %v288_v36  ;;  %v311_v51 = vmul.f32 %v936_v6, %v291_v39 }
  0x25   : > { %v309_v13 = vmul.f32 %v936_v6, %v289_v8  ;;  %v293_v15 = vld [vmem:[%s1074_s0 + $0x40] sm:$0xff]  ;;  %v325_v20 = vadd.f32 %v941_v7, %v305_v11  ;;  %v326_v21 = vadd.f32 %v941_v7, %v306_v12  ;;  %v298_v23 = vld [vmem:[%s1074_s0 + $0x68] sm:$0xff]  ;;  %762 = vmatpush.bf16.msra.mxu2 %v713_v10  ;;  %763 = vmatpush.bf16.msra.mxu3 %v713_v10  ;;  %v295_v47 = vld [vmem:[%s1074_s0 + $0x50] sm:$0xff] }
  0x26   : > { %v313_v17 = vmul.f32 %v936_v6, %v293_v15  ;;  %v297_v18 = vld [vmem:[%s1074_s0 + $0x60] sm:$0xff]  ;;  %v330_v24 = vadd.f32 %v941_v7, %v310_v14  ;;  %v314_v25 = vmul.f32 %v936_v6, %v294_v16  ;;  %v318_v34 = vmul.f32 %v936_v6, %v298_v23  ;;  %v296_v48 = vld [vmem:[%s1074_s0 + $0x58] sm:$0xff]  ;;  %v299_v53 = vld [vmem:[%s1074_s0 + $0x70] sm:$0xff] }
  0x27   : > { %v712_v19 = vld [vmem:[%s250_s29] sm:$0xff]  ;;  %v329_v22 = vadd.f32 %v941_v7, %v309_v13  ;;  %v341_v27 = vmax.f32 %v325_v20, 0.0  ;;  %v342_v28 = vmax.f32 %v326_v21, 0.0  ;;  %v317_v30 = vmul.f32 %v936_v6, %v297_v18  ;;  %v300_v54 = vld [vmem:[%s1074_s0 + $0x78] sm:$0xff] }
  0x28   : > { %v333_v26 = vadd.f32 %v941_v7, %v313_v17  ;;  %v346_v31 = vmax.f32 %v330_v24, 0.0  ;;  %v334_v32 = vadd.f32 %v941_v7, %v314_v25  ;;  %413 = vmatpush.bf16.msra.mxu0 %v712_v19  ;;  %764 = vmatpush.bf16.msra.mxu1 %v712_v19  ;;  %v338_v43 = vadd.f32 %v941_v7, %v318_v34 }
  0x29   : > { %v345_v29 = vmax.f32 %v329_v22, 0.0  ;;  %v357_v37 = vpack.c.bf16 %v342_v28, %v341_v27  ;;  %v337_v38 = vadd.f32 %v941_v7, %v317_v30  ;;  %765 = vmatpush.bf16.msra.mxu2 %v712_v19  ;;  %766 = vmatpush.bf16.msra.mxu3 %v712_v19  ;;  %v312_v52 = vmul.f32 %v936_v6, %v292_v40 }
  0x2a   : > { %v349_v33 = vmax.f32 %v333_v26, 0.0  ;;  %v350_v42 = vmax.f32 %v334_v32, 0.0  ;;  %v354_v50 = vmax.f32 %v338_v43, 0.0  ;;  %v315_v56 = vmul.f32 %v936_v6, %v295_v47 }
  0x2b   : > { %v359_v41 = vpack.c.bf16 %v346_v31, %v345_v29  ;;  %v353_v44 = vmax.f32 %v337_v38, 0.0  ;;  %700 = vmatmul.msk.bf16.vlgmr.msra.gmra.mxu0 %vm381_vm0, %v357_v37  ;;  %v316_v57 = vmul.f32 %v936_v6, %v296_v48  ;;  %v327_v58 = vadd.f32 %v941_v7, %v307_v45 }
  0x2c   : > { %v361_v49 = vpack.c.bf16 %v350_v42, %v349_v33  ;;  %v328_v59 = vadd.f32 %v941_v7, %v308_v46  ;;  %v331_v60 = vadd.f32 %v941_v7, %v311_v51  ;;  %v332_v61 = vadd.f32 %v941_v7, %v312_v52 }
  0x2d   : > { %702 = vmatmul.msk.bf16.vlgmr.msra.gmra.mxu1 %vm381_vm0, %v359_v41  ;;  %v363_v55 = vpack.c.bf16 %v354_v50, %v353_v44  ;;  %v319_v62 = vmul.f32 %v936_v6, %v299_v53  ;;  %v320_v63 = vmul.f32 %v936_v6, %v300_v54  ;;  %v335_v0 = vadd.f32 %v941_v7, %v315_v56 }
  0x2e   : > { %704 = vmatmul.msk.bf16.vlgmr.msra.gmra.mxu2 %vm381_vm0, %v361_v49  ;;  %v336_v1 = vadd.f32 %v941_v7, %v316_v57  ;;  %v343_v2 = vmax.f32 %v327_v58, 0.0  ;;  %v344_v3 = vmax.f32 %v328_v59, 0.0  ;;  %v347_v4 = vmax.f32 %v331_v60, 0.0 }
  0x2f   : > { %706 = vmatmul.msk.bf16.vlgmr.msra.gmra.mxu3 %vm381_vm0, %v363_v55  ;;  %v348_v5 = vmax.f32 %v332_v61, 0.0  ;;  %v339_v8 = vadd.f32 %v941_v7, %v319_v62  ;;  %v340_v9 = vadd.f32 %v941_v7, %v320_v63  ;;  %v351_v10 = vmax.f32 %v335_v0, 0.0 }
  0x30   : > { %v352_v11 = vmax.f32 %v336_v1, 0.0  ;;  %v358_v12 = vpack.c.bf16 %v344_v3, %v343_v2 }
  0x31   : > { %v360_v13 = vpack.c.bf16 %v348_v5, %v347_v4  ;;  %v355_v14 = vmax.f32 %v339_v8, 0.0  ;;  %v356_v15 = vmax.f32 %v340_v9, 0.0 }
  0x32   : > { %v362_v6 = vpack.c.bf16 %v352_v11, %v351_v10 }
  0x33   : > { %v364_v16 = vpack.c.bf16 %v356_v15, %v355_v14 }
  0x3b   : > { %701 = vmatmul.msk.bf16.gmra.mxu0 %vm381_vm0, %v358_v12 }
  0x3d   : > { %703 = vmatmul.msk.bf16.gmra.mxu1 %vm381_vm0, %v360_v13 }
  0x3e   : > { %705 = vmatmul.msk.bf16.gmra.mxu2 %vm381_vm0, %v362_v6 }
  0x3f   : > { %707 = vmatmul.msk.bf16.gmra.mxu3 %vm381_vm0, %v364_v16 }
  0xa8   : > { %v415_v17 = vpop.f32.mrf.mxu0 }
  0xaa   : > { %v425_v18 = vpop.f32.mrf.mxu1 }
  0xb0   : > { %v417_v19 = vpop.f32.mrf.mxu0 }
  0xb1   : > { %v435_v7 = vpop.f32.mrf.mxu2  ;;  %v717_v20 = vpack.c.bf16 %v417_v19, %v415_v17 }
  0xb2   : > { %v427_v21 = vpop.f32.mrf.mxu1  ;;  %v445_v22 = vpop.f32.mrf.mxu3 }
  0xb3   : > { %v727_v23 = vpack.c.bf16 %v427_v21, %v425_v18  ;;  %718 = vst [vmem:[%s1027_s13] sm:$0xff] %v717_v20  }
  0xb5   : > { %755 = vst [vmem:[%s1027_s13 + $0x10] sm:$0xff] %v727_v23  }
  0xb8   : > { %v420_v25 = vpop.f32.mrf.mxu0 }
  0xb9   : > { %v437_v24 = vpop.f32.mrf.mxu2 }
  0xba   : > { %v737_v26 = vpack.c.bf16 %v437_v24, %v435_v7  ;;  %v430_v27 = vpop.f32.mrf.mxu1  ;;  %v447_v28 = vpop.f32.mrf.mxu3  ;;  %v515_v40 = vld [vmem:[%s1027_s13] sm:$0xf] (%p909_p6)  ;;  %v517_v41 = vld [vmem:[%s1027_s13 + $0x4] sm:$0xf] (%p909_p6) }
  0xbb   : > { %v747_v29 = vpack.c.bf16 %v447_v28, %v445_v22  ;;  %516 = vst [vmem:[%s498_s21] sm:$0xf] (%p909_p6), %v515_v40 }
  0xbc   : > { %757 = vst [vmem:[%s1027_s13 + $0x20] sm:$0xff] %v737_v26   ;;  %v523_v44 = vld [vmem:[%s1027_s13 + $0x10] sm:$0xf] (%p909_p6)  ;;  %v525_v45 = vld [vmem:[%s1027_s13 + $0x14] sm:$0xf] (%p909_p6) }
  0xbd   : > { %759 = vst [vmem:[%s1027_s13 + $0x30] sm:$0xff] %v747_v29  }
  0xbe   : > { %518 = vst [vmem:[%s498_s21 + $0x8] sm:$0xf] (%p909_p6), %v517_v41 }
  0xbf   : > { %524 = vst [vmem:[%s498_s21 + $0x20] sm:$0xf] (%p909_p6), %v523_v44 }
  0xc0   : > { %v422_v31 = vpop.f32.mrf.mxu0  ;;  %526 = vst [vmem:[%s498_s21 + $0x28] sm:$0xf] (%p909_p6), %v525_v45 }
  0xc1   : > { %v440_v30 = vpop.f32.mrf.mxu2  ;;  %v722_v32 = vpack.c.bf16 %v422_v31, %v420_v25 }
  0xc2   : > { %v432_v33 = vpop.f32.mrf.mxu1  ;;  %v450_v34 = vpop.f32.mrf.mxu3 }
  0xc3   : > { %v732_v35 = vpack.c.bf16 %v432_v33, %v430_v27  ;;  %754 = vst [vmem:[%s1027_s13 + $0x8] sm:$0xff] %v722_v32   ;;  %v531_v48 = vld [vmem:[%s1027_s13 + $0x20] sm:$0xf] (%p909_p6)  ;;  %v533_v49 = vld [vmem:[%s1027_s13 + $0x24] sm:$0xf] (%p909_p6) }
  0xc4   : > { %532 = vst [vmem:[%s498_s21 + $0x40] sm:$0xf] (%p909_p6), %v531_v48  ;;  %v539_v52 = vld [vmem:[%s1027_s13 + $0x30] sm:$0xf] (%p909_p6)  ;;  %v541_v53 = vld [vmem:[%s1027_s13 + $0x34] sm:$0xf] (%p909_p6) }
  0xc5   : > { %756 = vst [vmem:[%s1027_s13 + $0x18] sm:$0xff] %v732_v35  }
  0xc6   : > { %534 = vst [vmem:[%s498_s21 + $0x48] sm:$0xf] (%p909_p6), %v533_v49 }
  0xc7   : > { %540 = vst [vmem:[%s498_s21 + $0x60] sm:$0xf] (%p909_p6), %v539_v52 }
  0xc8   : > { %542 = vst [vmem:[%s498_s21 + $0x68] sm:$0xf] (%p909_p6), %v541_v53 }
  0xc9   : > { %v442_v36 = vpop.f32.mrf.mxu2  ;;  %493 = sbr.rel (!%p909_p6) target bundleno = 216 (0xd8), region = 81 }
  0xca   : > { %v742_v37 = vpack.c.bf16 %v442_v36, %v440_v30  ;;  %v452_v38 = vpop.f32.mrf.mxu3  ;;  %v519_v42 = vld [vmem:[%s1027_s13 + $0x8] sm:$0xf] (%p909_p6)  ;;  %v521_v43 = vld [vmem:[%s1027_s13 + $0xc] sm:$0xf] (%p909_p6) }
  0xcb   : > { %v752_v39 = vpack.c.bf16 %v452_v38, %v450_v34  ;;  %520 = vst [vmem:[%s498_s21 + $0x10] sm:$0xf] (%p909_p6), %v519_v42 }
  0xcc   : > { %758 = vst [vmem:[%s1027_s13 + $0x28] sm:$0xff] %v742_v37   ;;  %v527_v46 = vld [vmem:[%s1027_s13 + $0x18] sm:$0xf] (%p909_p6)  ;;  %v529_v47 = vld [vmem:[%s1027_s13 + $0x1c] sm:$0xf] (%p909_p6) }
  0xcd   : > { %760 = vst [vmem:[%s1027_s13 + $0x38] sm:$0xff] %v752_v39  }
  0xce   : > { %522 = vst [vmem:[%s498_s21 + $0x18] sm:$0xf] %v521_v43 }
  0xcf   : > { %528 = vst [vmem:[%s498_s21 + $0x30] sm:$0xf] %v527_v46 }
  0xd0   : > { %530 = vst [vmem:[%s498_s21 + $0x38] sm:$0xf] %v529_v47 }
  0xd3   : > { %v535_v50 = vld [vmem:[%s1027_s13 + $0x28] sm:$0xf]  ;;  %v537_v51 = vld [vmem:[%s1027_s13 + $0x2c] sm:$0xf] }
  0xd4   : > { %536 = vst [vmem:[%s498_s21 + $0x50] sm:$0xf] %v535_v50  ;;  %v543_v54 = vld [vmem:[%s1027_s13 + $0x38] sm:$0xf]  ;;  %v545_v55 = vld [vmem:[%s1027_s13 + $0x3c] sm:$0xf] }
  0xd5   : > { %538 = vst [vmem:[%s498_s21 + $0x58] sm:$0xf] %v537_v51 }
  0xd6   : > { %544 = vst [vmem:[%s498_s21 + $0x70] sm:$0xf] %v543_v54 }
  0xd7   : > { %546 = vst [vmem:[%s498_s21 + $0x78] sm:$0xf] %v545_v55 }
  0xd8 PF: > { %s14_s19 = sadd.s32 1, %s847_s19   ;;  %s1080_s15 = smov %s835_s16 }
  0xd9   : > { %p11_p11 = scmp.ge.s32.totalorder %s14_s19, 4   ;;  %s1081_s16 = smov %s914_s25 }
  0xda   : > { %s1082_s17 = smov %s843_s18  ;;  %s1083_s18 = smov %s1085_s20 }
  0xdb   :  { %13 = sbr.rel (!%p11_p11) target bundleno = 3 (0x3), region = 156 }

// kernel: generator_forward.14
= control target key start
LH: loop header
LB: loop body
LE: loop exit
PB: predicated region body
PF: predicated region fallthrough
CT: control target
= control target key end

     0   :  { %s339_s9 = smov 0   ;;  %s364_s0 = inlined_call_operand.vmem [shape: f32[32,256], index: 0, kind: input, shape index: {}]   ;;  %s365_s1 = inlined_call_operand.vmem [shape: f32[2,1,256], index: 1, kind: output, shape index: {0}]   ;;  %s366_s2 = inlined_call_operand.vmem [shape: f32[2,1,256], index: 2, kind: output, shape index: {1}]  }
   0x1 LB: > { %s345_s10 = sadd.s32 4294967295, %s322_s9   ;;  %p299_p0 = scmp.ge.s32.totalorder %s322_s9, 1  ;;  %s322_s9 = sphi %s339_s9, %s13_s9  }
   0x2   : > { %p117_p1 = scmp.lt.s32.totalorder %s322_s9, 3 }
   0x4   : > { %p118_p2 = pnand %p299_p0, %p117_p1 }
   0x5   : > { %s300_s11 = sshll.u32 (!%p118_p2), %s345_s10, 1  ;;  %p150_p4 = scmp.lt.s32.totalorder (!%p118_p2), %s345_s10, 1 }
   0x6   : > { %121 = sbr.rel (%p118_p2) target bundleno = 36 (0x24), region = 24  ;;  %p144_p3 = scmp.lt.s32.totalorder (!%p118_p2), %s300_s11, 3 }
   0xb   : > { %s368_s11 = smov (!%p144_p3, %s300_s11), 3  ;;  %s370_s10 = smov (!%p150_p4, %s345_s10), 1  ;;  %v182_v29 = vlaneseq  ;;  %vm179_vm0 = vcmask 1040384  }
   0xc   : > { %s307_s12 = sshll.u32 %s368_s11, 4  ;;  %s303_s16 = sshll.u32 %s370_s10, 1 }
   0xd   : > { %s148_s15 = scalar_lea.vmem %s364_s0, %s307_s12  ;;  %s153_s19 = scalar_lea.vmem %s365_s1, %s303_s16  ;;  %vm184_vm1 = vcmp.lt.s32.totalorder %v182_v29, 256 }
   0xe   : > { %v158_v0 = vld [vmem:[%s148_s15] sm:$0xff]  ;;  %v159_v1 = vld [vmem:[%s148_s15 + $0x8] sm:$0xff]  ;;  %v160_v2 = vld [vmem:[%s148_s15 + $0x10] sm:$0xff]  ;;  %s157_s22 = scalar_lea.vmem %s366_s2, %s303_s16 }
   0xf   : > { %v161_v3 = vld [vmem:[%s148_s15 + $0x18] sm:$0xff]  ;;  %v162_v4 = vadd.f32 %v160_v2, %v158_v0  ;;  %v187_v5 = vmul.f32 %v158_v0, %v158_v0  ;;  %v188_v6 = vmul.f32 %v159_v1, %v159_v1  ;;  %v189_v7 = vmul.f32 %v160_v2, %v160_v2 }
  0x10   : > { %v169_v8 = vadd.f32 %v161_v3, %v159_v1  ;;  %v190_v9 = vmul.f32 %v161_v3, %v161_v3 }
  0x11   : > { %v163_v10 = vrot.slane %v162_v4, 4  ;;  %v191_v11 = vadd.f32 %v189_v7, %v187_v5 }
  0x12   : > { %v170_v12 = vrot.slane %v169_v8, 4  ;;  %v198_v13 = vadd.f32 %v190_v9, %v188_v6 }
  0x13   : > { %v164_v14 = vadd.f32 %v163_v10, %v162_v4  ;;  %v192_v15 = vrot.slane %v191_v11, 4 }
  0x14   : > { %v171_v16 = vadd.f32 %v170_v12, %v169_v8  ;;  %v199_v17 = vrot.slane %v198_v13, 4 }
  0x15   : > { %v165_v18 = vrot.slane %v164_v14, 2  ;;  %v193_v19 = vadd.f32 %v192_v15, %v191_v11 }
  0x16   : > { %v172_v20 = vrot.slane %v171_v16, 2  ;;  %v200_v21 = vadd.f32 %v199_v17, %v198_v13 }
  0x17   : > { %v166_v22 = vadd.f32 %v165_v18, %v164_v14  ;;  %v194_v23 = vrot.slane %v193_v19, 2 }
  0x18   : > { %v173_v24 = vadd.f32 %v172_v20, %v171_v16  ;;  %v201_v25 = vrot.slane %v200_v21, 2 }
  0x19   : > { %v167_v26 = vrot.slane %v166_v22, 1  ;;  %v195_v27 = vadd.f32 %v194_v23, %v193_v19 }
  0x1a   : > { %v174_v28 = vrot.slane %v173_v24, 1  ;;  %v202_v30 = vadd.f32 %v201_v25, %v200_v21 }
  0x1b   : > { %v196_v31 = vrot.slane %v195_v27, 1  ;;  %v168_v32 = vadd.f32 %v167_v26, %v166_v22 }
  0x1c   : > { %v175_v33 = vadd.f32 %v174_v28, %v173_v24  ;;  %v203_v34 = vrot.slane %v202_v30, 1 }
  0x1d   : > { %v197_v36 = vadd.f32 %v196_v31, %v195_v27 }
  0x1e   : > { %v178_v35 = vrot.slane %v175_v33, 7  ;;  %v204_v37 = vadd.f32 %v203_v34, %v202_v30 }
  0x20   : > { %v180_v38 = vsel %vm179_vm0, %v168_v32, %v178_v35  ;;  %v207_v39 = vrot.slane %v204_v37, 7 }
  0x21   : > { %186 = vst.msk [vmem:[%s153_s19] sm:$0x3] %vm184_vm1, %v180_v38 }
  0x22   : > { %v208_v40 = vsel %vm179_vm0, %v197_v36, %v207_v39 }
  0x23   : > { %210 = vst.msk [vmem:[%s157_s22] sm:$0x3] %vm184_vm1, %v208_v40 }
  0x24 PF: > { %s13_s9 = sadd.s32 1, %s322_s9  }
  0x25   : > { %p10_p5 = scmp.ge.s32.totalorder %s13_s9, 4  }
  0x27   :  { %12 = sbr.rel (!%p10_p5) target bundleno = 1 (0x1), region = 66 }

// kernel: generator_forward.15
= control target key start
LH: loop header
LB: loop body
LE: loop exit
PB: predicated region body
PF: predicated region fallthrough
CT: control target
= control target key end

     0   :  { %s897_s15 = smov 0   ;;  %s899_s16 = smov 0   ;;  %s1079_s0 = inlined_call_operand.vmem [shape: f32[512,16], index: 0, kind: input, shape index: {}]   ;;  %s1080_s1 = inlined_call_operand.vmem [shape: f32[1,16], index: 1, kind: input, shape index: {}]   ;;  %s1081_s2 = inlined_call_operand.vmem [shape: f32[1,16], index: 2, kind: input, shape index: {}]   ;;  %s1082_s3 = inlined_call_operand.vmem [shape: bf16[16,128], index: 3, kind: input, shape index: {}]   ;;  %s1083_s4 = inlined_call_operand.vmem [shape: bf16[512,128], index: 4, kind: output, shape index: {}]  }
   0x1   :  { %s901_s17 = smov 0  }
   0x2 LB: > { %s26_s18 = sadd.s32 1, %s866_s16  ;;  %p696_p0 = scmp.ge.s32.totalorder %s870_s17, 1  ;;  %s870_s17 = sphi %s901_s17, %s14_s17   ;;  %s866_s16 = sphi %s899_s16, %s1085_s16   ;;  %s862_s15 = sphi %s897_s15, %s1084_s15  }
   0x3   : > { %p28_p1 = scmp.ge.s32.totalorder %s26_s18, 2  ;;  %p186_p2 = scmp.lt.s32.totalorder %s870_s17, 3 }
   0x5   : > { %s1087_s18 = smov (%p28_p1, %s26_s18), 0  ;;  %p187_p3 = pnand %p696_p0, %p186_p2 }
   0x6   : > { %s697_s21 = sshll.u32 (!%p187_p3), %s862_s15, 5 }
   0x7   : > { %190 = sbr.rel (%p187_p3) target bundleno = 218 (0xda), region = 36  ;;  %p220_p4 = scmp.lt.s32.totalorder (!%p187_p3), %s697_s21, 63 }
   0xc   : > { %v723_v0 = vld [vmem:[%s1082_s3] sm:$0xff]  ;;  %s1089_s21 = smov (!%p220_p4, %s697_s21), 63  ;;  %vm399_vm0 = vcmask 130048  }
   0xd   : > { %455 = vmatpush.bf16.msra.mxu0 %v723_v0  ;;  %819 = vmatpush.bf16.msra.mxu1 %v723_v0  ;;  %v923_v1 = vld [vmem:[%s1080_s1] ss:$0 sm:$0xff]  ;;  %s698_s24 = sshll.u32 %s1089_s21, 3  ;;  %s700_s30 = sshll.u32 %s1089_s21, 2 }
   0xe   : > { %820 = vmatpush.bf16.msra.mxu2 %v723_v0  ;;  %821 = vmatpush.bf16.msra.mxu3 %v723_v0  ;;  %s929_s27 = scalar_lea.vmem %s1079_s0, %s698_s24  ;;  %v934_v2 = vld [vmem:[%s1081_s2] ss:$0 sm:$0xff]  ;;  %s1052_s7 = scalar_lea.vmem %s1083_s4, %s700_s30 }
   0xf   : > { %v239_v3 = vld [vmem:[%s929_s27] sm:$0xff]  ;;  %v240_v4 = vld [vmem:[%s929_s27 + $0x8] sm:$0xff]  ;;  %v241_v29 = vld [vmem:[%s929_s27 + $0x10] sm:$0xff] }
  0x10   : > { %v247_v5 = vld [vmem:[%s929_s27 + $0x40] sm:$0xff]  ;;  %v275_v6 = vmul.f32 %v923_v1, %v239_v3  ;;  %v276_v7 = vmul.f32 %v923_v1, %v240_v4  ;;  %v248_v8 = vld [vmem:[%s929_s27 + $0x48] sm:$0xff]  ;;  %v242_v34 = vld [vmem:[%s929_s27 + $0x18] sm:$0xff]  ;;  %v277_v44 = vmul.f32 %v923_v1, %v241_v29 }
  0x11   : > { %v283_v9 = vmul.f32 %v923_v1, %v247_v5  ;;  %v255_v10 = vld [vmem:[%s929_s27 + $0x80] sm:$0xff]  ;;  %v256_v11 = vld [vmem:[%s929_s27 + $0x88] sm:$0xff]  ;;  %v284_v12 = vmul.f32 %v923_v1, %v248_v8  ;;  %v249_v35 = vld [vmem:[%s929_s27 + $0x50] sm:$0xff]  ;;  %v278_v45 = vmul.f32 %v923_v1, %v242_v34 }
  0x12   : > { %v291_v13 = vmul.f32 %v923_v1, %v255_v10  ;;  %v292_v14 = vmul.f32 %v923_v1, %v256_v11  ;;  %v263_v15 = vld [vmem:[%s929_s27 + $0xc0] sm:$0xff]  ;;  %v264_v16 = vld [vmem:[%s929_s27 + $0xc8] sm:$0xff]  ;;  %v311_v17 = vadd.f32 %v934_v2, %v275_v6  ;;  %v312_v18 = vadd.f32 %v934_v2, %v276_v7  ;;  %v250_v36 = vld [vmem:[%s929_s27 + $0x58] sm:$0xff] }
  0x13   : > { %v319_v19 = vadd.f32 %v934_v2, %v283_v9  ;;  %v299_v20 = vmul.f32 %v923_v1, %v263_v15  ;;  %v320_v21 = vadd.f32 %v934_v2, %v284_v12  ;;  %v300_v24 = vmul.f32 %v923_v1, %v264_v16  ;;  %v257_v39 = vld [vmem:[%s929_s27 + $0x90] sm:$0xff]  ;;  %v258_v40 = vld [vmem:[%s929_s27 + $0x98] sm:$0xff]  ;;  %v243_v12 = vld [vmem:[%s929_s27 + $0x20] sm:$0xff] }
  0x14   : > { %v327_v22 = vadd.f32 %v934_v2, %v291_v13  ;;  %v328_v23 = vadd.f32 %v934_v2, %v292_v14  ;;  %v343_v25 = vmax.f32 %v311_v17, 0.0  ;;  %v344_v26 = vmax.f32 %v312_v18, 0.0  ;;  %v265_v48 = vld [vmem:[%s929_s27 + $0xd0] sm:$0xff]  ;;  %v266_v49 = vld [vmem:[%s929_s27 + $0xd8] sm:$0xff]  ;;  %v244_v13 = vld [vmem:[%s929_s27 + $0x28] sm:$0xff] }
  0x15   : > { %v351_v27 = vmax.f32 %v319_v19, 0.0  ;;  %v335_v28 = vadd.f32 %v934_v2, %v299_v20  ;;  %v352_v30 = vmax.f32 %v320_v21, 0.0  ;;  %v336_v33 = vadd.f32 %v934_v2, %v300_v24  ;;  %v251_v14 = vld [vmem:[%s929_s27 + $0x60] sm:$0xff]  ;;  %v252_v15 = vld [vmem:[%s929_s27 + $0x68] sm:$0xff] }
  0x16   : > { %v359_v31 = vmax.f32 %v327_v22, 0.0  ;;  %v360_v32 = vmax.f32 %v328_v23, 0.0  ;;  %v375_v37 = vpack.c.bf16 %v344_v26, %v343_v25  ;;  %v285_v46 = vmul.f32 %v923_v1, %v249_v35  ;;  %v259_v16 = vld [vmem:[%s929_s27 + $0xa0] sm:$0xff]  ;;  %v260_v17 = vld [vmem:[%s929_s27 + $0xa8] sm:$0xff] }
  0x17   : > { %v367_v38 = vmax.f32 %v335_v28, 0.0  ;;  %v379_v41 = vpack.c.bf16 %v352_v30, %v351_v27  ;;  %v368_v43 = vmax.f32 %v336_v33, 0.0  ;;  %v286_v47 = vmul.f32 %v923_v1, %v250_v36  ;;  %v267_v22 = vld [vmem:[%s929_s27 + $0xe0] sm:$0xff]  ;;  %v268_v23 = vld [vmem:[%s929_s27 + $0xe8] sm:$0xff] }
  0x18   : > { %v383_v42 = vpack.c.bf16 %v360_v32, %v359_v31  ;;  %705 = vmatmul.msk.bf16.vlgmr.msra.gmra.mxu0 %vm399_vm0, %v375_v37  ;;  %v293_v51 = vmul.f32 %v923_v1, %v257_v39  ;;  %v294_v52 = vmul.f32 %v923_v1, %v258_v40  ;;  %v301_v53 = vmul.f32 %v923_v1, %v265_v48  ;;  %v245_v48 = vld [vmem:[%s929_s27 + $0x30] sm:$0xff] }
  0x19   : > { %709 = vmatmul.msk.bf16.vlgmr.msra.gmra.mxu1 %vm399_vm0, %v379_v41  ;;  %v387_v50 = vpack.c.bf16 %v368_v43, %v367_v38  ;;  %v302_v54 = vmul.f32 %v923_v1, %v266_v49  ;;  %v313_v55 = vadd.f32 %v934_v2, %v277_v44  ;;  %v314_v56 = vadd.f32 %v934_v2, %v278_v45  ;;  %v246_v49 = vld [vmem:[%s929_s27 + $0x38] sm:$0xff] }
  0x1a   : > { %713 = vmatmul.msk.bf16.vlgmr.msra.gmra.mxu2 %vm399_vm0, %v383_v42  ;;  %v321_v57 = vadd.f32 %v934_v2, %v285_v46  ;;  %v322_v58 = vadd.f32 %v934_v2, %v286_v47  ;;  %v329_v59 = vadd.f32 %v934_v2, %v293_v51  ;;  %v330_v60 = vadd.f32 %v934_v2, %v294_v52  ;;  %v254_v51 = vld [vmem:[%s929_s27 + $0x78] sm:$0xff]  ;;  %v261_v52 = vld [vmem:[%s929_s27 + $0xb0] sm:$0xff] }
  0x1b   : > { %717 = vmatmul.msk.bf16.vlgmr.msra.gmra.mxu3 %vm399_vm0, %v387_v50  ;;  %v337_v61 = vadd.f32 %v934_v2, %v301_v53  ;;  %v338_v62 = vadd.f32 %v934_v2, %v302_v54  ;;  %v345_v63 = vmax.f32 %v313_v55, 0.0  ;;  %v346_v0 = vmax.f32 %v314_v56, 0.0  ;;  %v253_v50 = vld [vmem:[%s929_s27 + $0x70] sm:$0xff]  ;;  %v262_v53 = vld [vmem:[%s929_s27 + $0xb8] sm:$0xff] }
  0x1c   : > { %v353_v3 = vmax.f32 %v321_v57, 0.0  ;;  %v354_v4 = vmax.f32 %v322_v58, 0.0  ;;  %v361_v5 = vmax.f32 %v329_v59, 0.0  ;;  %v362_v6 = vmax.f32 %v330_v60, 0.0  ;;  %v269_v58 = vld [vmem:[%s929_s27 + $0xf0] sm:$0xff]  ;;  %v270_v59 = vld [vmem:[%s929_s27 + $0xf8] sm:$0xff] }
  0x1d   : > { %v369_v7 = vmax.f32 %v337_v61, 0.0  ;;  %v370_v8 = vmax.f32 %v338_v62, 0.0  ;;  %v376_v9 = vpack.c.bf16 %v346_v0, %v345_v63  ;;  %v279_v19 = vmul.f32 %v923_v1, %v243_v12 }
  0x1e   : > { %v380_v10 = vpack.c.bf16 %v354_v4, %v353_v3  ;;  %v384_v11 = vpack.c.bf16 %v362_v6, %v361_v5  ;;  %v280_v20 = vmul.f32 %v923_v1, %v244_v13  ;;  %v287_v21 = vmul.f32 %v923_v1, %v251_v14 }
  0x1f   : > { %v388_v18 = vpack.c.bf16 %v370_v8, %v369_v7  ;;  %v288_v24 = vmul.f32 %v923_v1, %v252_v15  ;;  %v295_v25 = vmul.f32 %v923_v1, %v259_v16  ;;  %v296_v26 = vmul.f32 %v923_v1, %v260_v17 }
  0x20   : > { %v303_v27 = vmul.f32 %v923_v1, %v267_v22  ;;  %v304_v28 = vmul.f32 %v923_v1, %v268_v23  ;;  %v315_v29 = vadd.f32 %v934_v2, %v279_v19  ;;  %v316_v30 = vadd.f32 %v934_v2, %v280_v20 }
  0x21   : > { %v323_v31 = vadd.f32 %v934_v2, %v287_v21  ;;  %v324_v32 = vadd.f32 %v934_v2, %v288_v24  ;;  %v331_v33 = vadd.f32 %v934_v2, %v295_v25  ;;  %v332_v34 = vadd.f32 %v934_v2, %v296_v26 }
  0x22   : > { %v339_v35 = vadd.f32 %v934_v2, %v303_v27  ;;  %v340_v36 = vadd.f32 %v934_v2, %v304_v28  ;;  %v347_v37 = vmax.f32 %v315_v29, 0.0  ;;  %v348_v38 = vmax.f32 %v316_v30, 0.0 }
  0x23   : > { %v355_v39 = vmax.f32 %v323_v31, 0.0  ;;  %v356_v40 = vmax.f32 %v324_v32, 0.0  ;;  %v363_v41 = vmax.f32 %v331_v33, 0.0  ;;  %v364_v42 = vmax.f32 %v332_v34, 0.0 }
  0x24   : > { %v371_v43 = vmax.f32 %v339_v35, 0.0  ;;  %v372_v44 = vmax.f32 %v340_v36, 0.0  ;;  %v377_v45 = vpack.c.bf16 %v348_v38, %v347_v37  ;;  %v281_v55 = vmul.f32 %v923_v1, %v245_v48 }
  0x25   : > { %v381_v46 = vpack.c.bf16 %v356_v40, %v355_v39  ;;  %v385_v47 = vpack.c.bf16 %v364_v42, %v363_v41  ;;  %v282_v56 = vmul.f32 %v923_v1, %v246_v49  ;;  %v289_v57 = vmul.f32 %v923_v1, %v253_v50 }
  0x26   : > { %v389_v54 = vpack.c.bf16 %v372_v44, %v371_v43  ;;  %v290_v60 = vmul.f32 %v923_v1, %v254_v51  ;;  %v297_v61 = vmul.f32 %v923_v1, %v261_v52  ;;  %v298_v62 = vmul.f32 %v923_v1, %v262_v53 }
  0x27   : > { %v305_v63 = vmul.f32 %v923_v1, %v269_v58  ;;  %v306_v0 = vmul.f32 %v923_v1, %v270_v59  ;;  %v317_v3 = vadd.f32 %v934_v2, %v281_v55  ;;  %v318_v4 = vadd.f32 %v934_v2, %v282_v56 }
  0x28   : > { %706 = vmatmul.msk.bf16.gmra.mxu0 %vm399_vm0, %v376_v9  ;;  %v325_v5 = vadd.f32 %v934_v2, %v289_v57  ;;  %v326_v6 = vadd.f32 %v934_v2, %v290_v60  ;;  %v333_v7 = vadd.f32 %v934_v2, %v297_v61  ;;  %v334_v8 = vadd.f32 %v934_v2, %v298_v62 }
  0x29   : > { %710 = vmatmul.msk.bf16.gmra.mxu1 %vm399_vm0, %v380_v10  ;;  %v341_v9 = vadd.f32 %v934_v2, %v305_v63  ;;  %v342_v10 = vadd.f32 %v934_v2, %v306_v0  ;;  %v350_v12 = vmax.f32 %v318_v4, 0.0 }
  0x2a   : > { %714 = vmatmul.msk.bf16.gmra.mxu2 %vm399_vm0, %v384_v11  ;;  %v349_v11 = vmax.f32 %v317_v3, 0.0  ;;  %v357_v13 = vmax.f32 %v325_v5, 0.0  ;;  %v358_v1 = vmax.f32 %v326_v6, 0.0  ;;  %v365_v14 = vmax.f32 %v333_v7, 0.0 }
  0x2b   : > { %718 = vmatmul.msk.bf16.gmra.mxu3 %vm399_vm0, %v388_v18  ;;  %v366_v15 = vmax.f32 %v334_v8, 0.0  ;;  %v373_v16 = vmax.f32 %v341_v9, 0.0  ;;  %v374_v17 = vmax.f32 %v342_v10, 0.0 }
  0x2c   : > { %v378_v18 = vpack.c.bf16 %v350_v12, %v349_v11  ;;  %v382_v19 = vpack.c.bf16 %v358_v1, %v357_v13 }
  0x2d   : > { %v386_v20 = vpack.c.bf16 %v366_v15, %v365_v14  ;;  %v390_v21 = vpack.c.bf16 %v374_v17, %v373_v16 }
  0x38   : > { %707 = vmatmul.msk.bf16.gmra.mxu0 %vm399_vm0, %v377_v45 }
  0x39   : > { %711 = vmatmul.msk.bf16.gmra.mxu1 %vm399_vm0, %v381_v46 }
  0x3a   : > { %715 = vmatmul.msk.bf16.gmra.mxu2 %vm399_vm0, %v385_v47 }
  0x3b   : > { %719 = vmatmul.msk.bf16.gmra.mxu3 %vm399_vm0, %v389_v54 }
  0x48   : > { %708 = vmatmul.msk.bf16.gmra.mxu0 %vm399_vm0, %v378_v18 }
  0x49   : > { %712 = vmatmul.msk.bf16.gmra.mxu1 %vm399_vm0, %v382_v19 }
  0x4a   : > { %716 = vmatmul.msk.bf16.gmra.mxu2 %vm399_vm0, %v386_v20 }
  0x4b   : > { %720 = vmatmul.msk.bf16.gmra.mxu3 %vm399_vm0, %v390_v21 }
  0x95   : > { %v457_v2 = vpop.f32.mrf.mxu0 }
  0x96   : > { %v477_v22 = vpop.f32.mrf.mxu1 }
  0x9d   : > { %v497_v23 = vpop.f32.mrf.mxu2  ;;  %v459_v24 = vpop.f32.mrf.mxu0 }
  0x9e   : > { %v517_v25 = vpop.f32.mrf.mxu3  ;;  %v727_v26 = vpack.c.bf16 %v459_v24, %v457_v2  ;;  %v479_v27 = vpop.f32.mrf.mxu1 }
  0x9f   : > { %v747_v28 = vpack.c.bf16 %v479_v27, %v477_v22 }
  0xa0   : > { %728 = vst [vmem:[%s1052_s7] sm:$0xff] %v727_v26  }
  0xa1   : > { %807 = vst [vmem:[%s1052_s7 + $0x20] sm:$0xff] %v747_v28  }
  0xa5   : > { %v499_v29 = vpop.f32.mrf.mxu2  ;;  %v462_v31 = vpop.f32.mrf.mxu0 }
  0xa6   : > { %v767_v30 = vpack.c.bf16 %v499_v29, %v497_v23  ;;  %v519_v32 = vpop.f32.mrf.mxu3  ;;  %v482_v33 = vpop.f32.mrf.mxu1 }
  0xa7   : > { %v787_v34 = vpack.c.bf16 %v519_v32, %v517_v25 }
  0xa8   : > { %811 = vst [vmem:[%s1052_s7 + $0x40] sm:$0xff] %v767_v30  }
  0xa9   : > { %815 = vst [vmem:[%s1052_s7 + $0x60] sm:$0xff] %v787_v34  }
  0xad   : > { %v502_v35 = vpop.f32.mrf.mxu2  ;;  %v464_v36 = vpop.f32.mrf.mxu0 }
  0xae   : > { %v522_v37 = vpop.f32.mrf.mxu3  ;;  %v732_v38 = vpack.c.bf16 %v464_v36, %v462_v31  ;;  %v484_v39 = vpop.f32.mrf.mxu1 }
  0xaf   : > { %v752_v40 = vpack.c.bf16 %v484_v39, %v482_v33 }
  0xb0   : > { %804 = vst [vmem:[%s1052_s7 + $0x8] sm:$0xff] %v732_v38  }
  0xb1   : > { %808 = vst [vmem:[%s1052_s7 + $0x28] sm:$0xff] %v752_v40  }
  0xb5   : > { %v504_v41 = vpop.f32.mrf.mxu2  ;;  %v467_v43 = vpop.f32.mrf.mxu0 }
  0xb6   : > { %v772_v42 = vpack.c.bf16 %v504_v41, %v502_v35  ;;  %v524_v44 = vpop.f32.mrf.mxu3  ;;  %v487_v45 = vpop.f32.mrf.mxu1 }
  0xb7   : > { %v792_v46 = vpack.c.bf16 %v524_v44, %v522_v37 }
  0xb8   : > { %812 = vst [vmem:[%s1052_s7 + $0x48] sm:$0xff] %v772_v42  }
  0xb9   : > { %816 = vst [vmem:[%s1052_s7 + $0x68] sm:$0xff] %v792_v46  }
  0xbd   : > { %v507_v47 = vpop.f32.mrf.mxu2  ;;  %v469_v48 = vpop.f32.mrf.mxu0 }
  0xbe   : > { %v527_v49 = vpop.f32.mrf.mxu3  ;;  %v737_v50 = vpack.c.bf16 %v469_v48, %v467_v43  ;;  %v489_v51 = vpop.f32.mrf.mxu1 }
  0xbf   : > { %v757_v52 = vpack.c.bf16 %v489_v51, %v487_v45 }
  0xc0   : > { %805 = vst [vmem:[%s1052_s7 + $0x10] sm:$0xff] %v737_v50  }
  0xc1   : > { %809 = vst [vmem:[%s1052_s7 + $0x30] sm:$0xff] %v757_v52  }
  0xc5   : > { %v509_v53 = vpop.f32.mrf.mxu2  ;;  %v472_v55 = vpop.f32.mrf.mxu0 }
  0xc6   : > { %v777_v54 = vpack.c.bf16 %v509_v53, %v507_v47  ;;  %v529_v56 = vpop.f32.mrf.mxu3  ;;  %v492_v57 = vpop.f32.mrf.mxu1 }
  0xc7   : > { %v797_v58 = vpack.c.bf16 %v529_v56, %v527_v49 }
  0xc8   : > { %813 = vst [vmem:[%s1052_s7 + $0x50] sm:$0xff] %v777_v54  }
  0xc9   : > { %817 = vst [vmem:[%s1052_s7 + $0x70] sm:$0xff] %v797_v58  }
  0xcd   : > { %v512_v59 = vpop.f32.mrf.mxu2  ;;  %v474_v60 = vpop.f32.mrf.mxu0 }
  0xce   : > { %v532_v61 = vpop.f32.mrf.mxu3  ;;  %v742_v62 = vpack.c.bf16 %v474_v60, %v472_v55  ;;  %v494_v63 = vpop.f32.mrf.mxu1 }
  0xcf   : > { %v762_v0 = vpack.c.bf16 %v494_v63, %v492_v57 }
  0xd0   : > { %806 = vst [vmem:[%s1052_s7 + $0x18] sm:$0xff] %v742_v62  }
  0xd1   : > { %810 = vst [vmem:[%s1052_s7 + $0x38] sm:$0xff] %v762_v0  }
  0xd5   : > { %v514_v3 = vpop.f32.mrf.mxu2 }
  0xd6   : > { %v782_v4 = vpack.c.bf16 %v514_v3, %v512_v59  ;;  %v534_v5 = vpop.f32.mrf.mxu3 }
  0xd7   : > { %v802_v6 = vpack.c.bf16 %v534_v5, %v532_v61 }
  0xd8   : > { %814 = vst [vmem:[%s1052_s7 + $0x58] sm:$0xff] %v782_v4  }
  0xd9   : > { %818 = vst [vmem:[%s1052_s7 + $0x78] sm:$0xff] %v802_v6  }
  0xda PF: > { %s14_s17 = sadd.s32 1, %s870_s17   ;;  %s1084_s15 = smov %s866_s16 }
  0xdb   : > { %p11_p5 = scmp.ge.s32.totalorder %s14_s17, 4   ;;  %s1085_s16 = smov %s1087_s18 }
  0xdd   :  { %13 = sbr.rel (!%p11_p5) target bundleno = 2 (0x2), region = 69 }

// kernel: generator_forward.16
= control target key start
LH: loop header
LB: loop body
LE: loop exit
PB: predicated region body
PF: predicated region fallthrough
CT: control target
= control target key end

     0   :  { %s355_s9 = smov 0   ;;  %s380_s0 = inlined_call_operand.vmem [shape: f32[64,256], index: 0, kind: input, shape index: {}]   ;;  %s381_s1 = inlined_call_operand.vmem [shape: f32[2,1,256], index: 1, kind: output, shape index: {0}]   ;;  %s382_s2 = inlined_call_operand.vmem [shape: f32[2,1,256], index: 2, kind: output, shape index: {1}]  }
   0x1 LB: > { %s361_s10 = sadd.s32 4294967295, %s338_s9   ;;  %p315_p0 = scmp.ge.s32.totalorder %s338_s9, 1  ;;  %s338_s9 = sphi %s355_s9, %s13_s9  }
   0x2   : > { %p117_p1 = scmp.lt.s32.totalorder %s338_s9, 3 }
   0x4   : > { %p118_p2 = pnand %p315_p0, %p117_p1 }
   0x5   : > { %s316_s11 = sshll.u32 (!%p118_p2), %s361_s10, 2  ;;  %p150_p4 = scmp.lt.s32.totalorder (!%p118_p2), %s361_s10, 1 }
   0x6   : > { %121 = sbr.rel (%p118_p2) target bundleno = 40 (0x28), region = 24  ;;  %p144_p3 = scmp.lt.s32.totalorder (!%p118_p2), %s316_s11, 7 }
   0xb   : > { %s384_s11 = smov (!%p144_p3, %s316_s11), 7  ;;  %s386_s10 = smov (!%p150_p4, %s361_s10), 1  ;;  %v190_v45 = vlaneseq  ;;  %vm187_vm0 = vcmask 1040384  }
   0xc   : > { %s323_s12 = sshll.u32 %s384_s11, 4  ;;  %s319_s16 = sshll.u32 %s386_s10, 1 }
   0xd   : > { %s148_s15 = scalar_lea.vmem %s380_s0, %s323_s12  ;;  %s153_s19 = scalar_lea.vmem %s381_s1, %s319_s16  ;;  %vm192_vm1 = vcmp.lt.s32.totalorder %v190_v45, 256 }
   0xe   : > { %v158_v0 = vld [vmem:[%s148_s15] sm:$0xff]  ;;  %v159_v1 = vld [vmem:[%s148_s15 + $0x8] sm:$0xff]  ;;  %v160_v2 = vld [vmem:[%s148_s15 + $0x10] sm:$0xff]  ;;  %s157_s22 = scalar_lea.vmem %s382_s2, %s319_s16 }
   0xf   : > { %v161_v3 = vld [vmem:[%s148_s15 + $0x18] sm:$0xff]  ;;  %v162_v4 = vld [vmem:[%s148_s15 + $0x20] sm:$0xff]  ;;  %v163_v5 = vld [vmem:[%s148_s15 + $0x28] sm:$0xff]  ;;  %v166_v6 = vadd.f32 %v160_v2, %v158_v0  ;;  %v195_v7 = vmul.f32 %v158_v0, %v158_v0  ;;  %v196_v8 = vmul.f32 %v159_v1, %v159_v1  ;;  %v197_v9 = vmul.f32 %v160_v2, %v160_v2 }
  0x10   : > { %v164_v10 = vld [vmem:[%s148_s15 + $0x30] sm:$0xff]  ;;  %v165_v11 = vld [vmem:[%s148_s15 + $0x38] sm:$0xff]  ;;  %v175_v12 = vadd.f32 %v161_v3, %v159_v1  ;;  %v198_v13 = vmul.f32 %v161_v3, %v161_v3  ;;  %v199_v14 = vmul.f32 %v162_v4, %v162_v4  ;;  %v200_v15 = vmul.f32 %v163_v5, %v163_v5 }
  0x11   : > { %v167_v16 = vadd.f32 %v166_v6, %v162_v4  ;;  %v201_v17 = vmul.f32 %v164_v10, %v164_v10  ;;  %v203_v18 = vadd.f32 %v197_v9, %v195_v7  ;;  %v202_v20 = vmul.f32 %v165_v11, %v165_v11 }
  0x12   : > { %v176_v19 = vadd.f32 %v175_v12, %v163_v5  ;;  %v212_v21 = vadd.f32 %v198_v13, %v196_v8 }
  0x13   : > { %v168_v22 = vadd.f32 %v167_v16, %v164_v10  ;;  %v204_v23 = vadd.f32 %v203_v18, %v199_v14 }
  0x14   : > { %v177_v24 = vadd.f32 %v176_v19, %v165_v11  ;;  %v213_v25 = vadd.f32 %v212_v21, %v200_v15 }
  0x15   : > { %v169_v26 = vrot.slane %v168_v22, 4  ;;  %v205_v27 = vadd.f32 %v204_v23, %v201_v17 }
  0x16   : > { %v178_v28 = vrot.slane %v177_v24, 4  ;;  %v214_v29 = vadd.f32 %v213_v25, %v202_v20 }
  0x17   : > { %v170_v30 = vadd.f32 %v169_v26, %v168_v22  ;;  %v206_v31 = vrot.slane %v205_v27, 4 }
  0x18   : > { %v179_v32 = vadd.f32 %v178_v28, %v177_v24  ;;  %v215_v33 = vrot.slane %v214_v29, 4 }
  0x19   : > { %v171_v34 = vrot.slane %v170_v30, 2  ;;  %v207_v35 = vadd.f32 %v206_v31, %v205_v27 }
  0x1a   : > { %v180_v36 = vrot.slane %v179_v32, 2  ;;  %v216_v37 = vadd.f32 %v215_v33, %v214_v29 }
  0x1b   : > { %v172_v38 = vadd.f32 %v171_v34, %v170_v30  ;;  %v208_v39 = vrot.slane %v207_v35, 2 }
  0x1c   : > { %v181_v40 = vadd.f32 %v180_v36, %v179_v32  ;;  %v217_v41 = vrot.slane %v216_v37, 2 }
  0x1d   : > { %v173_v42 = vrot.slane %v172_v38, 1  ;;  %v209_v43 = vadd.f32 %v208_v39, %v207_v35 }
  0x1e   : > { %v182_v44 = vrot.slane %v181_v40, 1  ;;  %v218_v46 = vadd.f32 %v217_v41, %v216_v37 }
  0x1f   : > { %v210_v47 = vrot.slane %v209_v43, 1  ;;  %v174_v48 = vadd.f32 %v173_v42, %v172_v38 }
  0x20   : > { %v183_v49 = vadd.f32 %v182_v44, %v181_v40  ;;  %v219_v50 = vrot.slane %v218_v46, 1 }
  0x21   : > { %v211_v52 = vadd.f32 %v210_v47, %v209_v43 }
  0x22   : > { %v186_v51 = vrot.slane %v183_v49, 7  ;;  %v220_v53 = vadd.f32 %v219_v50, %v218_v46 }
  0x24   : > { %v188_v54 = vsel %vm187_vm0, %v174_v48, %v186_v51  ;;  %v223_v55 = vrot.slane %v220_v53, 7 }
  0x25   : > { %194 = vst.msk [vmem:[%s153_s19] sm:$0x3] %vm192_vm1, %v188_v54 }
  0x26   : > { %v224_v56 = vsel %vm187_vm0, %v211_v52, %v223_v55 }
  0x27   : > { %226 = vst.msk [vmem:[%s157_s22] sm:$0x3] %vm192_vm1, %v224_v56 }
  0x28 PF: > { %s13_s9 = sadd.s32 1, %s338_s9  }
  0x29   : > { %p10_p5 = scmp.ge.s32.totalorder %s13_s9, 4  }
  0x2b   :  { %12 = sbr.rel (!%p10_p5) target bundleno = 1 (0x1), region = 66 }

// kernel: generator_forward.17
= control target key start
LH: loop header
LB: loop body
LE: loop exit
PB: predicated region body
PF: predicated region fallthrough
CT: control target
= control target key end

     0   :  { %s2108_s15 = smov 0   ;;  %s2110_s16 = smov 0   ;;  %s2751_s0 = inlined_call_operand.vmem [shape: f32[2048,8], index: 0, kind: input, shape index: {}]   ;;  %s2752_s1 = inlined_call_operand.vmem [shape: f32[1,8], index: 1, kind: input, shape index: {}]   ;;  %s2753_s2 = inlined_call_operand.vmem [shape: f32[1,8], index: 2, kind: input, shape index: {}]   ;;  %s2754_s3 = inlined_call_operand.vmem [shape: bf16[8,128], index: 3, kind: input, shape index: {}]   ;;  %s2755_s4 = inlined_call_operand.vmem [shape: f32[2048,128], index: 4, kind: output, shape index: {}]  }
   0x1   :  { %s2112_s17 = smov 0  }
   0x2 LB: > { %s26_s18 = sadd.s32 1, %s2077_s16  ;;  %p1701_p0 = scmp.ge.s32.totalorder %s2081_s17, 1  ;;  %s2081_s17 = sphi %s2112_s17, %s14_s17   ;;  %s2077_s16 = sphi %s2110_s16, %s2757_s16   ;;  %s2073_s15 = sphi %s2108_s15, %s2756_s15  }
   0x3   : > { %p28_p1 = scmp.ge.s32.totalorder %s26_s18, 2  ;;  %p186_p2 = scmp.lt.s32.totalorder %s2081_s17, 3 }
   0x5   : > { %s2759_s18 = smov (%p28_p1, %s26_s18), 0  ;;  %p187_p3 = pnand %p1701_p0, %p186_p2 }
   0x6   : > { %s1702_s21 = sshll.u32 (!%p187_p3), %s2073_s15, 7 }
   0x7   : > { %190 = sbr.rel (%p187_p3) target bundleno = 416 (0x1a0), region = 36  ;;  %p220_p4 = scmp.lt.s32.totalorder (!%p187_p3), %s1702_s21, 255 }
   0xc   : > { %v823_v0 = vld [vmem:[%s2754_s3] sm:$0xf]  ;;  %vm1017_vm0 = vcmask 1043456   ;;  %s2761_s21 = smov (!%p220_p4, %s1702_s21), 255  ;;  %vm824_vm1 = vcmask 64512  }
   0xd   : > { %v1019_v1 = vsel %vm1017_vm0, %v823_v0, 0  ;;  %v2134_v2 = vld [vmem:[%s2752_s1] ss:$0 sm:$0xff]  ;;  %s1703_s24 = sshll.u32 %s2761_s21, 3 }
   0xe   : > { %1028 = vmatpush.bf16.msra.mxu0 %v1019_v1  ;;  %1772 = vmatpush.bf16.msra.mxu1 %v1019_v1  ;;  %s2142_s27 = scalar_lea.vmem %s2751_s0, %s1703_s24  ;;  %v2147_v3 = vld [vmem:[%s2753_s2] ss:$0 sm:$0xff]  ;;  %s2419_s6 = scalar_lea.vmem %s2755_s4, %s1703_s24 }
   0xf   : > { %1773 = vmatpush.bf16.msra.mxu2 %v1019_v1  ;;  %1774 = vmatpush.bf16.msra.mxu3 %v1019_v1  ;;  %v239_v4 = vld [vmem:[%s2142_s27] sm:$0xff]  ;;  %v240_v5 = vld [vmem:[%s2142_s27 + $0x8] sm:$0xff]  ;;  %v241_v30 = vld [vmem:[%s2142_s27 + $0x10] sm:$0xff] }
  0x10   : > { %v271_v6 = vld [vmem:[%s2142_s27 + $0x100] sm:$0xff]  ;;  %v371_v7 = vmul.f32 %v2134_v2, %v239_v4  ;;  %v372_v8 = vmul.f32 %v2134_v2, %v240_v5  ;;  %v272_v9 = vld [vmem:[%s2142_s27 + $0x108] sm:$0xff]  ;;  %v242_v35 = vld [vmem:[%s2142_s27 + $0x18] sm:$0xff]  ;;  %v373_v45 = vmul.f32 %v2134_v2, %v241_v30 }
  0x11   : > { %v403_v10 = vmul.f32 %v2134_v2, %v271_v6  ;;  %v303_v11 = vld [vmem:[%s2142_s27 + $0x200] sm:$0xff]  ;;  %v304_v12 = vld [vmem:[%s2142_s27 + $0x208] sm:$0xff]  ;;  %v404_v13 = vmul.f32 %v2134_v2, %v272_v9  ;;  %v273_v36 = vld [vmem:[%s2142_s27 + $0x110] sm:$0xff]  ;;  %v374_v46 = vmul.f32 %v2134_v2, %v242_v35 }
  0x12   : > { %v435_v14 = vmul.f32 %v2134_v2, %v303_v11  ;;  %v436_v15 = vmul.f32 %v2134_v2, %v304_v12  ;;  %v335_v16 = vld [vmem:[%s2142_s27 + $0x300] sm:$0xff]  ;;  %v336_v17 = vld [vmem:[%s2142_s27 + $0x308] sm:$0xff]  ;;  %v503_v18 = vadd.f32 %v2147_v3, %v371_v7  ;;  %v504_v19 = vadd.f32 %v2147_v3, %v372_v8  ;;  %v274_v37 = vld [vmem:[%s2142_s27 + $0x118] sm:$0xff] }
  0x13   : > { %v535_v20 = vadd.f32 %v2147_v3, %v403_v10  ;;  %v467_v21 = vmul.f32 %v2134_v2, %v335_v16  ;;  %v536_v22 = vadd.f32 %v2147_v3, %v404_v13  ;;  %v468_v25 = vmul.f32 %v2134_v2, %v336_v17  ;;  %v305_v40 = vld [vmem:[%s2142_s27 + $0x210] sm:$0xff]  ;;  %v306_v41 = vld [vmem:[%s2142_s27 + $0x218] sm:$0xff]  ;;  %v243_v13 = vld [vmem:[%s2142_s27 + $0x20] sm:$0xff] }
  0x14   : > { %v567_v23 = vadd.f32 %v2147_v3, %v435_v14  ;;  %v568_v24 = vadd.f32 %v2147_v3, %v436_v15  ;;  %v631_v26 = vmax.f32 %v503_v18, 0.0  ;;  %v632_v27 = vmax.f32 %v504_v19, 0.0  ;;  %v337_v49 = vld [vmem:[%s2142_s27 + $0x310] sm:$0xff]  ;;  %v338_v50 = vld [vmem:[%s2142_s27 + $0x318] sm:$0xff]  ;;  %v244_v14 = vld [vmem:[%s2142_s27 + $0x28] sm:$0xff] }
  0x15   : > { %v663_v28 = vmax.f32 %v535_v20, 0.0  ;;  %v599_v29 = vadd.f32 %v2147_v3, %v467_v21  ;;  %v664_v31 = vmax.f32 %v536_v22, 0.0  ;;  %v600_v34 = vadd.f32 %v2147_v3, %v468_v25  ;;  %v275_v15 = vld [vmem:[%s2142_s27 + $0x120] sm:$0xff]  ;;  %v276_v16 = vld [vmem:[%s2142_s27 + $0x128] sm:$0xff] }
  0x16   : > { %v695_v32 = vmax.f32 %v567_v23, 0.0  ;;  %v696_v33 = vmax.f32 %v568_v24, 0.0  ;;  %v759_v38 = vpack.c.bf16 %v632_v27, %v631_v26  ;;  %v405_v47 = vmul.f32 %v2134_v2, %v273_v36  ;;  %v307_v17 = vld [vmem:[%s2142_s27 + $0x220] sm:$0xff]  ;;  %v308_v18 = vld [vmem:[%s2142_s27 + $0x228] sm:$0xff] }
  0x17   : > { %v727_v39 = vmax.f32 %v599_v29, 0.0  ;;  %v775_v42 = vpack.c.bf16 %v664_v31, %v663_v28  ;;  %v728_v44 = vmax.f32 %v600_v34, 0.0  ;;  %v406_v48 = vmul.f32 %v2134_v2, %v274_v37  ;;  %v339_v23 = vld [vmem:[%s2142_s27 + $0x320] sm:$0xff]  ;;  %v340_v24 = vld [vmem:[%s2142_s27 + $0x328] sm:$0xff] }
  0x18   : > { %v791_v43 = vpack.c.bf16 %v696_v33, %v695_v32  ;;  %1706 = vmatmul.msk.bf16.vlgmr.msra.gmra.mxu0 %vm824_vm1, %v759_v38  ;;  %v437_v52 = vmul.f32 %v2134_v2, %v305_v40  ;;  %v438_v53 = vmul.f32 %v2134_v2, %v306_v41  ;;  %v469_v54 = vmul.f32 %v2134_v2, %v337_v49  ;;  %v245_v49 = vld [vmem:[%s2142_s27 + $0x30] sm:$0xff] }
  0x19   : > { %1722 = vmatmul.msk.bf16.vlgmr.msra.gmra.mxu1 %vm824_vm1, %v775_v42  ;;  %v807_v51 = vpack.c.bf16 %v728_v44, %v727_v39  ;;  %v470_v55 = vmul.f32 %v2134_v2, %v338_v50  ;;  %v505_v56 = vadd.f32 %v2147_v3, %v373_v45  ;;  %v506_v57 = vadd.f32 %v2147_v3, %v374_v46  ;;  %v246_v50 = vld [vmem:[%s2142_s27 + $0x38] sm:$0xff] }
  0x1a   : > { %1738 = vmatmul.msk.bf16.vlgmr.msra.gmra.mxu2 %vm824_vm1, %v791_v43  ;;  %v537_v58 = vadd.f32 %v2147_v3, %v405_v47  ;;  %v538_v59 = vadd.f32 %v2147_v3, %v406_v48  ;;  %v569_v60 = vadd.f32 %v2147_v3, %v437_v52  ;;  %v570_v61 = vadd.f32 %v2147_v3, %v438_v53  ;;  %v278_v52 = vld [vmem:[%s2142_s27 + $0x138] sm:$0xff]  ;;  %v309_v53 = vld [vmem:[%s2142_s27 + $0x230] sm:$0xff] }
  0x1b   : > { %1754 = vmatmul.msk.bf16.vlgmr.msra.gmra.mxu3 %vm824_vm1, %v807_v51  ;;  %v601_v62 = vadd.f32 %v2147_v3, %v469_v54  ;;  %v602_v63 = vadd.f32 %v2147_v3, %v470_v55  ;;  %v633_v0 = vmax.f32 %v505_v56, 0.0  ;;  %v634_v1 = vmax.f32 %v506_v57, 0.0  ;;  %v277_v51 = vld [vmem:[%s2142_s27 + $0x130] sm:$0xff]  ;;  %v310_v54 = vld [vmem:[%s2142_s27 + $0x238] sm:$0xff] }
  0x1c   : > { %v665_v4 = vmax.f32 %v537_v58, 0.0  ;;  %v666_v5 = vmax.f32 %v538_v59, 0.0  ;;  %v697_v6 = vmax.f32 %v569_v60, 0.0  ;;  %v698_v7 = vmax.f32 %v570_v61, 0.0  ;;  %v341_v59 = vld [vmem:[%s2142_s27 + $0x330] sm:$0xff]  ;;  %v342_v60 = vld [vmem:[%s2142_s27 + $0x338] sm:$0xff] }
  0x1d   : > { %v729_v8 = vmax.f32 %v601_v62, 0.0  ;;  %v730_v9 = vmax.f32 %v602_v63, 0.0  ;;  %v760_v10 = vpack.c.bf16 %v634_v1, %v633_v0  ;;  %v375_v20 = vmul.f32 %v2134_v2, %v243_v13 }
  0x1e   : > { %v776_v11 = vpack.c.bf16 %v666_v5, %v665_v4  ;;  %v792_v12 = vpack.c.bf16 %v698_v7, %v697_v6  ;;  %v376_v21 = vmul.f32 %v2134_v2, %v244_v14  ;;  %v407_v22 = vmul.f32 %v2134_v2, %v275_v15 }
  0x1f   : > { %v808_v19 = vpack.c.bf16 %v730_v9, %v729_v8  ;;  %v408_v25 = vmul.f32 %v2134_v2, %v276_v16  ;;  %v439_v26 = vmul.f32 %v2134_v2, %v307_v17  ;;  %v440_v27 = vmul.f32 %v2134_v2, %v308_v18 }
  0x20   : > { %v471_v28 = vmul.f32 %v2134_v2, %v339_v23  ;;  %v472_v29 = vmul.f32 %v2134_v2, %v340_v24  ;;  %v507_v30 = vadd.f32 %v2147_v3, %v375_v20  ;;  %v508_v31 = vadd.f32 %v2147_v3, %v376_v21  ;;  %v247_v23 = vld [vmem:[%s2142_s27 + $0x40] sm:$0xff]  ;;  %v248_v24 = vld [vmem:[%s2142_s27 + $0x48] sm:$0xff] }
  0x21   : > { %v539_v32 = vadd.f32 %v2147_v3, %v407_v22  ;;  %v540_v33 = vadd.f32 %v2147_v3, %v408_v25  ;;  %v571_v34 = vadd.f32 %v2147_v3, %v439_v26  ;;  %v572_v35 = vadd.f32 %v2147_v3, %v440_v27  ;;  %v279_v25 = vld [vmem:[%s2142_s27 + $0x140] sm:$0xff]  ;;  %v280_v26 = vld [vmem:[%s2142_s27 + $0x148] sm:$0xff] }
  0x22   : > { %v603_v36 = vadd.f32 %v2147_v3, %v471_v28  ;;  %v604_v37 = vadd.f32 %v2147_v3, %v472_v29  ;;  %v635_v38 = vmax.f32 %v507_v30, 0.0  ;;  %v636_v39 = vmax.f32 %v508_v31, 0.0  ;;  %v311_v27 = vld [vmem:[%s2142_s27 + $0x240] sm:$0xff]  ;;  %v312_v28 = vld [vmem:[%s2142_s27 + $0x248] sm:$0xff] }
  0x23   : > { %v667_v40 = vmax.f32 %v539_v32, 0.0  ;;  %v668_v41 = vmax.f32 %v540_v33, 0.0  ;;  %v699_v42 = vmax.f32 %v571_v34, 0.0  ;;  %v700_v43 = vmax.f32 %v572_v35, 0.0  ;;  %v343_v33 = vld [vmem:[%s2142_s27 + $0x340] sm:$0xff]  ;;  %v344_v34 = vld [vmem:[%s2142_s27 + $0x348] sm:$0xff] }
  0x24   : > { %v731_v44 = vmax.f32 %v603_v36, 0.0  ;;  %v732_v45 = vmax.f32 %v604_v37, 0.0  ;;  %v761_v46 = vpack.c.bf16 %v636_v39, %v635_v38  ;;  %v377_v56 = vmul.f32 %v2134_v2, %v245_v49 }
  0x25   : > { %v777_v47 = vpack.c.bf16 %v668_v41, %v667_v40  ;;  %v793_v48 = vpack.c.bf16 %v700_v43, %v699_v42  ;;  %v378_v57 = vmul.f32 %v2134_v2, %v246_v50  ;;  %v409_v58 = vmul.f32 %v2134_v2, %v277_v51 }
  0x26   : > { %v809_v55 = vpack.c.bf16 %v732_v45, %v731_v44  ;;  %v410_v61 = vmul.f32 %v2134_v2, %v278_v52  ;;  %v441_v62 = vmul.f32 %v2134_v2, %v309_v53  ;;  %v442_v63 = vmul.f32 %v2134_v2, %v310_v54 }
  0x27   : > { %v473_v0 = vmul.f32 %v2134_v2, %v341_v59  ;;  %v474_v1 = vmul.f32 %v2134_v2, %v342_v60  ;;  %v509_v4 = vadd.f32 %v2147_v3, %v377_v56  ;;  %v510_v5 = vadd.f32 %v2147_v3, %v378_v57  ;;  %v249_v59 = vld [vmem:[%s2142_s27 + $0x50] sm:$0xff]  ;;  %v250_v60 = vld [vmem:[%s2142_s27 + $0x58] sm:$0xff] }
  0x28   : > { %1707 = vmatmul.msk.bf16.gmra.mxu0 %vm824_vm1, %v760_v10  ;;  %v541_v6 = vadd.f32 %v2147_v3, %v409_v58  ;;  %v542_v7 = vadd.f32 %v2147_v3, %v410_v61  ;;  %v573_v8 = vadd.f32 %v2147_v3, %v441_v62  ;;  %v574_v9 = vadd.f32 %v2147_v3, %v442_v63  ;;  %v281_v61 = vld [vmem:[%s2142_s27 + $0x150] sm:$0xff]  ;;  %v282_v62 = vld [vmem:[%s2142_s27 + $0x158] sm:$0xff] }
  0x29   : > { %1723 = vmatmul.msk.bf16.gmra.mxu1 %vm824_vm1, %v776_v11  ;;  %v605_v10 = vadd.f32 %v2147_v3, %v473_v0  ;;  %v606_v11 = vadd.f32 %v2147_v3, %v474_v1  ;;  %v638_v13 = vmax.f32 %v510_v5, 0.0  ;;  %v379_v30 = vmul.f32 %v2134_v2, %v247_v23  ;;  %v313_v63 = vld [vmem:[%s2142_s27 + $0x250] sm:$0xff]  ;;  %v314_v0 = vld [vmem:[%s2142_s27 + $0x258] sm:$0xff] }
  0x2a   : > { %1739 = vmatmul.msk.bf16.gmra.mxu2 %vm824_vm1, %v792_v12  ;;  %v637_v12 = vmax.f32 %v509_v4, 0.0  ;;  %v669_v14 = vmax.f32 %v541_v6, 0.0  ;;  %v670_v15 = vmax.f32 %v542_v7, 0.0  ;;  %v701_v16 = vmax.f32 %v573_v8, 0.0  ;;  %v345_v7 = vld [vmem:[%s2142_s27 + $0x350] sm:$0xff]  ;;  %v346_v8 = vld [vmem:[%s2142_s27 + $0x358] sm:$0xff] }
  0x2b   : > { %1755 = vmatmul.msk.bf16.gmra.mxu3 %vm824_vm1, %v808_v19  ;;  %v702_v17 = vmax.f32 %v574_v9, 0.0  ;;  %v733_v18 = vmax.f32 %v605_v10, 0.0  ;;  %v734_v19 = vmax.f32 %v606_v11, 0.0  ;;  %v380_v31 = vmul.f32 %v2134_v2, %v248_v24 }
  0x2c   : > { %v762_v20 = vpack.c.bf16 %v638_v13, %v637_v12  ;;  %v778_v21 = vpack.c.bf16 %v670_v15, %v669_v14  ;;  %v411_v32 = vmul.f32 %v2134_v2, %v279_v25  ;;  %v412_v35 = vmul.f32 %v2134_v2, %v280_v26 }
  0x2d   : > { %v794_v22 = vpack.c.bf16 %v702_v17, %v701_v16  ;;  %v810_v29 = vpack.c.bf16 %v734_v19, %v733_v18  ;;  %v443_v36 = vmul.f32 %v2134_v2, %v311_v27  ;;  %v444_v37 = vmul.f32 %v2134_v2, %v312_v28 }
  0x2e   : > { %v475_v38 = vmul.f32 %v2134_v2, %v343_v33  ;;  %v476_v39 = vmul.f32 %v2134_v2, %v344_v34  ;;  %v511_v40 = vadd.f32 %v2147_v3, %v379_v30  ;;  %v512_v41 = vadd.f32 %v2147_v3, %v380_v31  ;;  %v251_v33 = vld [vmem:[%s2142_s27 + $0x60] sm:$0xff]  ;;  %v252_v34 = vld [vmem:[%s2142_s27 + $0x68] sm:$0xff] }
  0x2f   : > { %v543_v42 = vadd.f32 %v2147_v3, %v411_v32  ;;  %v544_v43 = vadd.f32 %v2147_v3, %v412_v35  ;;  %v575_v44 = vadd.f32 %v2147_v3, %v443_v36  ;;  %v576_v45 = vadd.f32 %v2147_v3, %v444_v37  ;;  %v283_v35 = vld [vmem:[%s2142_s27 + $0x160] sm:$0xff]  ;;  %v284_v36 = vld [vmem:[%s2142_s27 + $0x168] sm:$0xff] }
  0x30   : > { %v640_v49 = vmax.f32 %v512_v41, 0.0  ;;  %v381_v4 = vmul.f32 %v2134_v2, %v249_v59  ;;  %v382_v5 = vmul.f32 %v2134_v2, %v250_v60  ;;  %v413_v6 = vmul.f32 %v2134_v2, %v281_v61  ;;  %v315_v37 = vld [vmem:[%s2142_s27 + $0x260] sm:$0xff] }
  0x31   : > { %v671_v50 = vmax.f32 %v543_v42, 0.0  ;;  %v672_v51 = vmax.f32 %v544_v43, 0.0  ;;  %v703_v52 = vmax.f32 %v575_v44, 0.0  ;;  %v704_v53 = vmax.f32 %v576_v45, 0.0  ;;  %v347_v43 = vld [vmem:[%s2142_s27 + $0x360] sm:$0xff]  ;;  %v348_v44 = vld [vmem:[%s2142_s27 + $0x368] sm:$0xff] }
  0x32   : > { %v414_v9 = vmul.f32 %v2134_v2, %v282_v62  ;;  %v445_v10 = vmul.f32 %v2134_v2, %v313_v63  ;;  %v446_v11 = vmul.f32 %v2134_v2, %v314_v0  ;;  %v477_v12 = vmul.f32 %v2134_v2, %v345_v7  ;;  %v253_v7 = vld [vmem:[%s2142_s27 + $0x70] sm:$0xff] }
  0x33   : > { %v779_v57 = vpack.c.bf16 %v672_v51, %v671_v50  ;;  %v795_v58 = vpack.c.bf16 %v704_v53, %v703_v52  ;;  %v478_v13 = vmul.f32 %v2134_v2, %v346_v8  ;;  %v513_v14 = vadd.f32 %v2147_v3, %v381_v4  ;;  %v254_v8 = vld [vmem:[%s2142_s27 + $0x78] sm:$0xff] }
  0x34   : > { %v514_v15 = vadd.f32 %v2147_v3, %v382_v5  ;;  %v545_v16 = vadd.f32 %v2147_v3, %v413_v6  ;;  %v546_v17 = vadd.f32 %v2147_v3, %v414_v9  ;;  %v577_v18 = vadd.f32 %v2147_v3, %v445_v10  ;;  %v285_v9 = vld [vmem:[%s2142_s27 + $0x170] sm:$0xff]  ;;  %v286_v10 = vld [vmem:[%s2142_s27 + $0x178] sm:$0xff] }
  0x35   : > { %v578_v19 = vadd.f32 %v2147_v3, %v446_v11  ;;  %v384_v41 = vmul.f32 %v2134_v2, %v252_v34  ;;  %v415_v42 = vmul.f32 %v2134_v2, %v283_v35  ;;  %v416_v45 = vmul.f32 %v2134_v2, %v284_v36  ;;  %v317_v11 = vld [vmem:[%s2142_s27 + $0x270] sm:$0xff] }
  0x36   : > { %v642_v23 = vmax.f32 %v514_v15, 0.0  ;;  %v673_v24 = vmax.f32 %v545_v16, 0.0  ;;  %v674_v25 = vmax.f32 %v546_v17, 0.0  ;;  %v705_v26 = vmax.f32 %v577_v18, 0.0  ;;  %v349_v17 = vld [vmem:[%s2142_s27 + $0x370] sm:$0xff]  ;;  %v350_v18 = vld [vmem:[%s2142_s27 + $0x378] sm:$0xff] }
  0x37   : > { %v706_v27 = vmax.f32 %v578_v19, 0.0  ;;  %v516_v51 = vadd.f32 %v2147_v3, %v384_v41  ;;  %v547_v52 = vadd.f32 %v2147_v3, %v415_v42  ;;  %v548_v53 = vadd.f32 %v2147_v3, %v416_v45  ;;  %v287_v45 = vld [vmem:[%s2142_s27 + $0x180] sm:$0xff] }
  0x38   : > { %1708 = vmatmul.msk.bf16.gmra.mxu0 %vm824_vm1, %v761_v46  ;;  %v607_v46 = vadd.f32 %v2147_v3, %v475_v38  ;;  %v780_v31 = vpack.c.bf16 %v674_v25, %v673_v24  ;;  %v316_v38 = vld [vmem:[%s2142_s27 + $0x268] sm:$0xff]  ;;  %v386_v15 = vmul.f32 %v2134_v2, %v254_v8  ;;  %v417_v16 = vmul.f32 %v2134_v2, %v285_v9 }
  0x39   : > { %1724 = vmatmul.msk.bf16.gmra.mxu1 %vm824_vm1, %v777_v47  ;;  %v608_v47 = vadd.f32 %v2147_v3, %v476_v39  ;;  %v796_v32 = vpack.c.bf16 %v706_v27, %v705_v26  ;;  %v644_v59 = vmax.f32 %v516_v51, 0.0  ;;  %v675_v60 = vmax.f32 %v547_v52, 0.0 }
  0x3a   : > { %1740 = vmatmul.msk.bf16.gmra.mxu2 %vm824_vm1, %v793_v48  ;;  %v639_v48 = vmax.f32 %v511_v40, 0.0  ;;  %v735_v54 = vmax.f32 %v607_v46, 0.0  ;;  %v383_v40 = vmul.f32 %v2134_v2, %v251_v33  ;;  %v447_v46 = vmul.f32 %v2134_v2, %v315_v37 }
  0x3b   : > { %1756 = vmatmul.msk.bf16.gmra.mxu3 %vm824_vm1, %v809_v55  ;;  %v736_v55 = vmax.f32 %v608_v47, 0.0  ;;  %v448_v47 = vmul.f32 %v2134_v2, %v316_v38  ;;  %v676_v61 = vmax.f32 %v548_v53, 0.0  ;;  %v418_v19 = vmul.f32 %v2134_v2, %v286_v10  ;;  %v351_v53 = vld [vmem:[%s2142_s27 + $0x380] sm:$0xff] }
  0x3c   : > { %v763_v56 = vpack.c.bf16 %v640_v49, %v639_v48  ;;  %v479_v48 = vmul.f32 %v2134_v2, %v347_v43  ;;  %v480_v49 = vmul.f32 %v2134_v2, %v348_v44  ;;  %v515_v50 = vadd.f32 %v2147_v3, %v383_v40  ;;  %v255_v43 = vld [vmem:[%s2142_s27 + $0x80] sm:$0xff]  ;;  %v256_v44 = vld [vmem:[%s2142_s27 + $0x88] sm:$0xff] }
  0x3d   : > { %v811_v1 = vpack.c.bf16 %v736_v55, %v735_v54  ;;  %v579_v54 = vadd.f32 %v2147_v3, %v447_v46  ;;  %v580_v55 = vadd.f32 %v2147_v3, %v448_v47  ;;  %v781_v5 = vpack.c.bf16 %v676_v61, %v675_v60  ;;  %v288_v46 = vld [vmem:[%s2142_s27 + $0x188] sm:$0xff]  ;;  %v319_v47 = vld [vmem:[%s2142_s27 + $0x280] sm:$0xff] }
  0x3e   : > { %v518_v25 = vadd.f32 %v2147_v3, %v386_v15  ;;  %v549_v26 = vadd.f32 %v2147_v3, %v417_v16  ;;  %v550_v27 = vadd.f32 %v2147_v3, %v418_v19  ;;  %v388_v51 = vmul.f32 %v2134_v2, %v256_v44  ;;  %v258_v19 = vld [vmem:[%s2142_s27 + $0x98] sm:$0xff] }
  0x3f   : > { %v707_v62 = vmax.f32 %v579_v54, 0.0  ;;  %v708_v63 = vmax.f32 %v580_v55, 0.0  ;;  %v419_v52 = vmul.f32 %v2134_v2, %v287_v45  ;;  %v352_v54 = vld [vmem:[%s2142_s27 + $0x388] sm:$0xff]  ;;  %v420_v55 = vmul.f32 %v2134_v2, %v288_v46 }
  0x40   : > { %v646_v33 = vmax.f32 %v518_v25, 0.0  ;;  %v677_v34 = vmax.f32 %v549_v26, 0.0  ;;  %v678_v35 = vmax.f32 %v550_v27, 0.0  ;;  %v520_v61 = vadd.f32 %v2147_v3, %v388_v51 }
  0x41   : > { %v797_v6 = vpack.c.bf16 %v708_v63, %v707_v62  ;;  %v551_v62 = vadd.f32 %v2147_v3, %v419_v52  ;;  %v552_v63 = vadd.f32 %v2147_v3, %v420_v55  ;;  %v390_v27 = vmul.f32 %v2134_v2, %v258_v19 }
  0x42   : > { %v782_v41 = vpack.c.bf16 %v678_v35, %v677_v34 }
  0x43   : > { %v679_v8 = vmax.f32 %v551_v62, 0.0  ;;  %v680_v9 = vmax.f32 %v552_v63, 0.0 }
  0x45   : > { %v783_v16 = vpack.c.bf16 %v680_v9, %v679_v8 }
  0x48   : > { %1709 = vmatmul.msk.bf16.gmra.mxu0 %vm824_vm1, %v762_v20  ;;  %v609_v20 = vadd.f32 %v2147_v3, %v477_v12  ;;  %v318_v12 = vld [vmem:[%s2142_s27 + $0x278] sm:$0xff] }
  0x49   : > { %1725 = vmatmul.msk.bf16.gmra.mxu1 %vm824_vm1, %v778_v21  ;;  %v610_v21 = vadd.f32 %v2147_v3, %v478_v13 }
  0x4a   : > { %1741 = vmatmul.msk.bf16.gmra.mxu2 %vm824_vm1, %v794_v22  ;;  %v641_v22 = vmax.f32 %v513_v14, 0.0  ;;  %v737_v28 = vmax.f32 %v609_v20, 0.0  ;;  %v385_v14 = vmul.f32 %v2134_v2, %v253_v7  ;;  %v449_v20 = vmul.f32 %v2134_v2, %v317_v11 }
  0x4b   : > { %1757 = vmatmul.msk.bf16.gmra.mxu3 %vm824_vm1, %v810_v29  ;;  %v738_v29 = vmax.f32 %v610_v21, 0.0  ;;  %v450_v21 = vmul.f32 %v2134_v2, %v318_v12  ;;  %v648_v7 = vmax.f32 %v520_v61, 0.0 }
  0x4c   : > { %v764_v30 = vpack.c.bf16 %v642_v23, %v641_v22  ;;  %v481_v22 = vmul.f32 %v2134_v2, %v349_v17  ;;  %v482_v23 = vmul.f32 %v2134_v2, %v350_v18  ;;  %v517_v24 = vadd.f32 %v2147_v3, %v385_v14  ;;  %v257_v18 = vld [vmem:[%s2142_s27 + $0x90] sm:$0xff] }
  0x4d   : > { %v812_v39 = vpack.c.bf16 %v738_v29, %v737_v28  ;;  %v581_v28 = vadd.f32 %v2147_v3, %v449_v20  ;;  %v582_v29 = vadd.f32 %v2147_v3, %v450_v21  ;;  %v289_v20 = vld [vmem:[%s2142_s27 + $0x190] sm:$0xff]  ;;  %v389_v26 = vmul.f32 %v2134_v2, %v257_v18  ;;  %v356_v18 = vld [vmem:[%s2142_s27 + $0x3a8] sm:$0xff] }
  0x4f   : > { %v709_v36 = vmax.f32 %v581_v28, 0.0  ;;  %v710_v37 = vmax.f32 %v582_v29, 0.0  ;;  %v421_v28 = vmul.f32 %v2134_v2, %v289_v20  ;;  %v353_v29 = vld [vmem:[%s2142_s27 + $0x390] sm:$0xff] }
  0x50   : > { %v485_v34 = vmul.f32 %v2134_v2, %v353_v29 }
  0x51   : > { %v798_v42 = vpack.c.bf16 %v710_v37, %v709_v36 }
  0x58   : > { %1710 = vmatmul.msk.bf16.gmra.mxu0 %vm824_vm1, %v763_v56  ;;  %v611_v56 = vadd.f32 %v2147_v3, %v479_v48  ;;  %v320_v48 = vld [vmem:[%s2142_s27 + $0x288] sm:$0xff] }
  0x59   : > { %1726 = vmatmul.msk.bf16.gmra.mxu1 %vm824_vm1, %v779_v57  ;;  %v612_v57 = vadd.f32 %v2147_v3, %v480_v49 }
  0x5a   : > { %1742 = vmatmul.msk.bf16.gmra.mxu2 %vm824_vm1, %v795_v58  ;;  %v643_v58 = vmax.f32 %v515_v50, 0.0  ;;  %v739_v0 = vmax.f32 %v611_v56, 0.0  ;;  %v387_v50 = vmul.f32 %v2134_v2, %v255_v43  ;;  %v451_v56 = vmul.f32 %v2134_v2, %v319_v47 }
  0x5b   : > { %1758 = vmatmul.msk.bf16.gmra.mxu3 %vm824_vm1, %v811_v1  ;;  %v740_v1 = vmax.f32 %v612_v57, 0.0  ;;  %v452_v57 = vmul.f32 %v2134_v2, %v320_v48  ;;  %v617_v48 = vadd.f32 %v2147_v3, %v485_v34 }
  0x5c   : > { %v765_v4 = vpack.c.bf16 %v644_v59, %v643_v58  ;;  %v483_v58 = vmul.f32 %v2134_v2, %v351_v53  ;;  %v484_v59 = vmul.f32 %v2134_v2, %v352_v54  ;;  %v519_v60 = vadd.f32 %v2147_v3, %v387_v50 }
  0x5d   : > { %v813_v13 = vpack.c.bf16 %v740_v1, %v739_v0  ;;  %v583_v0 = vadd.f32 %v2147_v3, %v451_v56  ;;  %v584_v1 = vadd.f32 %v2147_v3, %v452_v57  ;;  %v745_v57 = vmax.f32 %v617_v48, 0.0 }
  0x5f   : > { %v711_v10 = vmax.f32 %v583_v0, 0.0  ;;  %v712_v11 = vmax.f32 %v584_v1, 0.0 }
  0x61   : > { %v799_v17 = vpack.c.bf16 %v712_v11, %v711_v10  ;;  %v292_v10 = vld [vmem:[%s2142_s27 + $0x1a8] sm:$0xff]  ;;  %v323_v11 = vld [vmem:[%s2142_s27 + $0x2a0] sm:$0xff] }
  0x62   : > { %v424_v19 = vmul.f32 %v2134_v2, %v292_v10  ;;  %v455_v20 = vmul.f32 %v2134_v2, %v323_v11 }
  0x68   : > { %1711 = vmatmul.msk.bf16.gmra.mxu0 %vm824_vm1, %v764_v30  ;;  %v613_v30 = vadd.f32 %v2147_v3, %v481_v22  ;;  %v290_v22 = vld [vmem:[%s2142_s27 + $0x198] sm:$0xff] }
  0x69   : > { %1727 = vmatmul.msk.bf16.gmra.mxu1 %vm824_vm1, %v780_v31  ;;  %v614_v31 = vadd.f32 %v2147_v3, %v482_v23  ;;  %v321_v23 = vld [vmem:[%s2142_s27 + $0x290] sm:$0xff] }
  0x6a   : > { %1743 = vmatmul.msk.bf16.gmra.mxu2 %vm824_vm1, %v796_v32  ;;  %v645_v32 = vmax.f32 %v517_v24, 0.0  ;;  %v741_v38 = vmax.f32 %v613_v30, 0.0  ;;  %v322_v24 = vld [vmem:[%s2142_s27 + $0x298] sm:$0xff] }
  0x6b   : > { %1759 = vmatmul.msk.bf16.gmra.mxu3 %vm824_vm1, %v812_v39  ;;  %v742_v39 = vmax.f32 %v614_v31, 0.0  ;;  %v354_v30 = vld [vmem:[%s2142_s27 + $0x398] sm:$0xff]  ;;  %v422_v31 = vmul.f32 %v2134_v2, %v290_v22 }
  0x6c   : > { %v766_v40 = vpack.c.bf16 %v646_v33, %v645_v32  ;;  %v453_v32 = vmul.f32 %v2134_v2, %v321_v23  ;;  %v454_v33 = vmul.f32 %v2134_v2, %v322_v24  ;;  %v486_v35 = vmul.f32 %v2134_v2, %v354_v30 }
  0x6d   : > { %v814_v49 = vpack.c.bf16 %v742_v39, %v741_v38  ;;  %v521_v38 = vadd.f32 %v2147_v3, %v389_v26  ;;  %v522_v39 = vadd.f32 %v2147_v3, %v390_v27  ;;  %v554_v43 = vadd.f32 %v2147_v3, %v422_v31 }
  0x6e   : > { %v585_v44 = vadd.f32 %v2147_v3, %v453_v32  ;;  %v586_v45 = vadd.f32 %v2147_v3, %v454_v33  ;;  %v488_v24 = vmul.f32 %v2134_v2, %v356_v18  ;;  %v556_v32 = vadd.f32 %v2147_v3, %v424_v19 }
  0x6f   : > { %v649_v50 = vmax.f32 %v521_v38, 0.0  ;;  %v650_v51 = vmax.f32 %v522_v39, 0.0  ;;  %v682_v53 = vmax.f32 %v554_v43, 0.0  ;;  %v587_v33 = vadd.f32 %v2147_v3, %v455_v20 }
  0x70   : > { %v713_v54 = vmax.f32 %v585_v44, 0.0  ;;  %v714_v55 = vmax.f32 %v586_v45, 0.0  ;;  %v620_v38 = vadd.f32 %v2147_v3, %v488_v24 }
  0x71   : > { %v768_v61 = vpack.c.bf16 %v650_v51, %v649_v50  ;;  %v715_v43 = vmax.f32 %v587_v33, 0.0 }
  0x72   : > { %v800_v1 = vpack.c.bf16 %v714_v55, %v713_v54  ;;  %v261_v54 = vld [vmem:[%s2142_s27 + $0xb0] sm:$0xff]  ;;  %v262_v55 = vld [vmem:[%s2142_s27 + $0xb8] sm:$0xff] }
  0x78   : > { %1712 = vmatmul.msk.bf16.gmra.mxu0 %vm824_vm1, %v765_v4  ;;  %v615_v4 = vadd.f32 %v2147_v3, %v483_v58 }
  0x79   : > { %1728 = vmatmul.msk.bf16.gmra.mxu1 %vm824_vm1, %v781_v5  ;;  %v616_v5 = vadd.f32 %v2147_v3, %v484_v59 }
  0x7a   : > { %1744 = vmatmul.msk.bf16.gmra.mxu2 %vm824_vm1, %v797_v6  ;;  %v647_v6 = vmax.f32 %v519_v60, 0.0  ;;  %v743_v12 = vmax.f32 %v615_v4, 0.0  ;;  %v259_v4 = vld [vmem:[%s2142_s27 + $0xa0] sm:$0xff] }
  0x7b   : > { %1760 = vmatmul.msk.bf16.gmra.mxu3 %vm824_vm1, %v813_v13  ;;  %v744_v13 = vmax.f32 %v616_v5, 0.0  ;;  %v260_v5 = vld [vmem:[%s2142_s27 + $0xa8] sm:$0xff] }
  0x7c   : > { %v767_v14 = vpack.c.bf16 %v648_v7, %v647_v6  ;;  %v291_v6 = vld [vmem:[%s2142_s27 + $0x1a0] sm:$0xff] }
  0x7d   : > { %v815_v25 = vpack.c.bf16 %v744_v13, %v743_v12  ;;  %v324_v12 = vld [vmem:[%s2142_s27 + $0x2a8] sm:$0xff] }
  0x88   : > { %1713 = vmatmul.msk.bf16.gmra.mxu0 %vm824_vm1, %v766_v40  ;;  %v553_v40 = vadd.f32 %v2147_v3, %v421_v28 }
  0x89   : > { %1729 = vmatmul.msk.bf16.gmra.mxu1 %vm824_vm1, %v782_v41 }
  0x8a   : > { %1745 = vmatmul.msk.bf16.gmra.mxu2 %vm824_vm1, %v798_v42  ;;  %v681_v52 = vmax.f32 %v553_v40, 0.0 }
  0x8b   : > { %1761 = vmatmul.msk.bf16.gmra.mxu3 %vm824_vm1, %v814_v49  ;;  %v618_v49 = vadd.f32 %v2147_v3, %v486_v35 }
  0x8c   : > { %v784_v0 = vpack.c.bf16 %v682_v53, %v681_v52 }
  0x8d   : > { %v746_v58 = vmax.f32 %v618_v49, 0.0 }
  0x8f   : > { %v816_v13 = vpack.c.bf16 %v746_v58, %v745_v57 }
  0x95   : > { %v1030_v15 = vpop.f32.mrf.mxu0 }
  0x96   : > { %1801 = vtanh.f32 %v1030_v15  ;;  %v1110_v21 = vpop.f32.mrf.mxu1  ;;  %v392_v15 = vmul.f32 %v2134_v2, %v260_v5 }
  0x97   : > { %1803 = vtanh.f32 %v1110_v21  ;;  %v456_v21 = vmul.f32 %v2134_v2, %v324_v12 }
  0x98   : > { %1714 = vmatmul.msk.bf16.gmra.mxu0 %vm824_vm1, %v767_v14  ;;  %v391_v14 = vmul.f32 %v2134_v2, %v259_v4  ;;  %v524_v28 = vadd.f32 %v2147_v3, %v392_v15 }
  0x99   : > { %1730 = vmatmul.msk.bf16.gmra.mxu1 %vm824_vm1, %v783_v16  ;;  %v423_v16 = vmul.f32 %v2134_v2, %v291_v6  ;;  %v357_v6 = vld [vmem:[%s2142_s27 + $0x3b0] sm:$0xff] }
  0x9a   : > { %1746 = vmatmul.msk.bf16.gmra.mxu2 %vm824_vm1, %v799_v17  ;;  %v355_v17 = vld [vmem:[%s2142_s27 + $0x3a0] sm:$0xff]  ;;  %v523_v27 = vadd.f32 %v2147_v3, %v391_v14  ;;  %v652_v40 = vmax.f32 %v524_v28, 0.0 }
  0x9b   : > { %1762 = vmatmul.msk.bf16.gmra.mxu3 %vm824_vm1, %v815_v25  ;;  %v487_v23 = vmul.f32 %v2134_v2, %v355_v17  ;;  %v555_v29 = vadd.f32 %v2147_v3, %v423_v16  ;;  %v588_v2 = vadd.f32 %v2147_v3, %v456_v21  ;;  %v2503_v16 = vld [vmem:[%s2753_s2] ss:$0 sm:$0xff] }
  0x9c   : > { %v1802_v36 = vpop.eup %1801  ;;  %v651_v39 = vmax.f32 %v523_v27, 0.0 }
  0x9d   : > { %v1190_v37 = vpop.f32.mrf.mxu2  ;;  %v1804_v41 = vpop.eup %1803  ;;  %1478 = vst [vmem:[%s2419_s6] sm:$0xff] %v1802_v36  ;;  %v716_v44 = vmax.f32 %v588_v2, 0.0 }
  0x9e   : > { %1805 = vtanh.f32 %v1190_v37  ;;  %v1032_v42 = vpop.f32.mrf.mxu0  ;;  %1510 = vst [vmem:[%s2419_s6 + $0x100] sm:$0xff] %v1804_v41  ;;  %v1270_v46 = vpop.f32.mrf.mxu3  ;;  %v619_v37 = vadd.f32 %v2147_v3, %v487_v23  ;;  %v683_v41 = vmax.f32 %v555_v29, 0.0  ;;  %v769_v3 = vpack.c.bf16 %v652_v40, %v651_v39 }
  0x9f   : > { %1807 = vtanh.f32 %v1032_v42  ;;  %v1112_v47 = vpop.f32.mrf.mxu1  ;;  %v684_v42 = vmax.f32 %v556_v32, 0.0  ;;  %v801_v53 = vpack.c.bf16 %v716_v44, %v715_v43 }
  0xa0   : > { %1809 = vtanh.f32 %v1270_v46  ;;  %v747_v46 = vmax.f32 %v619_v37, 0.0 }
  0xa1   : > { %1811 = vtanh.f32 %v1112_v47  ;;  %v748_v47 = vmax.f32 %v620_v38, 0.0  ;;  %v785_v52 = vpack.c.bf16 %v684_v42, %v683_v41 }
  0xa4   : > { %v1806_v56 = vpop.eup %1805 }
  0xa5   : > { %v1808_v59 = vpop.eup %1807  ;;  %1542 = vst [vmem:[%s2419_s6 + $0x200] sm:$0xff] %v1806_v56  ;;  %v1192_v60 = vpop.f32.mrf.mxu2  ;;  %v293_v56 = vld [vmem:[%s2142_s27 + $0x1b0] sm:$0xff] }
  0xa6   : > { %v1810_v62 = vpop.eup %1809  ;;  %1479 = vst [vmem:[%s2419_s6 + $0x8] sm:$0xff] %v1808_v59  ;;  %1813 = vtanh.f32 %v1192_v60  ;;  %v1035_v63 = vpop.f32.mrf.mxu0  ;;  %v294_v60 = vld [vmem:[%s2142_s27 + $0x1b8] sm:$0xff] }
  0xa7   : > { %v1812_v7 = vpop.eup %1811  ;;  %1574 = vst [vmem:[%s2419_s6 + $0x300] sm:$0xff] %v1810_v62  ;;  %v1272_v8 = vpop.f32.mrf.mxu3  ;;  %1815 = vtanh.f32 %v1035_v63  ;;  %v326_v62 = vld [vmem:[%s2142_s27 + $0x2b8] sm:$0xff]  ;;  %v817_v63 = vpack.c.bf16 %v748_v47, %v747_v46  ;;  %v264_v46 = vld [vmem:[%s2142_s27 + $0xc8] sm:$0xff]  ;;  %v295_v47 = vld [vmem:[%s2142_s27 + $0x1c0] sm:$0xff] }
  0xa8   : > { %v1115_v9 = vpop.f32.mrf.mxu1  ;;  %1511 = vst [vmem:[%s2419_s6 + $0x108] sm:$0xff] %v1812_v7  ;;  %1817 = vtanh.f32 %v1272_v8  ;;  %1715 = vmatmul.msk.bf16.gmra.mxu0 %vm824_vm1, %v768_v61  ;;  %v325_v61 = vld [vmem:[%s2142_s27 + $0x2b0] sm:$0xff]  ;;  %v358_v7 = vld [vmem:[%s2142_s27 + $0x3b8] sm:$0xff] }
  0xa9   : > { %1819 = vtanh.f32 %v1115_v9  ;;  %1731 = vmatmul.msk.bf16.gmra.mxu1 %vm824_vm1, %v784_v0  ;;  %v2484_v0 = vld [vmem:[%s2752_s1] ss:$0 sm:$0xff] }
  0xaa   : > { %1747 = vmatmul.msk.bf16.gmra.mxu2 %vm824_vm1, %v800_v1  ;;  %v393_v1 = vmul.f32 %v2484_v0, %v261_v54  ;;  %v394_v4 = vmul.f32 %v2484_v0, %v262_v55  ;;  %v425_v5 = vmul.f32 %v2484_v0, %v293_v56  ;;  %v426_v8 = vmul.f32 %v2484_v0, %v294_v60 }
  0xab   : > { %1763 = vmatmul.msk.bf16.gmra.mxu3 %vm824_vm1, %v816_v13  ;;  %v457_v9 = vmul.f32 %v2484_v0, %v325_v61  ;;  %v458_v10 = vmul.f32 %v2484_v0, %v326_v62  ;;  %v489_v12 = vmul.f32 %v2484_v0, %v357_v6  ;;  %v490_v13 = vmul.f32 %v2484_v0, %v358_v7 }
  0xac   : > { %v1814_v22 = vpop.eup %1813  ;;  %v525_v17 = vadd.f32 %v2503_v16, %v393_v1  ;;  %v526_v18 = vadd.f32 %v2503_v16, %v394_v4  ;;  %v557_v19 = vadd.f32 %v2503_v16, %v425_v5  ;;  %v396_v55 = vmul.f32 %v2484_v0, %v264_v46 }
  0xad   : > { %v1816_v25 = vpop.eup %1815  ;;  %1543 = vst [vmem:[%s2419_s6 + $0x208] sm:$0xff] %v1814_v22  ;;  %v1195_v26 = vpop.f32.mrf.mxu2  ;;  %v558_v22 = vadd.f32 %v2503_v16, %v426_v8  ;;  %v589_v23 = vadd.f32 %v2503_v16, %v457_v9  ;;  %v590_v24 = vadd.f32 %v2503_v16, %v458_v10  ;;  %v621_v28 = vadd.f32 %v2503_v16, %v489_v12 }
  0xae   : > { %v1818_v30 = vpop.eup %1817  ;;  %1480 = vst [vmem:[%s2419_s6 + $0x10] sm:$0xff] %v1816_v25  ;;  %1821 = vtanh.f32 %v1195_v26  ;;  %v1037_v31 = vpop.f32.mrf.mxu0  ;;  %v622_v29 = vadd.f32 %v2503_v16, %v490_v13  ;;  %v685_v32 = vmax.f32 %v557_v19, 0.0  ;;  %v427_v56 = vmul.f32 %v2484_v0, %v295_v47 }
  0xaf   : > { %v1820_v34 = vpop.eup %1819  ;;  %1575 = vst [vmem:[%s2419_s6 + $0x308] sm:$0xff] %v1818_v30  ;;  %v1275_v35 = vpop.f32.mrf.mxu3  ;;  %1823 = vtanh.f32 %v1037_v31  ;;  %v653_v30 = vmax.f32 %v525_v17, 0.0  ;;  %v654_v31 = vmax.f32 %v526_v18, 0.0  ;;  %v686_v33 = vmax.f32 %v558_v22, 0.0 }
  0xb0   : > { %v1117_v36 = vpop.f32.mrf.mxu1  ;;  %1512 = vst [vmem:[%s2419_s6 + $0x110] sm:$0xff] %v1820_v34  ;;  %1825 = vtanh.f32 %v1275_v35  ;;  %v717_v2 = vmax.f32 %v589_v23, 0.0  ;;  %v718_v34 = vmax.f32 %v590_v24, 0.0  ;;  %v750_v37 = vmax.f32 %v622_v29, 0.0 }
  0xb1   : > { %1827 = vtanh.f32 %v1117_v36  ;;  %v749_v36 = vmax.f32 %v621_v28, 0.0  ;;  %v770_v40 = vpack.c.bf16 %v654_v31, %v653_v30  ;;  %v786_v43 = vpack.c.bf16 %v686_v33, %v685_v32 }
  0xb2   : > { %v802_v44 = vpack.c.bf16 %v718_v34, %v717_v2  ;;  %v528_v7 = vadd.f32 %v2503_v16, %v396_v55  ;;  %v559_v8 = vadd.f32 %v2503_v16, %v427_v56 }
  0xb4   : > { %v1822_v45 = vpop.eup %1821  ;;  %v687_v22 = vmax.f32 %v559_v8, 0.0 }
  0xb5   : > { %v1824_v48 = vpop.eup %1823  ;;  %1544 = vst [vmem:[%s2419_s6 + $0x210] sm:$0xff] %v1822_v45  ;;  %v1197_v49 = vpop.f32.mrf.mxu2  ;;  %v263_v45 = vld [vmem:[%s2142_s27 + $0xc0] sm:$0xff] }
  0xb6   : > { %v1826_v50 = vpop.eup %1825  ;;  %1481 = vst [vmem:[%s2419_s6 + $0x18] sm:$0xff] %v1824_v48  ;;  %1829 = vtanh.f32 %v1197_v49  ;;  %v1040_v51 = vpop.f32.mrf.mxu0  ;;  %v395_v54 = vmul.f32 %v2484_v0, %v263_v45 }
  0xb7   : > { %v1828_v57 = vpop.eup %1827  ;;  %1576 = vst [vmem:[%s2419_s6 + $0x310] sm:$0xff] %v1826_v50  ;;  %v1277_v58 = vpop.f32.mrf.mxu3  ;;  %1831 = vtanh.f32 %v1040_v51  ;;  %v296_v50 = vld [vmem:[%s2142_s27 + $0x1c8] sm:$0xff]  ;;  %v327_v51 = vld [vmem:[%s2142_s27 + $0x2c0] sm:$0xff] }
  0xb8   : > { %v1120_v59 = vpop.f32.mrf.mxu1  ;;  %1513 = vst [vmem:[%s2419_s6 + $0x118] sm:$0xff] %v1828_v57  ;;  %1833 = vtanh.f32 %v1277_v58  ;;  %1716 = vmatmul.msk.bf16.gmra.mxu0 %vm824_vm1, %v769_v3  ;;  %v359_v57 = vld [vmem:[%s2142_s27 + $0x3c0] sm:$0xff]  ;;  %v360_v58 = vld [vmem:[%s2142_s27 + $0x3c8] sm:$0xff]  ;;  %v459_v60 = vmul.f32 %v2484_v0, %v327_v51  ;;  %v527_v6 = vadd.f32 %v2503_v16, %v395_v54 }
  0xb9   : > { %1835 = vtanh.f32 %v1120_v59  ;;  %1732 = vmatmul.msk.bf16.gmra.mxu1 %vm824_vm1, %v785_v52  ;;  %v328_v52 = vld [vmem:[%s2142_s27 + $0x2c8] sm:$0xff]  ;;  %v428_v59 = vmul.f32 %v2484_v0, %v296_v50  ;;  %v492_v1 = vmul.f32 %v2484_v0, %v360_v58 }
  0xba   : > { %1748 = vmatmul.msk.bf16.gmra.mxu2 %vm824_vm1, %v801_v53  ;;  %v818_v53 = vpack.c.bf16 %v750_v37, %v749_v36  ;;  %v460_v61 = vmul.f32 %v2484_v0, %v328_v52  ;;  %v591_v12 = vadd.f32 %v2503_v16, %v459_v60  ;;  %v266_v36 = vld [vmem:[%s2142_s27 + $0xd8] sm:$0xff]  ;;  %v297_v37 = vld [vmem:[%s2142_s27 + $0x1d0] sm:$0xff] }
  0xbb   : > { %1764 = vmatmul.msk.bf16.gmra.mxu3 %vm824_vm1, %v817_v63  ;;  %v491_v63 = vmul.f32 %v2484_v0, %v359_v57  ;;  %v624_v19 = vadd.f32 %v2503_v16, %v492_v1  ;;  %v398_v46 = vmul.f32 %v2484_v0, %v266_v36  ;;  %v429_v47 = vmul.f32 %v2484_v0, %v297_v37 }
  0xbc   : > { %v1830_v11 = vpop.eup %1829  ;;  %v592_v13 = vadd.f32 %v2503_v16, %v460_v61  ;;  %v719_v24 = vmax.f32 %v591_v12, 0.0 }
  0xbd   : > { %v1832_v14 = vpop.eup %1831  ;;  %1545 = vst [vmem:[%s2419_s6 + $0x218] sm:$0xff] %v1830_v11  ;;  %v1200_v15 = vpop.f32.mrf.mxu2  ;;  %v560_v11 = vadd.f32 %v2503_v16, %v428_v59  ;;  %v623_v18 = vadd.f32 %v2503_v16, %v491_v63  ;;  %v752_v28 = vmax.f32 %v624_v19, 0.0  ;;  %v530_v58 = vadd.f32 %v2503_v16, %v398_v46 }
  0xbe   : > { %v1834_v20 = vpop.eup %1833  ;;  %1482 = vst [vmem:[%s2419_s6 + $0x20] sm:$0xff] %v1832_v14  ;;  %1837 = vtanh.f32 %v1200_v15  ;;  %v1042_v21 = vpop.f32.mrf.mxu0  ;;  %v561_v59 = vadd.f32 %v2503_v16, %v429_v47 }
  0xbf   : > { %v1836_v25 = vpop.eup %1835  ;;  %1577 = vst [vmem:[%s2419_s6 + $0x318] sm:$0xff] %v1834_v20  ;;  %v1280_v26 = vpop.f32.mrf.mxu3  ;;  %1839 = vtanh.f32 %v1042_v21  ;;  %v655_v20 = vmax.f32 %v527_v6, 0.0  ;;  %v656_v21 = vmax.f32 %v528_v7, 0.0  ;;  %v688_v23 = vmax.f32 %v560_v11, 0.0 }
  0xc0   : > { %v1122_v27 = vpop.f32.mrf.mxu1  ;;  %1514 = vst [vmem:[%s2419_s6 + $0x120] sm:$0xff] %v1836_v25  ;;  %1841 = vtanh.f32 %v1280_v26  ;;  %v720_v25 = vmax.f32 %v592_v13, 0.0  ;;  %v689_v11 = vmax.f32 %v561_v59, 0.0 }
  0xc1   : > { %1843 = vtanh.f32 %v1122_v27  ;;  %v751_v27 = vmax.f32 %v623_v18, 0.0  ;;  %v771_v31 = vpack.c.bf16 %v656_v21, %v655_v20  ;;  %v787_v2 = vpack.c.bf16 %v688_v23, %v687_v22 }
  0xc2   : > { %v803_v34 = vpack.c.bf16 %v720_v25, %v719_v24 }
  0xc4   : > { %v1838_v35 = vpop.eup %1837 }
  0xc5   : > { %v1840_v38 = vpop.eup %1839  ;;  %1546 = vst [vmem:[%s2419_s6 + $0x220] sm:$0xff] %v1838_v35  ;;  %v1202_v39 = vpop.f32.mrf.mxu2  ;;  %v265_v35 = vld [vmem:[%s2142_s27 + $0xd0] sm:$0xff] }
  0xc6   : > { %v1842_v41 = vpop.eup %1841  ;;  %1483 = vst [vmem:[%s2419_s6 + $0x28] sm:$0xff] %v1840_v38  ;;  %1845 = vtanh.f32 %v1202_v39  ;;  %v1045_v42 = vpop.f32.mrf.mxu0  ;;  %v397_v45 = vmul.f32 %v2484_v0, %v265_v35 }
  0xc7   : > { %v1844_v48 = vpop.eup %1843  ;;  %1578 = vst [vmem:[%s2419_s6 + $0x320] sm:$0xff] %v1842_v41  ;;  %v1282_v49 = vpop.f32.mrf.mxu3  ;;  %1847 = vtanh.f32 %v1045_v42  ;;  %v298_v41 = vld [vmem:[%s2142_s27 + $0x1d8] sm:$0xff]  ;;  %v329_v42 = vld [vmem:[%s2142_s27 + $0x2d0] sm:$0xff] }
  0xc8   : > { %v1125_v3 = vpop.f32.mrf.mxu1  ;;  %1515 = vst [vmem:[%s2419_s6 + $0x128] sm:$0xff] %v1844_v48  ;;  %1849 = vtanh.f32 %v1282_v49  ;;  %1717 = vmatmul.msk.bf16.gmra.mxu0 %vm824_vm1, %v770_v40  ;;  %v361_v48 = vld [vmem:[%s2142_s27 + $0x3d0] sm:$0xff]  ;;  %v362_v49 = vld [vmem:[%s2142_s27 + $0x3d8] sm:$0xff]  ;;  %v461_v50 = vmul.f32 %v2484_v0, %v329_v42  ;;  %v529_v57 = vadd.f32 %v2503_v16, %v397_v45 }
  0xc9   : > { %1851 = vtanh.f32 %v1125_v3  ;;  %1733 = vmatmul.msk.bf16.gmra.mxu1 %vm824_vm1, %v786_v43  ;;  %v330_v43 = vld [vmem:[%s2142_s27 + $0x2d8] sm:$0xff]  ;;  %v430_v3 = vmul.f32 %v2484_v0, %v298_v41  ;;  %v494_v54 = vmul.f32 %v2484_v0, %v362_v49 }
  0xca   : > { %1749 = vmatmul.msk.bf16.gmra.mxu2 %vm824_vm1, %v802_v44  ;;  %v819_v44 = vpack.c.bf16 %v752_v28, %v751_v27  ;;  %v462_v51 = vmul.f32 %v2484_v0, %v330_v43  ;;  %v593_v63 = vadd.f32 %v2503_v16, %v461_v50  ;;  %v268_v27 = vld [vmem:[%s2142_s27 + $0xe8] sm:$0xff]  ;;  %v299_v28 = vld [vmem:[%s2142_s27 + $0x1e0] sm:$0xff] }
  0xcb   : > { %1765 = vmatmul.msk.bf16.gmra.mxu3 %vm824_vm1, %v818_v53  ;;  %v493_v53 = vmul.f32 %v2484_v0, %v361_v48  ;;  %v626_v8 = vadd.f32 %v2503_v16, %v494_v54  ;;  %v400_v36 = vmul.f32 %v2484_v0, %v268_v27  ;;  %v431_v37 = vmul.f32 %v2484_v0, %v299_v28 }
  0xcc   : > { %v1846_v62 = vpop.eup %1845  ;;  %v594_v1 = vadd.f32 %v2503_v16, %v462_v51  ;;  %v721_v13 = vmax.f32 %v593_v63, 0.0 }
  0xcd   : > { %v1848_v4 = vpop.eup %1847  ;;  %1547 = vst [vmem:[%s2419_s6 + $0x228] sm:$0xff] %v1846_v62  ;;  %v1205_v5 = vpop.f32.mrf.mxu2  ;;  %v562_v62 = vadd.f32 %v2503_v16, %v430_v3  ;;  %v625_v7 = vadd.f32 %v2503_v16, %v493_v53  ;;  %v754_v18 = vmax.f32 %v626_v8, 0.0  ;;  %v532_v49 = vadd.f32 %v2503_v16, %v400_v36 }
  0xce   : > { %v1850_v9 = vpop.eup %1849  ;;  %1484 = vst [vmem:[%s2419_s6 + $0x30] sm:$0xff] %v1848_v4  ;;  %1853 = vtanh.f32 %v1205_v5  ;;  %v1047_v10 = vpop.f32.mrf.mxu0  ;;  %v563_v3 = vadd.f32 %v2503_v16, %v431_v37 }
  0xcf   : > { %v1852_v14 = vpop.eup %1851  ;;  %1579 = vst [vmem:[%s2419_s6 + $0x328] sm:$0xff] %v1850_v9  ;;  %v1285_v15 = vpop.f32.mrf.mxu3  ;;  %1855 = vtanh.f32 %v1047_v10  ;;  %v657_v9 = vmax.f32 %v529_v57, 0.0  ;;  %v658_v10 = vmax.f32 %v530_v58, 0.0  ;;  %v690_v12 = vmax.f32 %v562_v62, 0.0 }
  0xd0   : > { %v1127_v17 = vpop.f32.mrf.mxu1  ;;  %1516 = vst [vmem:[%s2419_s6 + $0x130] sm:$0xff] %v1852_v14  ;;  %1857 = vtanh.f32 %v1285_v15  ;;  %v722_v14 = vmax.f32 %v594_v1, 0.0  ;;  %v691_v62 = vmax.f32 %v563_v3, 0.0 }
  0xd1   : > { %1859 = vtanh.f32 %v1127_v17  ;;  %v753_v17 = vmax.f32 %v625_v7, 0.0  ;;  %v772_v21 = vpack.c.bf16 %v658_v10, %v657_v9  ;;  %v788_v24 = vpack.c.bf16 %v690_v12, %v689_v11 }
  0xd2   : > { %v804_v25 = vpack.c.bf16 %v722_v14, %v721_v13 }
  0xd4   : > { %v1854_v26 = vpop.eup %1853 }
  0xd5   : > { %v1856_v29 = vpop.eup %1855  ;;  %1548 = vst [vmem:[%s2419_s6 + $0x230] sm:$0xff] %v1854_v26  ;;  %v1207_v30 = vpop.f32.mrf.mxu2  ;;  %v267_v26 = vld [vmem:[%s2142_s27 + $0xe0] sm:$0xff] }
  0xd6   : > { %v1858_v32 = vpop.eup %1857  ;;  %1485 = vst [vmem:[%s2419_s6 + $0x38] sm:$0xff] %v1856_v29  ;;  %1861 = vtanh.f32 %v1207_v30  ;;  %v1050_v33 = vpop.f32.mrf.mxu0  ;;  %v399_v35 = vmul.f32 %v2484_v0, %v267_v26 }
  0xd7   : > { %v1860_v38 = vpop.eup %1859  ;;  %1580 = vst [vmem:[%s2419_s6 + $0x330] sm:$0xff] %v1858_v32  ;;  %v1287_v39 = vpop.f32.mrf.mxu3  ;;  %1863 = vtanh.f32 %v1050_v33  ;;  %v300_v32 = vld [vmem:[%s2142_s27 + $0x1e8] sm:$0xff]  ;;  %v331_v33 = vld [vmem:[%s2142_s27 + $0x2e0] sm:$0xff] }
  0xd8   : > { %v1130_v40 = vpop.f32.mrf.mxu1  ;;  %1517 = vst [vmem:[%s2419_s6 + $0x138] sm:$0xff] %v1860_v38  ;;  %1865 = vtanh.f32 %v1287_v39  ;;  %1718 = vmatmul.msk.bf16.gmra.mxu0 %vm824_vm1, %v771_v31  ;;  %v363_v38 = vld [vmem:[%s2142_s27 + $0x3e0] sm:$0xff]  ;;  %v364_v39 = vld [vmem:[%s2142_s27 + $0x3e8] sm:$0xff]  ;;  %v463_v41 = vmul.f32 %v2484_v0, %v331_v33  ;;  %v531_v48 = vadd.f32 %v2503_v16, %v399_v35 }
  0xd9   : > { %1867 = vtanh.f32 %v1130_v40  ;;  %1734 = vmatmul.msk.bf16.gmra.mxu1 %vm824_vm1, %v787_v2  ;;  %v332_v2 = vld [vmem:[%s2142_s27 + $0x2e8] sm:$0xff]  ;;  %v432_v40 = vmul.f32 %v2484_v0, %v300_v32  ;;  %v496_v45 = vmul.f32 %v2484_v0, %v364_v39 }
  0xda   : > { %1750 = vmatmul.msk.bf16.gmra.mxu2 %vm824_vm1, %v803_v34  ;;  %v820_v34 = vpack.c.bf16 %v754_v18, %v753_v17  ;;  %v464_v42 = vmul.f32 %v2484_v0, %v332_v2  ;;  %v595_v53 = vadd.f32 %v2503_v16, %v463_v41  ;;  %v270_v17 = vld [vmem:[%s2142_s27 + $0xf8] sm:$0xff]  ;;  %v301_v18 = vld [vmem:[%s2142_s27 + $0x1f0] sm:$0xff] }
  0xdb   : > { %1766 = vmatmul.msk.bf16.gmra.mxu3 %vm824_vm1, %v819_v44  ;;  %v495_v44 = vmul.f32 %v2484_v0, %v363_v38  ;;  %v628_v59 = vadd.f32 %v2503_v16, %v496_v45  ;;  %v402_v27 = vmul.f32 %v2484_v0, %v270_v17  ;;  %v433_v28 = vmul.f32 %v2484_v0, %v301_v18 }
  0xdc   : > { %v1862_v52 = vpop.eup %1861  ;;  %v596_v54 = vadd.f32 %v2503_v16, %v464_v42  ;;  %v723_v1 = vmax.f32 %v595_v53, 0.0 }
  0xdd   : > { %v1864_v55 = vpop.eup %1863  ;;  %1549 = vst [vmem:[%s2419_s6 + $0x238] sm:$0xff] %v1862_v52  ;;  %v1210_v56 = vpop.f32.mrf.mxu2  ;;  %v564_v52 = vadd.f32 %v2503_v16, %v432_v40  ;;  %v627_v58 = vadd.f32 %v2503_v16, %v495_v44  ;;  %v756_v7 = vmax.f32 %v628_v59, 0.0  ;;  %v534_v39 = vadd.f32 %v2503_v16, %v402_v27 }
  0xde   : > { %v1866_v60 = vpop.eup %1865  ;;  %1486 = vst [vmem:[%s2419_s6 + $0x40] sm:$0xff] %v1864_v55  ;;  %1869 = vtanh.f32 %v1210_v56  ;;  %v1052_v61 = vpop.f32.mrf.mxu0  ;;  %v565_v40 = vadd.f32 %v2503_v16, %v433_v28 }
  0xdf   : > { %v1868_v4 = vpop.eup %1867  ;;  %1581 = vst [vmem:[%s2419_s6 + $0x338] sm:$0xff] %v1866_v60  ;;  %v1290_v5 = vpop.f32.mrf.mxu3  ;;  %1871 = vtanh.f32 %v1052_v61  ;;  %v659_v60 = vmax.f32 %v531_v48, 0.0  ;;  %v660_v61 = vmax.f32 %v532_v49, 0.0  ;;  %v692_v63 = vmax.f32 %v564_v52, 0.0 }
  0xe0   : > { %v1132_v6 = vpop.f32.mrf.mxu1  ;;  %1518 = vst [vmem:[%s2419_s6 + $0x140] sm:$0xff] %v1868_v4  ;;  %1873 = vtanh.f32 %v1290_v5  ;;  %v724_v4 = vmax.f32 %v596_v54, 0.0 }
  0xe1   : > { %1875 = vtanh.f32 %v1132_v6  ;;  %v755_v6 = vmax.f32 %v627_v58, 0.0  ;;  %v773_v10 = vpack.c.bf16 %v660_v61, %v659_v60  ;;  %v789_v13 = vpack.c.bf16 %v692_v63, %v691_v62 }
  0xe2   : > { %v805_v14 = vpack.c.bf16 %v724_v4, %v723_v1 }
  0xe4   : > { %v1870_v15 = vpop.eup %1869 }
  0xe5   : > { %v1872_v19 = vpop.eup %1871  ;;  %1550 = vst [vmem:[%s2419_s6 + $0x240] sm:$0xff] %v1870_v15  ;;  %v1212_v20 = vpop.f32.mrf.mxu2  ;;  %v269_v15 = vld [vmem:[%s2142_s27 + $0xf0] sm:$0xff] }
  0xe6   : > { %v1874_v22 = vpop.eup %1873  ;;  %1487 = vst [vmem:[%s2419_s6 + $0x48] sm:$0xff] %v1872_v19  ;;  %1877 = vtanh.f32 %v1212_v20  ;;  %v1055_v23 = vpop.f32.mrf.mxu0  ;;  %v401_v26 = vmul.f32 %v2484_v0, %v269_v15 }
  0xe7   : > { %v1876_v29 = vpop.eup %1875  ;;  %1582 = vst [vmem:[%s2419_s6 + $0x340] sm:$0xff] %v1874_v22  ;;  %v1292_v30 = vpop.f32.mrf.mxu3  ;;  %1879 = vtanh.f32 %v1055_v23  ;;  %v302_v22 = vld [vmem:[%s2142_s27 + $0x1f8] sm:$0xff]  ;;  %v333_v23 = vld [vmem:[%s2142_s27 + $0x2f0] sm:$0xff] }
  0xe8   : > { %v1135_v31 = vpop.f32.mrf.mxu1  ;;  %1519 = vst [vmem:[%s2419_s6 + $0x148] sm:$0xff] %v1876_v29  ;;  %1881 = vtanh.f32 %v1292_v30  ;;  %1719 = vmatmul.msk.bf16.gmra.mxu0 %vm824_vm1, %v772_v21  ;;  %v365_v29 = vld [vmem:[%s2142_s27 + $0x3f0] sm:$0xff]  ;;  %v366_v30 = vld [vmem:[%s2142_s27 + $0x3f8] sm:$0xff]  ;;  %v465_v32 = vmul.f32 %v2484_v0, %v333_v23  ;;  %v533_v38 = vadd.f32 %v2503_v16, %v401_v26 }
  0xe9   : > { %1883 = vtanh.f32 %v1135_v31  ;;  %1735 = vmatmul.msk.bf16.gmra.mxu1 %vm824_vm1, %v788_v24  ;;  %v334_v24 = vld [vmem:[%s2142_s27 + $0x2f8] sm:$0xff]  ;;  %v434_v31 = vmul.f32 %v2484_v0, %v302_v22  ;;  %v498_v35 = vmul.f32 %v2484_v0, %v366_v30 }
  0xea   : > { %1751 = vmatmul.msk.bf16.gmra.mxu2 %vm824_vm1, %v804_v25  ;;  %v821_v25 = vpack.c.bf16 %v756_v7, %v755_v6  ;;  %v466_v33 = vmul.f32 %v2484_v0, %v334_v24  ;;  %v597_v44 = vadd.f32 %v2503_v16, %v465_v32  ;;  %v661_v3 = vmax.f32 %v533_v38, 0.0 }
  0xeb   : > { %1767 = vmatmul.msk.bf16.gmra.mxu3 %vm824_vm1, %v820_v34  ;;  %v497_v34 = vmul.f32 %v2484_v0, %v365_v29  ;;  %v630_v49 = vadd.f32 %v2503_v16, %v498_v35 }
  0xec   : > { %v1878_v43 = vpop.eup %1877  ;;  %v598_v0 = vadd.f32 %v2503_v16, %v466_v33  ;;  %v725_v53 = vmax.f32 %v597_v44, 0.0 }
  0xed   : > { %v1880_v46 = vpop.eup %1879  ;;  %1551 = vst [vmem:[%s2419_s6 + $0x248] sm:$0xff] %v1878_v43  ;;  %v1215_v47 = vpop.f32.mrf.mxu2  ;;  %v566_v43 = vadd.f32 %v2503_v16, %v434_v31  ;;  %v629_v48 = vadd.f32 %v2503_v16, %v497_v34 }
  0xee   : > { %v1882_v50 = vpop.eup %1881  ;;  %1488 = vst [vmem:[%s2419_s6 + $0x50] sm:$0xff] %v1880_v46  ;;  %1885 = vtanh.f32 %v1215_v47  ;;  %v1057_v51 = vpop.f32.mrf.mxu0  ;;  %v726_v54 = vmax.f32 %v598_v0, 0.0 }
  0xef   : > { %v1884_v55 = vpop.eup %1883  ;;  %1583 = vst [vmem:[%s2419_s6 + $0x348] sm:$0xff] %v1882_v50  ;;  %v1295_v56 = vpop.f32.mrf.mxu3  ;;  %1887 = vtanh.f32 %v1057_v51  ;;  %v662_v50 = vmax.f32 %v534_v39, 0.0  ;;  %v693_v51 = vmax.f32 %v565_v40, 0.0  ;;  %v694_v52 = vmax.f32 %v566_v43, 0.0 }
  0xf0   : > { %v1137_v57 = vpop.f32.mrf.mxu1  ;;  %1520 = vst [vmem:[%s2419_s6 + $0x150] sm:$0xff] %v1884_v55  ;;  %1889 = vtanh.f32 %v1295_v56  ;;  %v757_v56 = vmax.f32 %v629_v48, 0.0  ;;  %v806_v63 = vpack.c.bf16 %v726_v54, %v725_v53 }
  0xf1   : > { %1891 = vtanh.f32 %v1137_v57  ;;  %v758_v57 = vmax.f32 %v630_v49, 0.0  ;;  %v774_v60 = vpack.c.bf16 %v662_v50, %v661_v3  ;;  %v790_v62 = vpack.c.bf16 %v694_v52, %v693_v51 }
  0xf3   : > { %v822_v6 = vpack.c.bf16 %v758_v57, %v757_v56 }
  0xf4   : > { %v1886_v5 = vpop.eup %1885 }
  0xf5   : > { %v1888_v8 = vpop.eup %1887  ;;  %1552 = vst [vmem:[%s2419_s6 + $0x250] sm:$0xff] %v1886_v5  ;;  %v1217_v9 = vpop.f32.mrf.mxu2 }
  0xf6   : > { %v1890_v11 = vpop.eup %1889  ;;  %1489 = vst [vmem:[%s2419_s6 + $0x58] sm:$0xff] %v1888_v8  ;;  %1893 = vtanh.f32 %v1217_v9  ;;  %v1060_v12 = vpop.f32.mrf.mxu0 }
  0xf7   : > { %v1892_v19 = vpop.eup %1891  ;;  %1584 = vst [vmem:[%s2419_s6 + $0x350] sm:$0xff] %v1890_v11  ;;  %v1297_v20 = vpop.f32.mrf.mxu3  ;;  %1895 = vtanh.f32 %v1060_v12 }
  0xf8   : > { %v1140_v21 = vpop.f32.mrf.mxu1  ;;  %1521 = vst [vmem:[%s2419_s6 + $0x158] sm:$0xff] %v1892_v19  ;;  %1897 = vtanh.f32 %v1297_v20  ;;  %1720 = vmatmul.msk.bf16.gmra.mxu0 %vm824_vm1, %v773_v10 }
  0xf9   : > { %1899 = vtanh.f32 %v1140_v21  ;;  %1736 = vmatmul.msk.bf16.gmra.mxu1 %vm824_vm1, %v789_v13 }
  0xfa   : > { %1752 = vmatmul.msk.bf16.gmra.mxu2 %vm824_vm1, %v805_v14 }
  0xfb   : > { %1768 = vmatmul.msk.bf16.gmra.mxu3 %vm824_vm1, %v821_v25 }
  0xfc   : > { %v1894_v2 = vpop.eup %1893 }
  0xfd   : > { %v1896_v36 = vpop.eup %1895  ;;  %1553 = vst [vmem:[%s2419_s6 + $0x258] sm:$0xff] %v1894_v2  ;;  %v1220_v37 = vpop.f32.mrf.mxu2 }
  0xfe   : > { %v1898_v41 = vpop.eup %1897  ;;  %1490 = vst [vmem:[%s2419_s6 + $0x60] sm:$0xff] %v1896_v36  ;;  %1901 = vtanh.f32 %v1220_v37  ;;  %v1062_v42 = vpop.f32.mrf.mxu0 }
  0xff   : > { %v1900_v45 = vpop.eup %1899  ;;  %1585 = vst [vmem:[%s2419_s6 + $0x358] sm:$0xff] %v1898_v41  ;;  %v1300_v46 = vpop.f32.mrf.mxu3  ;;  %1903 = vtanh.f32 %v1062_v42 }
 0x100   : > { %v1142_v47 = vpop.f32.mrf.mxu1  ;;  %1522 = vst [vmem:[%s2419_s6 + $0x160] sm:$0xff] %v1900_v45  ;;  %1905 = vtanh.f32 %v1300_v46 }
 0x101   : > { %1907 = vtanh.f32 %v1142_v47 }
 0x104   : > { %v1902_v55 = vpop.eup %1901 }
 0x105   : > { %v1904_v58 = vpop.eup %1903  ;;  %1554 = vst [vmem:[%s2419_s6 + $0x260] sm:$0xff] %v1902_v55  ;;  %v1222_v59 = vpop.f32.mrf.mxu2 }
 0x106   : > { %v1906_v61 = vpop.eup %1905  ;;  %1491 = vst [vmem:[%s2419_s6 + $0x68] sm:$0xff] %v1904_v58  ;;  %1909 = vtanh.f32 %v1222_v59  ;;  %v1065_v16 = vpop.f32.mrf.mxu0 }
 0x107   : > { %v1908_v1 = vpop.eup %1907  ;;  %1586 = vst [vmem:[%s2419_s6 + $0x360] sm:$0xff] %v1906_v61  ;;  %v1302_v4 = vpop.f32.mrf.mxu3  ;;  %1911 = vtanh.f32 %v1065_v16 }
 0x108   : > { %v1145_v5 = vpop.f32.mrf.mxu1  ;;  %1523 = vst [vmem:[%s2419_s6 + $0x168] sm:$0xff] %v1908_v1  ;;  %1913 = vtanh.f32 %v1302_v4  ;;  %1721 = vmatmul.msk.bf16.gmra.mxu0 %vm824_vm1, %v774_v60 }
 0x109   : > { %1915 = vtanh.f32 %v1145_v5  ;;  %1737 = vmatmul.msk.bf16.gmra.mxu1 %vm824_vm1, %v790_v62 }
 0x10a   : > { %1753 = vmatmul.msk.bf16.gmra.mxu2 %vm824_vm1, %v806_v63 }
 0x10b   : > { %1769 = vmatmul.msk.bf16.gmra.mxu3 %vm824_vm1, %v822_v6 }
 0x10c   : > { %v1910_v7 = vpop.eup %1909 }
 0x10d   : > { %v1912_v8 = vpop.eup %1911  ;;  %1555 = vst [vmem:[%s2419_s6 + $0x268] sm:$0xff] %v1910_v7  ;;  %v1225_v9 = vpop.f32.mrf.mxu2 }
 0x10e   : > { %v1914_v10 = vpop.eup %1913  ;;  %1492 = vst [vmem:[%s2419_s6 + $0x70] sm:$0xff] %v1912_v8  ;;  %1917 = vtanh.f32 %v1225_v9  ;;  %v1067_v11 = vpop.f32.mrf.mxu0 }
 0x10f   : > { %v1916_v12 = vpop.eup %1915  ;;  %1587 = vst [vmem:[%s2419_s6 + $0x368] sm:$0xff] %v1914_v10  ;;  %v1305_v13 = vpop.f32.mrf.mxu3  ;;  %1919 = vtanh.f32 %v1067_v11 }
 0x110   : > { %v1147_v14 = vpop.f32.mrf.mxu1  ;;  %1524 = vst [vmem:[%s2419_s6 + $0x170] sm:$0xff] %v1916_v12  ;;  %1921 = vtanh.f32 %v1305_v13 }
 0x111   : > { %1923 = vtanh.f32 %v1147_v14 }
 0x114   : > { %v1918_v15 = vpop.eup %1917 }
 0x115   : > { %v1920_v17 = vpop.eup %1919  ;;  %1556 = vst [vmem:[%s2419_s6 + $0x270] sm:$0xff] %v1918_v15  ;;  %v1227_v18 = vpop.f32.mrf.mxu2 }
 0x116   : > { %v1922_v19 = vpop.eup %1921  ;;  %1493 = vst [vmem:[%s2419_s6 + $0x78] sm:$0xff] %v1920_v17  ;;  %1925 = vtanh.f32 %v1227_v18  ;;  %v1070_v20 = vpop.f32.mrf.mxu0 }
 0x117   : > { %v1924_v21 = vpop.eup %1923  ;;  %1588 = vst [vmem:[%s2419_s6 + $0x370] sm:$0xff] %v1922_v19  ;;  %v1307_v22 = vpop.f32.mrf.mxu3  ;;  %1927 = vtanh.f32 %v1070_v20 }
 0x118   : > { %v1150_v23 = vpop.f32.mrf.mxu1  ;;  %1525 = vst [vmem:[%s2419_s6 + $0x178] sm:$0xff] %v1924_v21  ;;  %1929 = vtanh.f32 %v1307_v22 }
 0x119   : > { %1931 = vtanh.f32 %v1150_v23 }
 0x11c   : > { %v1926_v24 = vpop.eup %1925 }
 0x11d   : > { %v1928_v25 = vpop.eup %1927  ;;  %1557 = vst [vmem:[%s2419_s6 + $0x278] sm:$0xff] %v1926_v24  ;;  %v1230_v26 = vpop.f32.mrf.mxu2 }
 0x11e   : > { %v1930_v27 = vpop.eup %1929  ;;  %1494 = vst [vmem:[%s2419_s6 + $0x80] sm:$0xff] %v1928_v25  ;;  %1933 = vtanh.f32 %v1230_v26  ;;  %v1072_v28 = vpop.f32.mrf.mxu0 }
 0x11f   : > { %v1932_v29 = vpop.eup %1931  ;;  %1589 = vst [vmem:[%s2419_s6 + $0x378] sm:$0xff] %v1930_v27  ;;  %v1310_v30 = vpop.f32.mrf.mxu3  ;;  %1935 = vtanh.f32 %v1072_v28 }
 0x120   : > { %v1152_v31 = vpop.f32.mrf.mxu1  ;;  %1526 = vst [vmem:[%s2419_s6 + $0x180] sm:$0xff] %v1932_v29  ;;  %1937 = vtanh.f32 %v1310_v30 }
 0x121   : > { %1939 = vtanh.f32 %v1152_v31 }
 0x124   : > { %v1934_v32 = vpop.eup %1933 }
 0x125   : > { %v1936_v33 = vpop.eup %1935  ;;  %1558 = vst [vmem:[%s2419_s6 + $0x280] sm:$0xff] %v1934_v32  ;;  %v1232_v2 = vpop.f32.mrf.mxu2 }
 0x126   : > { %v1938_v34 = vpop.eup %1937  ;;  %1495 = vst [vmem:[%s2419_s6 + $0x88] sm:$0xff] %v1936_v33  ;;  %1941 = vtanh.f32 %v1232_v2  ;;  %v1075_v35 = vpop.f32.mrf.mxu0 }
 0x127   : > { %v1940_v36 = vpop.eup %1939  ;;  %1590 = vst [vmem:[%s2419_s6 + $0x380] sm:$0xff] %v1938_v34  ;;  %v1312_v37 = vpop.f32.mrf.mxu3  ;;  %1943 = vtanh.f32 %v1075_v35 }
 0x128   : > { %v1155_v38 = vpop.f32.mrf.mxu1  ;;  %1527 = vst [vmem:[%s2419_s6 + $0x188] sm:$0xff] %v1940_v36  ;;  %1945 = vtanh.f32 %v1312_v37 }
 0x129   : > { %1947 = vtanh.f32 %v1155_v38 }
 0x12c   : > { %v1942_v39 = vpop.eup %1941 }
 0x12d   : > { %v1944_v40 = vpop.eup %1943  ;;  %1559 = vst [vmem:[%s2419_s6 + $0x288] sm:$0xff] %v1942_v39  ;;  %v1235_v41 = vpop.f32.mrf.mxu2 }
 0x12e   : > { %v1946_v42 = vpop.eup %1945  ;;  %1496 = vst [vmem:[%s2419_s6 + $0x90] sm:$0xff] %v1944_v40  ;;  %1949 = vtanh.f32 %v1235_v41  ;;  %v1077_v43 = vpop.f32.mrf.mxu0 }
 0x12f   : > { %v1948_v44 = vpop.eup %1947  ;;  %1591 = vst [vmem:[%s2419_s6 + $0x388] sm:$0xff] %v1946_v42  ;;  %v1315_v0 = vpop.f32.mrf.mxu3  ;;  %1951 = vtanh.f32 %v1077_v43 }
 0x130   : > { %v1157_v45 = vpop.f32.mrf.mxu1  ;;  %1528 = vst [vmem:[%s2419_s6 + $0x190] sm:$0xff] %v1948_v44  ;;  %1953 = vtanh.f32 %v1315_v0 }
 0x131   : > { %1955 = vtanh.f32 %v1157_v45 }
 0x134   : > { %v1950_v46 = vpop.eup %1949 }
 0x135   : > { %v1952_v47 = vpop.eup %1951  ;;  %1560 = vst [vmem:[%s2419_s6 + $0x290] sm:$0xff] %v1950_v46  ;;  %v1237_v48 = vpop.f32.mrf.mxu2 }
 0x136   : > { %v1954_v49 = vpop.eup %1953  ;;  %1497 = vst [vmem:[%s2419_s6 + $0x98] sm:$0xff] %v1952_v47  ;;  %1957 = vtanh.f32 %v1237_v48  ;;  %v1080_v3 = vpop.f32.mrf.mxu0 }
 0x137   : > { %v1956_v50 = vpop.eup %1955  ;;  %1592 = vst [vmem:[%s2419_s6 + $0x390] sm:$0xff] %v1954_v49  ;;  %v1317_v51 = vpop.f32.mrf.mxu3  ;;  %1959 = vtanh.f32 %v1080_v3 }
 0x138   : > { %v1160_v52 = vpop.f32.mrf.mxu1  ;;  %1529 = vst [vmem:[%s2419_s6 + $0x198] sm:$0xff] %v1956_v50  ;;  %1961 = vtanh.f32 %v1317_v51 }
 0x139   : > { %1963 = vtanh.f32 %v1160_v52 }
 0x13c   : > { %v1958_v53 = vpop.eup %1957 }
 0x13d   : > { %v1960_v54 = vpop.eup %1959  ;;  %1561 = vst [vmem:[%s2419_s6 + $0x298] sm:$0xff] %v1958_v53  ;;  %v1240_v55 = vpop.f32.mrf.mxu2 }
 0x13e   : > { %v1962_v56 = vpop.eup %1961  ;;  %1498 = vst [vmem:[%s2419_s6 + $0xa0] sm:$0xff] %v1960_v54  ;;  %1965 = vtanh.f32 %v1240_v55  ;;  %v1082_v57 = vpop.f32.mrf.mxu0 }
 0x13f   : > { %v1964_v58 = vpop.eup %1963  ;;  %1593 = vst [vmem:[%s2419_s6 + $0x398] sm:$0xff] %v1962_v56  ;;  %v1320_v59 = vpop.f32.mrf.mxu3  ;;  %1967 = vtanh.f32 %v1082_v57 }
 0x140   : > { %v1162_v60 = vpop.f32.mrf.mxu1  ;;  %1530 = vst [vmem:[%s2419_s6 + $0x1a0] sm:$0xff] %v1964_v58  ;;  %1969 = vtanh.f32 %v1320_v59 }
 0x141   : > { %1971 = vtanh.f32 %v1162_v60 }
 0x144   : > { %v1966_v61 = vpop.eup %1965 }
 0x145   : > { %v1968_v16 = vpop.eup %1967  ;;  %1562 = vst [vmem:[%s2419_s6 + $0x2a0] sm:$0xff] %v1966_v61  ;;  %v1242_v62 = vpop.f32.mrf.mxu2 }
 0x146   : > { %v1970_v63 = vpop.eup %1969  ;;  %1499 = vst [vmem:[%s2419_s6 + $0xa8] sm:$0xff] %v1968_v16  ;;  %1973 = vtanh.f32 %v1242_v62  ;;  %v1085_v1 = vpop.f32.mrf.mxu0 }
 0x147   : > { %v1972_v4 = vpop.eup %1971  ;;  %1594 = vst [vmem:[%s2419_s6 + $0x3a0] sm:$0xff] %v1970_v63  ;;  %v1322_v5 = vpop.f32.mrf.mxu3  ;;  %1975 = vtanh.f32 %v1085_v1 }
 0x148   : > { %v1165_v6 = vpop.f32.mrf.mxu1  ;;  %1531 = vst [vmem:[%s2419_s6 + $0x1a8] sm:$0xff] %v1972_v4  ;;  %1977 = vtanh.f32 %v1322_v5 }
 0x149   : > { %1979 = vtanh.f32 %v1165_v6 }
 0x14c   : > { %v1974_v7 = vpop.eup %1973 }
 0x14d   : > { %v1976_v8 = vpop.eup %1975  ;;  %1563 = vst [vmem:[%s2419_s6 + $0x2a8] sm:$0xff] %v1974_v7  ;;  %v1245_v9 = vpop.f32.mrf.mxu2 }
 0x14e   : > { %v1978_v10 = vpop.eup %1977  ;;  %1500 = vst [vmem:[%s2419_s6 + $0xb0] sm:$0xff] %v1976_v8  ;;  %1981 = vtanh.f32 %v1245_v9  ;;  %v1087_v11 = vpop.f32.mrf.mxu0 }
 0x14f   : > { %v1980_v12 = vpop.eup %1979  ;;  %1595 = vst [vmem:[%s2419_s6 + $0x3a8] sm:$0xff] %v1978_v10  ;;  %v1325_v13 = vpop.f32.mrf.mxu3  ;;  %1983 = vtanh.f32 %v1087_v11 }
 0x150   : > { %v1167_v14 = vpop.f32.mrf.mxu1  ;;  %1532 = vst [vmem:[%s2419_s6 + $0x1b0] sm:$0xff] %v1980_v12  ;;  %1985 = vtanh.f32 %v1325_v13 }
 0x151   : > { %1987 = vtanh.f32 %v1167_v14 }
 0x154   : > { %v1982_v15 = vpop.eup %1981 }
 0x155   : > { %v1984_v17 = vpop.eup %1983  ;;  %1564 = vst [vmem:[%s2419_s6 + $0x2b0] sm:$0xff] %v1982_v15  ;;  %v1247_v18 = vpop.f32.mrf.mxu2 }
 0x156   : > { %v1986_v19 = vpop.eup %1985  ;;  %1501 = vst [vmem:[%s2419_s6 + $0xb8] sm:$0xff] %v1984_v17  ;;  %1989 = vtanh.f32 %v1247_v18  ;;  %v1090_v20 = vpop.f32.mrf.mxu0 }
 0x157   : > { %v1988_v21 = vpop.eup %1987  ;;  %1596 = vst [vmem:[%s2419_s6 + $0x3b0] sm:$0xff] %v1986_v19  ;;  %v1327_v22 = vpop.f32.mrf.mxu3  ;;  %1991 = vtanh.f32 %v1090_v20 }
 0x158   : > { %v1170_v23 = vpop.f32.mrf.mxu1  ;;  %1533 = vst [vmem:[%s2419_s6 + $0x1b8] sm:$0xff] %v1988_v21  ;;  %1993 = vtanh.f32 %v1327_v22 }
 0x159   : > { %1995 = vtanh.f32 %v1170_v23 }
 0x15c   : > { %v1990_v24 = vpop.eup %1989 }
 0x15d   : > { %v1992_v25 = vpop.eup %1991  ;;  %1565 = vst [vmem:[%s2419_s6 + $0x2b8] sm:$0xff] %v1990_v24  ;;  %v1250_v26 = vpop.f32.mrf.mxu2 }
 0x15e   : > { %v1994_v27 = vpop.eup %1993  ;;  %1502 = vst [vmem:[%s2419_s6 + $0xc0] sm:$0xff] %v1992_v25  ;;  %1997 = vtanh.f32 %v1250_v26  ;;  %v1092_v28 = vpop.f32.mrf.mxu0 }
 0x15f   : > { %v1996_v29 = vpop.eup %1995  ;;  %1597 = vst [vmem:[%s2419_s6 + $0x3b8] sm:$0xff] %v1994_v27  ;;  %v1330_v30 = vpop.f32.mrf.mxu3  ;;  %1999 = vtanh.f32 %v1092_v28 }
 0x160   : > { %v1172_v31 = vpop.f32.mrf.mxu1  ;;  %1534 = vst [vmem:[%s2419_s6 + $0x1c0] sm:$0xff] %v1996_v29  ;;  %2001 = vtanh.f32 %v1330_v30 }
 0x161   : > { %2003 = vtanh.f32 %v1172_v31 }
 0x164   : > { %v1998_v32 = vpop.eup %1997 }
 0x165   : > { %v2000_v33 = vpop.eup %1999  ;;  %1566 = vst [vmem:[%s2419_s6 + $0x2c0] sm:$0xff] %v1998_v32  ;;  %v1252_v2 = vpop.f32.mrf.mxu2 }
 0x166   : > { %v2002_v34 = vpop.eup %2001  ;;  %1503 = vst [vmem:[%s2419_s6 + $0xc8] sm:$0xff] %v2000_v33  ;;  %2005 = vtanh.f32 %v1252_v2  ;;  %v1095_v35 = vpop.f32.mrf.mxu0 }
 0x167   : > { %v2004_v36 = vpop.eup %2003  ;;  %1598 = vst [vmem:[%s2419_s6 + $0x3c0] sm:$0xff] %v2002_v34  ;;  %v1332_v37 = vpop.f32.mrf.mxu3  ;;  %2007 = vtanh.f32 %v1095_v35 }
 0x168   : > { %v1175_v38 = vpop.f32.mrf.mxu1  ;;  %1535 = vst [vmem:[%s2419_s6 + $0x1c8] sm:$0xff] %v2004_v36  ;;  %2009 = vtanh.f32 %v1332_v37 }
 0x169   : > { %2011 = vtanh.f32 %v1175_v38 }
 0x16c   : > { %v2006_v39 = vpop.eup %2005 }
 0x16d   : > { %v2008_v40 = vpop.eup %2007  ;;  %1567 = vst [vmem:[%s2419_s6 + $0x2c8] sm:$0xff] %v2006_v39  ;;  %v1255_v41 = vpop.f32.mrf.mxu2 }
 0x16e   : > { %v2010_v42 = vpop.eup %2009  ;;  %1504 = vst [vmem:[%s2419_s6 + $0xd0] sm:$0xff] %v2008_v40  ;;  %2013 = vtanh.f32 %v1255_v41  ;;  %v1097_v43 = vpop.f32.mrf.mxu0 }
 0x16f   : > { %v2012_v44 = vpop.eup %2011  ;;  %1599 = vst [vmem:[%s2419_s6 + $0x3c8] sm:$0xff] %v2010_v42  ;;  %v1335_v0 = vpop.f32.mrf.mxu3  ;;  %2015 = vtanh.f32 %v1097_v43 }
 0x170   : > { %v1177_v45 = vpop.f32.mrf.mxu1  ;;  %1536 = vst [vmem:[%s2419_s6 + $0x1d0] sm:$0xff] %v2012_v44  ;;  %2017 = vtanh.f32 %v1335_v0 }
 0x171   : > { %2019 = vtanh.f32 %v1177_v45 }
 0x174   : > { %v2014_v46 = vpop.eup %2013 }
 0x175   : > { %v2016_v47 = vpop.eup %2015  ;;  %1568 = vst [vmem:[%s2419_s6 + $0x2d0] sm:$0xff] %v2014_v46  ;;  %v1257_v48 = vpop.f32.mrf.mxu2 }
 0x176   : > { %v2018_v49 = vpop.eup %2017  ;;  %1505 = vst [vmem:[%s2419_s6 + $0xd8] sm:$0xff] %v2016_v47  ;;  %2021 = vtanh.f32 %v1257_v48  ;;  %v1100_v3 = vpop.f32.mrf.mxu0 }
 0x177   : > { %v2020_v50 = vpop.eup %2019  ;;  %1600 = vst [vmem:[%s2419_s6 + $0x3d0] sm:$0xff] %v2018_v49  ;;  %v1337_v51 = vpop.f32.mrf.mxu3  ;;  %2023 = vtanh.f32 %v1100_v3 }
 0x178   : > { %v1180_v52 = vpop.f32.mrf.mxu1  ;;  %1537 = vst [vmem:[%s2419_s6 + $0x1d8] sm:$0xff] %v2020_v50  ;;  %2025 = vtanh.f32 %v1337_v51 }
 0x179   : > { %2027 = vtanh.f32 %v1180_v52 }
 0x17c   : > { %v2022_v53 = vpop.eup %2021 }
 0x17d   : > { %v2024_v54 = vpop.eup %2023  ;;  %1569 = vst [vmem:[%s2419_s6 + $0x2d8] sm:$0xff] %v2022_v53  ;;  %v1260_v55 = vpop.f32.mrf.mxu2 }
 0x17e   : > { %v2026_v56 = vpop.eup %2025  ;;  %1506 = vst [vmem:[%s2419_s6 + $0xe0] sm:$0xff] %v2024_v54  ;;  %2029 = vtanh.f32 %v1260_v55  ;;  %v1102_v57 = vpop.f32.mrf.mxu0 }
 0x17f   : > { %v2028_v58 = vpop.eup %2027  ;;  %1601 = vst [vmem:[%s2419_s6 + $0x3d8] sm:$0xff] %v2026_v56  ;;  %v1340_v59 = vpop.f32.mrf.mxu3  ;;  %2031 = vtanh.f32 %v1102_v57 }
 0x180   : > { %v1182_v60 = vpop.f32.mrf.mxu1  ;;  %1538 = vst [vmem:[%s2419_s6 + $0x1e0] sm:$0xff] %v2028_v58  ;;  %2033 = vtanh.f32 %v1340_v59 }
 0x181   : > { %2035 = vtanh.f32 %v1182_v60 }
 0x184   : > { %v2030_v61 = vpop.eup %2029 }
 0x185   : > { %v2032_v16 = vpop.eup %2031  ;;  %1570 = vst [vmem:[%s2419_s6 + $0x2e0] sm:$0xff] %v2030_v61  ;;  %v1262_v62 = vpop.f32.mrf.mxu2 }
 0x186   : > { %v2034_v63 = vpop.eup %2033  ;;  %1507 = vst [vmem:[%s2419_s6 + $0xe8] sm:$0xff] %v2032_v16  ;;  %2037 = vtanh.f32 %v1262_v62  ;;  %v1105_v1 = vpop.f32.mrf.mxu0 }
 0x187   : > { %v2036_v4 = vpop.eup %2035  ;;  %1602 = vst [vmem:[%s2419_s6 + $0x3e0] sm:$0xff] %v2034_v63  ;;  %v1342_v5 = vpop.f32.mrf.mxu3  ;;  %2039 = vtanh.f32 %v1105_v1 }
 0x188   : > { %v1185_v6 = vpop.f32.mrf.mxu1  ;;  %1539 = vst [vmem:[%s2419_s6 + $0x1e8] sm:$0xff] %v2036_v4  ;;  %2041 = vtanh.f32 %v1342_v5 }
 0x189   : > { %2043 = vtanh.f32 %v1185_v6 }
 0x18c   : > { %v2038_v7 = vpop.eup %2037 }
 0x18d   : > { %v2040_v8 = vpop.eup %2039  ;;  %1571 = vst [vmem:[%s2419_s6 + $0x2e8] sm:$0xff] %v2038_v7  ;;  %v1265_v9 = vpop.f32.mrf.mxu2 }
 0x18e   : > { %v2042_v10 = vpop.eup %2041  ;;  %1508 = vst [vmem:[%s2419_s6 + $0xf0] sm:$0xff] %v2040_v8  ;;  %2045 = vtanh.f32 %v1265_v9  ;;  %v1107_v11 = vpop.f32.mrf.mxu0 }
 0x18f   : > { %v2044_v12 = vpop.eup %2043  ;;  %1603 = vst [vmem:[%s2419_s6 + $0x3e8] sm:$0xff] %v2042_v10  ;;  %v1345_v13 = vpop.f32.mrf.mxu3  ;;  %2047 = vtanh.f32 %v1107_v11 }
 0x190   : > { %v1187_v14 = vpop.f32.mrf.mxu1  ;;  %1540 = vst [vmem:[%s2419_s6 + $0x1f0] sm:$0xff] %v2044_v12  ;;  %2049 = vtanh.f32 %v1345_v13 }
 0x191   : > { %2051 = vtanh.f32 %v1187_v14 }
 0x194   : > { %v2046_v15 = vpop.eup %2045 }
 0x195   : > { %v2048_v17 = vpop.eup %2047  ;;  %1572 = vst [vmem:[%s2419_s6 + $0x2f0] sm:$0xff] %v2046_v15  ;;  %v1267_v18 = vpop.f32.mrf.mxu2 }
 0x196   : > { %v2050_v19 = vpop.eup %2049  ;;  %1509 = vst [vmem:[%s2419_s6 + $0xf8] sm:$0xff] %v2048_v17  ;;  %2053 = vtanh.f32 %v1267_v18 }
 0x197   : > { %v2052_v20 = vpop.eup %2051  ;;  %1604 = vst [vmem:[%s2419_s6 + $0x3f0] sm:$0xff] %v2050_v19  ;;  %v1347_v21 = vpop.f32.mrf.mxu3 }
 0x198   : > { %1541 = vst [vmem:[%s2419_s6 + $0x1f8] sm:$0xff] %v2052_v20  ;;  %2055 = vtanh.f32 %v1347_v21 }
 0x19c   : > { %v2054_v22 = vpop.eup %2053 }
 0x19d   : > { %1573 = vst [vmem:[%s2419_s6 + $0x2f8] sm:$0xff] %v2054_v22 }
 0x19e   : > { %v2056_v23 = vpop.eup %2055 }
 0x19f   : > { %1605 = vst [vmem:[%s2419_s6 + $0x3f8] sm:$0xff] %v2056_v23 }
 0x1a0 PF: > { %s14_s17 = sadd.s32 1, %s2081_s17   ;;  %s2756_s15 = smov %s2077_s16 }
 0x1a1   : > { %p11_p5 = scmp.ge.s32.totalorder %s14_s17, 4   ;;  %s2757_s16 = smov %s2759_s18 }
 0x1a3   :  { %13 = sbr.rel (!%p11_p5) target bundleno = 2 (0x2), region = 69 }

</bundles_post_ra>
